<compile_context>
chip_gen: v6e
topology: v6e:2x2x1
jax: 0.10.0
libtpu: 0.0.40
codegen_flags: <defaults>
</compile_context>

<pallas_src>
import jax
import jax.numpy as jnp
from jax.experimental import pallas as pl
from jax.experimental.pallas import tpu as pltpu

# ----- scaled-down config (structure identical to the PyTorch module) -----
N_EMBD = 128          # n_embd     (384 in the original)
N_HEADS = 4           # n_heads    (6   in the original)
HEAD_SIZE = N_EMBD // N_HEADS
N_LAYER = 2           # n_layer    (6   in the original)
BLOCK_SIZE = 16       # block_size (256 in the original)
VOCAB_SIZE = 128      # vocab_size (len(chars) in the original)
LN_EPS = 1e-5         # torch.nn.LayerNorm default


def _layer_norm(x, gamma, beta):
    mu = jnp.mean(x, axis=-1, keepdims=True)
    var = jnp.mean((x - mu) ** 2, axis=-1, keepdims=True)
    return (x - mu) * jax.lax.rsqrt(var + LN_EPS) * gamma + beta


# --------------------------- fused forward kernel ----------------------------
def gpt_fused_kernel(tok_ref, tok_emb_ref, pos_emb_ref,
                     ln1_g_ref, ln1_b_ref, wqkv_ref, wo_ref, bo_ref,
                     ln2_g_ref, ln2_b_ref, w1_ref, b1_ref, w2_ref, b2_ref,
                     lnf_g_ref, lnf_b_ref, wlm_ref, blm_ref,
                     out_ref):
    T = tok_ref.shape[1]
    C, H, hs, V = N_EMBD, N_HEADS, HEAD_SIZE, VOCAB_SIZE
    scale = float(hs) ** -0.5

    # ---- token embedding via one-hot matmul (MXU gather) + positional embedding ----
    tok_ids = tok_ref[0]                                            # (T, 1) int32
    vocab_iota = jax.lax.broadcasted_iota(jnp.int32, (T, V), 1)     # (T, V)
    onehot = (vocab_iota == tok_ids).astype(jnp.float32)            # (T, V)
    x = jnp.dot(onehot, tok_emb_ref[...],
                preferred_element_type=jnp.float32) + pos_emb_ref[...]   # (T, C) f32

    # ---- causal mask: computed once per kernel invocation (hoisted) ----
    row = jax.lax.broadcasted_iota(jnp.int32, (T, T), 0)
    col = jax.lax.broadcasted_iota(jnp.int32, (T, T), 1)
    causal = row >= col

    for l in range(N_LAYER):                                        # static unroll
        # ---- multi-head causal self-attention over ln1(x) ----
        h = _layer_norm(x, ln1_g_ref[l], ln1_b_ref[l])              # f32 (T, C)
        qkv = jnp.dot(h.astype(jnp.bfloat16), wqkv_ref[l],
                      preferred_element_type=jnp.float32)           # (T, 3C) f32
        q = qkv[:, 0:C]
        k = qkv[:, C:2 * C]
        v = qkv[:, 2 * C:3 * C]

        wo_l = wo_ref[l]                                            # (C, C) bf16
        sa = jnp.zeros((T, C), jnp.float32)
        for hh in range(H):                                         # static unroll
            qh = q[:, hh * hs:(hh + 1) * hs].astype(jnp.bfloat16)
            kh = k[:, hh * hs:(hh + 1) * hs].astype(jnp.bfloat16)
            vh = v[:, hh * hs:(hh + 1) * hs].astype(jnp.bfloat16)
            # q @ k^T as an rhs-transposed MXU contraction (no XLU transpose)
            scores = jax.lax.dot_general(
                qh, kh, (((1,), (1,)), ((), ())),
                preferred_element_type=jnp.float32) * scale          # (T, T) f32
            scores = jnp.where(causal, scores, -jnp.inf)
            scores = scores - jnp.max(scores, axis=-1, keepdims=True)
            p = jnp.exp(scores)
            denom = jnp.sum(p, axis=-1, keepdims=True)
            p = p * pl.reciprocal(denom, approx=True)                # EUP slot
            # TODO(synk): attention/proj/ffn dropout omitted (eval-mode forward).
            oh = jnp.dot(p.astype(jnp.bfloat16), vh,
                         preferred_element_type=jnp.float32)         # (T, hs)
            # accumulate head output through its slice of Wo (avoids lane concat)
            sa = sa + jnp.dot(oh.astype(jnp.bfloat16),
                              wo_l[hh * hs:(hh + 1) * hs, :],
                              preferred_element_type=jnp.float32)
        x = x + sa + bo_ref[l]                                       # residual 1

        # ---- feed-forward over ln2(x) ----
        h2 = _layer_norm(x, ln2_g_ref[l], ln2_b_ref[l])
        ff = jnp.dot(h2.astype(jnp.bfloat16), w1_ref[l],
                     preferred_element_type=jnp.float32) + b1_ref[l]
        ff = jnp.maximum(ff, 0.0)                                    # ReLU (f32)
        ff = jnp.dot(ff.astype(jnp.bfloat16), w2_ref[l],
                     preferred_element_type=jnp.float32) + b2_ref[l]
        x = x + ff                                                   # residual 2

    # ---- final LayerNorm + lm_head (lane-dense (T, V) store) ----
    hf = _layer_norm(x, lnf_g_ref[...], lnf_b_ref[...])
    out_ref[0] = jnp.dot(hf.astype(jnp.bfloat16), wlm_ref[...],
                         preferred_element_type=jnp.float32) + blm_ref[...]


# ------------------------------ pallas wrapper -------------------------------
def _full_spec(a):
    return pl.BlockSpec(a.shape, lambda b, n=a.ndim: (0,) * n)


def gpt_forward_pallas(tokens, params):
    B, T = tokens.shape
    tok3 = tokens.reshape(B, T, 1).astype(jnp.int32)
    pos = params["pos_emb"][:T]                                      # (T, C)

    weight_args = (
        params["tok_emb"], pos,
        params["ln1_g"], params["ln1_b"],
        params["wqkv"], params["wo"], params["bo"],
        params["ln2_g"], params["ln2_b"],
        params["w1"], params["b1"], params["w2"], params["b2"],
        params["lnf_g"], params["lnf_b"],
        params["wlm"], params["blm"],
    )
    in_specs = [pl.BlockSpec((1, T, 1), lambda b: (b, 0, 0))] + \
               [_full_spec(a) for a in weight_args]
    return pl.pallas_call(
        gpt_fused_kernel,
        out_shape=jax.ShapeDtypeStruct((B, T, VOCAB_SIZE), jnp.float32),
        grid=(B,),
        in_specs=in_specs,
        out_specs=pl.BlockSpec((1, T, VOCAB_SIZE), lambda b: (b, 0, 0)),
        compiler_params=pltpu.CompilerParams(
            dimension_semantics=("parallel",)),
    )(tok3, *weight_args)


@jax.jit
def gpt_forward(tokens, params):
    return gpt_forward_pallas(tokens, params)


# ------------------------- pure-JAX reference (same math) ---------------------
def gpt_forward_ref(tokens, params):
    B, T = tokens.shape
    C, H, hs = N_EMBD, N_HEADS, HEAD_SIZE
    x = params["tok_emb"][tokens] + params["pos_emb"][:T]            # (B, T, C) f32
    causal = jnp.tril(jnp.ones((T, T), bool))
    for l in range(N_LAYER):
        h = _layer_norm(x, params["ln1_g"][l], params["ln1_b"][l])
        qkv = jnp.einsum('btc,cd->btd', h.astype(jnp.bfloat16), params["wqkv"][l],
                         preferred_element_type=jnp.float32)
        q, k, v = qkv[..., :C], qkv[..., C:2 * C], qkv[..., 2 * C:]
        sa = jnp.zeros_like(x)
        for hh in range(H):
            qh = q[..., hh * hs:(hh + 1) * hs].astype(jnp.bfloat16)
            kh = k[..., hh * hs:(hh + 1) * hs].astype(jnp.bfloat16)
            vh = v[..., hh * hs:(hh + 1) * hs].astype(jnp.bfloat16)
            s = jnp.einsum('btd,bsd->bts', qh, kh,
                           preferred_element_type=jnp.float32) * (float(hs) ** -0.5)
            s = jnp.where(causal, s, -jnp.inf)
            p = jax.nn.softmax(s, axis=-1)
            oh = jnp.einsum('bts,bsd->btd', p.astype(jnp.bfloat16), vh,
                            preferred_element_type=jnp.float32)
            sa = sa + jnp.einsum('btd,dc->btc', oh.astype(jnp.bfloat16),
                                 params["wo"][l][hh * hs:(hh + 1) * hs],
                                 preferred_element_type=jnp.float32)
        x = x + sa + params["bo"][l]
        h2 = _layer_norm(x, params["ln2_g"][l], params["ln2_b"][l])
        ff = jnp.einsum('btc,cd->btd', h2.astype(jnp.bfloat16), params["w1"][l],
                        preferred_element_type=jnp.float32) + params["b1"][l]
        ff = jnp.maximum(ff, 0.0)
        ff = jnp.einsum('btd,dc->btc', ff.astype(jnp.bfloat16), params["w2"][l],
                        preferred_element_type=jnp.float32) + params["b2"][l]
        x = x + ff
    hf = _layer_norm(x, params["lnf_g"], params["lnf_b"])
    return jnp.einsum('btc,cv->btv', hf.astype(jnp.bfloat16), params["wlm"],
                      preferred_element_type=jnp.float32) + params["blm"]


# ------------------------------ parameter init --------------------------------
def init_params(key):
    C, H4, V, L = N_EMBD, 4 * N_EMBD, VOCAB_SIZE, N_LAYER
    keys = jax.random.split(key, 2 + 4 * L + 1)
    ki = iter(keys)

    def randn(shape):
        return 0.02 * jax.random.normal(next(ki), shape, jnp.float32)

    params = {
        "tok_emb": randn((V, C)),                       # token embedding (f32)
        "pos_emb": randn((BLOCK_SIZE, C)),              # positional embedding (f32)
        "ln1_g": jnp.ones((L, 1, C), jnp.float32),
        "ln1_b": jnp.zeros((L, 1, C), jnp.float32),
        "ln2_g": jnp.ones((L, 1, C), jnp.float32),
        "ln2_b": jnp.zeros((L, 1, C), jnp.float32),
        "bo": jnp.zeros((L, 1, C), jnp.float32),
        "b1": jnp.zeros((L, 1, H4), jnp.float32),
        "b2": jnp.zeros((L, 1, C), jnp.float32),
        "lnf_g": jnp.ones((1, C), jnp.float32),
        "lnf_b": jnp.zeros((1, C), jnp.float32),
        "blm": jnp.zeros((1, V), jnp.float32),
    }
    wqkv_l, wo_l, w1_l, w2_l = [], [], [], []
    for _ in range(L):
        wqkv_l.append(randn((C, 3 * C)))                # fused Wq|Wk|Wv
        wo_l.append(randn((C, C)))
        w1_l.append(randn((C, H4)))
        w2_l.append(randn((H4, C)))
    params["wqkv"] = jnp.stack(wqkv_l).astype(jnp.bfloat16)
    params["wo"] = jnp.stack(wo_l).astype(jnp.bfloat16)
    params["w1"] = jnp.stack(w1_l).astype(jnp.bfloat16)
    params["w2"] = jnp.stack(w2_l).astype(jnp.bfloat16)
    params["wlm"] = randn((C, V)).astype(jnp.bfloat16)
    return params


# ----------------------------------- main --------------------------------------
if __name__ == "__main__":
    key = jax.random.PRNGKey(0)
    pkey, dkey = jax.random.split(key)
    params = init_params(pkey)

    B, T = 2, BLOCK_SIZE
    tokens = jax.random.randint(dkey, (B, T), 0, VOCAB_SIZE, dtype=jnp.int32)

    logits = gpt_forward(tokens, params)
    jax.block_until_ready(logits)
    assert logits.shape == (B, T, VOCAB_SIZE)
    assert bool(jnp.all(jnp.isfinite(logits)))

    # numerical check against a pure-JAX reference with identical math
    ref = gpt_forward_ref(tokens, params)
    jax.block_until_ready(ref)
    max_err = float(jnp.max(jnp.abs(logits - ref)))
    assert max_err < 1e-2, f"kernel/ref mismatch: max abs err {max_err}"

    print("KERNEL_OK")
</pallas_src>

<mosaic_0001>
module attributes {stable_mosaic.version = 11 : i64} {
  func.func @gpt_fused_kernel(%arg0: i32, %arg1: memref<1x16x1xi32, #tpu.memory_space<vmem>>, %arg2: memref<128x128xf32, #tpu.memory_space<vmem>>, %arg3: memref<16x128xf32, #tpu.memory_space<vmem>>, %arg4: memref<2x1x128xf32, #tpu.memory_space<vmem>>, %arg5: memref<2x1x128xf32, #tpu.memory_space<vmem>>, %arg6: memref<2x128x384xbf16, #tpu.memory_space<vmem>>, %arg7: memref<2x128x128xbf16, #tpu.memory_space<vmem>>, %arg8: memref<2x1x128xf32, #tpu.memory_space<vmem>>, %arg9: memref<2x1x128xf32, #tpu.memory_space<vmem>>, %arg10: memref<2x1x128xf32, #tpu.memory_space<vmem>>, %arg11: memref<2x128x512xbf16, #tpu.memory_space<vmem>>, %arg12: memref<2x1x512xf32, #tpu.memory_space<vmem>>, %arg13: memref<2x512x128xbf16, #tpu.memory_space<vmem>>, %arg14: memref<2x1x128xf32, #tpu.memory_space<vmem>>, %arg15: memref<1x128xf32, #tpu.memory_space<vmem>>, %arg16: memref<1x128xf32, #tpu.memory_space<vmem>>, %arg17: memref<128x128xbf16, #tpu.memory_space<vmem>>, %arg18: memref<1x128xf32, #tpu.memory_space<vmem>>, %arg19: memref<1x16x128xf32, #tpu.memory_space<vmem>>) attributes {dimension_semantics = [#tpu.dimension_semantics<parallel>], iteration_bounds = array<i64: 2>, scalar_prefetch = 0 : i64, scratch_operands = 0 : i64, tpu.core_type = #tpu.core_type<tc>, window_params = [{transform_indices = @transform_0, window_bounds = array<i64: 1, 16, 1>}, {pipeline_mode = #tpu.pipeline_mode<synchronous>, transform_indices = @transform_1, window_bounds = array<i64: 128, 128>}, {pipeline_mode = #tpu.pipeline_mode<synchronous>, transform_indices = @transform_2, window_bounds = array<i64: 16, 128>}, {pipeline_mode = #tpu.pipeline_mode<synchronous>, transform_indices = @transform_3, window_bounds = array<i64: 2, 1, 128>}, {pipeline_mode = #tpu.pipeline_mode<synchronous>, transform_indices = @transform_4, window_bounds = array<i64: 2, 1, 128>}, {pipeline_mode = #tpu.pipeline_mode<synchronous>, transform_indices = @transform_5, window_bounds = array<i64: 2, 128, 384>}, {pipeline_mode = #tpu.pipeline_mode<synchronous>, transform_indices = @transform_6, window_bounds = array<i64: 2, 128, 128>}, {pipeline_mode = #tpu.pipeline_mode<synchronous>, transform_indices = @transform_7, window_bounds = array<i64: 2, 1, 128>}, {pipeline_mode = #tpu.pipeline_mode<synchronous>, transform_indices = @transform_8, window_bounds = array<i64: 2, 1, 128>}, {pipeline_mode = #tpu.pipeline_mode<synchronous>, transform_indices = @transform_9, window_bounds = array<i64: 2, 1, 128>}, {pipeline_mode = #tpu.pipeline_mode<synchronous>, transform_indices = @transform_10, window_bounds = array<i64: 2, 128, 512>}, {pipeline_mode = #tpu.pipeline_mode<synchronous>, transform_indices = @transform_11, window_bounds = array<i64: 2, 1, 512>}, {pipeline_mode = #tpu.pipeline_mode<synchronous>, transform_indices = @transform_12, window_bounds = array<i64: 2, 512, 128>}, {pipeline_mode = #tpu.pipeline_mode<synchronous>, transform_indices = @transform_13, window_bounds = array<i64: 2, 1, 128>}, {pipeline_mode = #tpu.pipeline_mode<synchronous>, transform_indices = @transform_14, window_bounds = array<i64: 1, 128>}, {pipeline_mode = #tpu.pipeline_mode<synchronous>, transform_indices = @transform_15, window_bounds = array<i64: 1, 128>}, {pipeline_mode = #tpu.pipeline_mode<synchronous>, transform_indices = @transform_16, window_bounds = array<i64: 128, 128>}, {pipeline_mode = #tpu.pipeline_mode<synchronous>, transform_indices = @transform_17, window_bounds = array<i64: 1, 128>}, {transform_indices = @transform_18, window_bounds = array<i64: 1, 16, 128>}]} {
    %c0 = arith.constant 0 : index
    %c0_0 = arith.constant 0 : index
    %c0_1 = arith.constant 0 : index
    %0 = vector.load %arg1[%c0, %c0_0, %c0_1] : memref<1x16x1xi32, #tpu.memory_space<vmem>>, vector<1x16x1xi32>
    %1 = vector.shape_cast %0 : vector<1x16x1xi32> to vector<16x1xi32>
    %2 = tpu.iota {dimensions = array<i32: 1>} : vector<16x128xi32>
    %3 = vector.broadcast %1 : vector<16x1xi32> to vector<16x128xi32>
    %4 = arith.cmpi eq, %2, %3 : vector<16x128xi32>
    %5 = arith.extui %4 : vector<16x128xi1> to vector<16x128xi32>
    %6 = arith.sitofp %5 : vector<16x128xi32> to vector<16x128xf32>
    %c0_2 = arith.constant 0 : index
    %c0_3 = arith.constant 0 : index
    %7 = vector.load %arg2[%c0_2, %c0_3] : memref<128x128xf32, #tpu.memory_space<vmem>>, vector<128x128xf32>
    %cst = arith.constant dense<0.000000e+00> : vector<16x128xf32>
    %8 = tpu.matmul %6, %7, %cst {dimension_numbers = #tpu.dot_dimension_numbers<[1], [0], [0], [1], [0, 0, 1, 1], [], []>} : vector<16x128xf32>, vector<128x128xf32>, vector<16x128xf32> -> vector<16x128xf32>
    %c0_4 = arith.constant 0 : index
    %c0_5 = arith.constant 0 : index
    %9 = vector.load %arg3[%c0_4, %c0_5] : memref<16x128xf32, #tpu.memory_space<vmem>>, vector<16x128xf32>
    %10 = arith.addf %8, %9 : vector<16x128xf32>
    %11 = tpu.iota {dimensions = array<i32: 0>} : vector<16x16xi32>
    %12 = tpu.iota {dimensions = array<i32: 1>} : vector<16x16xi32>
    %13 = arith.cmpi sge, %11, %12 : vector<16x16xi32>
    %c0_6 = arith.constant 0 : index
    %c0_7 = arith.constant 0 : index
    %c0_8 = arith.constant 0 : index
    %14 = vector.load %arg4[%c0_6, %c0_7, %c0_8] : memref<2x1x128xf32, #tpu.memory_space<vmem>>, vector<1x1x128xf32>
    %15 = vector.shape_cast %14 : vector<1x1x128xf32> to vector<1x128xf32>
    %c0_9 = arith.constant 0 : index
    %c0_10 = arith.constant 0 : index
    %c0_11 = arith.constant 0 : index
    %16 = vector.load %arg5[%c0_9, %c0_10, %c0_11] : memref<2x1x128xf32, #tpu.memory_space<vmem>>, vector<1x1x128xf32>
    %17 = vector.shape_cast %16 : vector<1x1x128xf32> to vector<1x128xf32>
    %cst_12 = arith.constant dense<0.000000e+00> : vector<16xf32>
    %18 = vector.multi_reduction <add>, %10, %cst_12 [1] : vector<16x128xf32> to vector<16xf32>
    %19 = vector.shape_cast %18 : vector<16xf32> to vector<16x1xf32>
    %cst_13 = arith.constant 1.280000e+02 : f32
    %20 = vector.broadcast %cst_13 : f32 to vector<16x1xf32>
    %21 = arith.divf %19, %20 : vector<16x1xf32>
    %22 = vector.broadcast %21 : vector<16x1xf32> to vector<16x128xf32>
    %23 = arith.subf %10, %22 : vector<16x128xf32>
    %24 = arith.mulf %23, %23 : vector<16x128xf32>
    %cst_14 = arith.constant dense<0.000000e+00> : vector<16xf32>
    %25 = vector.multi_reduction <add>, %24, %cst_14 [1] : vector<16x128xf32> to vector<16xf32>
    %26 = vector.shape_cast %25 : vector<16xf32> to vector<16x1xf32>
    %cst_15 = arith.constant 1.280000e+02 : f32
    %27 = vector.broadcast %cst_15 : f32 to vector<16x1xf32>
    %28 = arith.divf %26, %27 : vector<16x1xf32>
    %29 = vector.broadcast %21 : vector<16x1xf32> to vector<16x128xf32>
    %30 = arith.subf %10, %29 : vector<16x128xf32>
    %cst_16 = arith.constant 9.99999974E-6 : f32
    %31 = vector.broadcast %cst_16 : f32 to vector<16x1xf32>
    %32 = arith.addf %28, %31 : vector<16x1xf32>
    %33 = math.rsqrt %32 : vector<16x1xf32>
    %34 = vector.broadcast %33 : vector<16x1xf32> to vector<16x128xf32>
    %35 = arith.mulf %30, %34 : vector<16x128xf32>
    %36 = vector.broadcast %15 : vector<1x128xf32> to vector<16x128xf32>
    %37 = arith.mulf %35, %36 : vector<16x128xf32>
    %38 = vector.broadcast %17 : vector<1x128xf32> to vector<16x128xf32>
    %39 = arith.addf %37, %38 : vector<16x128xf32>
    %40 = arith.truncf %39 : vector<16x128xf32> to vector<16x128xbf16>
    %c0_17 = arith.constant 0 : index
    %c0_18 = arith.constant 0 : index
    %c0_19 = arith.constant 0 : index
    %41 = vector.load %arg6[%c0_17, %c0_18, %c0_19] : memref<2x128x384xbf16, #tpu.memory_space<vmem>>, vector<1x128x384xbf16>
    %42 = vector.shape_cast %41 : vector<1x128x384xbf16> to vector<128x384xbf16>
    %cst_20 = arith.constant dense<0.000000e+00> : vector<16x384xf32>
    %43 = tpu.matmul %40, %42, %cst_20 {dimension_numbers = #tpu.dot_dimension_numbers<[1], [0], [0], [1], [0, 0, 1, 1], [], []>} : vector<16x128xbf16>, vector<128x384xbf16>, vector<16x384xf32> -> vector<16x384xf32>
    %44 = vector.extract_strided_slice %43 {offsets = [0, 0], sizes = [16, 128], strides = [1, 1]} : vector<16x384xf32> to vector<16x128xf32>
    %45 = vector.extract_strided_slice %43 {offsets = [0, 128], sizes = [16, 128], strides = [1, 1]} : vector<16x384xf32> to vector<16x128xf32>
    %46 = vector.extract_strided_slice %43 {offsets = [0, 256], sizes = [16, 128], strides = [1, 1]} : vector<16x384xf32> to vector<16x128xf32>
    %c0_21 = arith.constant 0 : index
    %c0_22 = arith.constant 0 : index
    %c0_23 = arith.constant 0 : index
    %47 = vector.load %arg7[%c0_21, %c0_22, %c0_23] : memref<2x128x128xbf16, #tpu.memory_space<vmem>>, vector<1x128x128xbf16>
    %48 = vector.shape_cast %47 : vector<1x128x128xbf16> to vector<128x128xbf16>
    %cst_24 = arith.constant 0.000000e+00 : f32
    %49 = vector.broadcast %cst_24 : f32 to vector<16x128xf32>
    %50 = vector.extract_strided_slice %44 {offsets = [0, 0], sizes = [16, 32], strides = [1, 1]} : vector<16x128xf32> to vector<16x32xf32>
    %51 = arith.truncf %50 : vector<16x32xf32> to vector<16x32xbf16>
    %52 = vector.extract_strided_slice %45 {offsets = [0, 0], sizes = [16, 32], strides = [1, 1]} : vector<16x128xf32> to vector<16x32xf32>
    %53 = arith.truncf %52 : vector<16x32xf32> to vector<16x32xbf16>
    %54 = vector.extract_strided_slice %46 {offsets = [0, 0], sizes = [16, 32], strides = [1, 1]} : vector<16x128xf32> to vector<16x32xf32>
    %55 = arith.truncf %54 : vector<16x32xf32> to vector<16x32xbf16>
    %cst_25 = arith.constant dense<0.000000e+00> : vector<16x16xf32>
    %56 = tpu.matmul %51, %53, %cst_25 {dimension_numbers = #tpu.dot_dimension_numbers<[1], [1], [0], [0], [0, 0, 1, 0], [], []>} : vector<16x32xbf16>, vector<16x32xbf16>, vector<16x16xf32> -> vector<16x16xf32>
    %cst_26 = arith.constant 0.176776692 : f32
    %57 = vector.broadcast %cst_26 : f32 to vector<16x16xf32>
    %58 = arith.mulf %56, %57 : vector<16x16xf32>
    %cst_27 = arith.constant 0xFF800000 : f32
    %59 = vector.broadcast %cst_27 : f32 to vector<16x16xf32>
    %60 = arith.select %13, %58, %59 : vector<16x16xi1>, vector<16x16xf32>
    %cst_28 = arith.constant dense<0xFF800000> : vector<16xf32>
    %61 = vector.multi_reduction <maximumf>, %60, %cst_28 [1] : vector<16x16xf32> to vector<16xf32>
    %62 = vector.shape_cast %61 : vector<16xf32> to vector<16x1xf32>
    %63 = vector.broadcast %62 : vector<16x1xf32> to vector<16x16xf32>
    %64 = arith.subf %60, %63 : vector<16x16xf32>
    %65 = math.exp %64 : vector<16x16xf32>
    %cst_29 = arith.constant dense<0.000000e+00> : vector<16xf32>
    %66 = vector.multi_reduction <add>, %65, %cst_29 [1] : vector<16x16xf32> to vector<16xf32>
    %67 = vector.shape_cast %66 : vector<16xf32> to vector<16x1xf32>
    %68 = tpu.reciprocal %67 {approx = true} : vector<16x1xf32> -> vector<16x1xf32>
    %69 = vector.broadcast %68 : vector<16x1xf32> to vector<16x16xf32>
    %70 = arith.mulf %65, %69 : vector<16x16xf32>
    %71 = arith.truncf %70 : vector<16x16xf32> to vector<16x16xbf16>
    %cst_30 = arith.constant dense<0.000000e+00> : vector<16x32xf32>
    %72 = tpu.matmul %71, %55, %cst_30 {dimension_numbers = #tpu.dot_dimension_numbers<[1], [0], [0], [1], [0, 0, 1, 1], [], []>} : vector<16x16xbf16>, vector<16x32xbf16>, vector<16x32xf32> -> vector<16x32xf32>
    %73 = arith.truncf %72 : vector<16x32xf32> to vector<16x32xbf16>
    %74 = vector.extract_strided_slice %48 {offsets = [0, 0], sizes = [32, 128], strides = [1, 1]} : vector<128x128xbf16> to vector<32x128xbf16>
    %cst_31 = arith.constant dense<0.000000e+00> : vector<16x128xf32>
    %75 = tpu.matmul %73, %74, %cst_31 {dimension_numbers = #tpu.dot_dimension_numbers<[1], [0], [0], [1], [0, 0, 1, 1], [], []>} : vector<16x32xbf16>, vector<32x128xbf16>, vector<16x128xf32> -> vector<16x128xf32>
    %76 = arith.addf %49, %75 : vector<16x128xf32>
    %77 = vector.extract_strided_slice %44 {offsets = [0, 32], sizes = [16, 32], strides = [1, 1]} : vector<16x128xf32> to vector<16x32xf32>
    %78 = arith.truncf %77 : vector<16x32xf32> to vector<16x32xbf16>
    %79 = vector.extract_strided_slice %45 {offsets = [0, 32], sizes = [16, 32], strides = [1, 1]} : vector<16x128xf32> to vector<16x32xf32>
    %80 = arith.truncf %79 : vector<16x32xf32> to vector<16x32xbf16>
    %81 = vector.extract_strided_slice %46 {offsets = [0, 32], sizes = [16, 32], strides = [1, 1]} : vector<16x128xf32> to vector<16x32xf32>
    %82 = arith.truncf %81 : vector<16x32xf32> to vector<16x32xbf16>
    %cst_32 = arith.constant dense<0.000000e+00> : vector<16x16xf32>
    %83 = tpu.matmul %78, %80, %cst_32 {dimension_numbers = #tpu.dot_dimension_numbers<[1], [1], [0], [0], [0, 0, 1, 0], [], []>} : vector<16x32xbf16>, vector<16x32xbf16>, vector<16x16xf32> -> vector<16x16xf32>
    %cst_33 = arith.constant 0.176776692 : f32
    %84 = vector.broadcast %cst_33 : f32 to vector<16x16xf32>
    %85 = arith.mulf %83, %84 : vector<16x16xf32>
    %cst_34 = arith.constant 0xFF800000 : f32
    %86 = vector.broadcast %cst_34 : f32 to vector<16x16xf32>
    %87 = arith.select %13, %85, %86 : vector<16x16xi1>, vector<16x16xf32>
    %cst_35 = arith.constant dense<0xFF800000> : vector<16xf32>
    %88 = vector.multi_reduction <maximumf>, %87, %cst_35 [1] : vector<16x16xf32> to vector<16xf32>
    %89 = vector.shape_cast %88 : vector<16xf32> to vector<16x1xf32>
    %90 = vector.broadcast %89 : vector<16x1xf32> to vector<16x16xf32>
    %91 = arith.subf %87, %90 : vector<16x16xf32>
    %92 = math.exp %91 : vector<16x16xf32>
    %cst_36 = arith.constant dense<0.000000e+00> : vector<16xf32>
    %93 = vector.multi_reduction <add>, %92, %cst_36 [1] : vector<16x16xf32> to vector<16xf32>
    %94 = vector.shape_cast %93 : vector<16xf32> to vector<16x1xf32>
    %95 = tpu.reciprocal %94 {approx = true} : vector<16x1xf32> -> vector<16x1xf32>
    %96 = vector.broadcast %95 : vector<16x1xf32> to vector<16x16xf32>
    %97 = arith.mulf %92, %96 : vector<16x16xf32>
    %98 = arith.truncf %97 : vector<16x16xf32> to vector<16x16xbf16>
    %cst_37 = arith.constant dense<0.000000e+00> : vector<16x32xf32>
    %99 = tpu.matmul %98, %82, %cst_37 {dimension_numbers = #tpu.dot_dimension_numbers<[1], [0], [0], [1], [0, 0, 1, 1], [], []>} : vector<16x16xbf16>, vector<16x32xbf16>, vector<16x32xf32> -> vector<16x32xf32>
    %100 = arith.truncf %99 : vector<16x32xf32> to vector<16x32xbf16>
    %101 = vector.extract_strided_slice %48 {offsets = [32, 0], sizes = [32, 128], strides = [1, 1]} : vector<128x128xbf16> to vector<32x128xbf16>
    %cst_38 = arith.constant dense<0.000000e+00> : vector<16x128xf32>
    %102 = tpu.matmul %100, %101, %cst_38 {dimension_numbers = #tpu.dot_dimension_numbers<[1], [0], [0], [1], [0, 0, 1, 1], [], []>} : vector<16x32xbf16>, vector<32x128xbf16>, vector<16x128xf32> -> vector<16x128xf32>
    %103 = arith.addf %76, %102 : vector<16x128xf32>
    %104 = vector.extract_strided_slice %44 {offsets = [0, 64], sizes = [16, 32], strides = [1, 1]} : vector<16x128xf32> to vector<16x32xf32>
    %105 = arith.truncf %104 : vector<16x32xf32> to vector<16x32xbf16>
    %106 = vector.extract_strided_slice %45 {offsets = [0, 64], sizes = [16, 32], strides = [1, 1]} : vector<16x128xf32> to vector<16x32xf32>
    %107 = arith.truncf %106 : vector<16x32xf32> to vector<16x32xbf16>
    %108 = vector.extract_strided_slice %46 {offsets = [0, 64], sizes = [16, 32], strides = [1, 1]} : vector<16x128xf32> to vector<16x32xf32>
    %109 = arith.truncf %108 : vector<16x32xf32> to vector<16x32xbf16>
    %cst_39 = arith.constant dense<0.000000e+00> : vector<16x16xf32>
    %110 = tpu.matmul %105, %107, %cst_39 {dimension_numbers = #tpu.dot_dimension_numbers<[1], [1], [0], [0], [0, 0, 1, 0], [], []>} : vector<16x32xbf16>, vector<16x32xbf16>, vector<16x16xf32> -> vector<16x16xf32>
    %cst_40 = arith.constant 0.176776692 : f32
    %111 = vector.broadcast %cst_40 : f32 to vector<16x16xf32>
    %112 = arith.mulf %110, %111 : vector<16x16xf32>
    %cst_41 = arith.constant 0xFF800000 : f32
    %113 = vector.broadcast %cst_41 : f32 to vector<16x16xf32>
    %114 = arith.select %13, %112, %113 : vector<16x16xi1>, vector<16x16xf32>
    %cst_42 = arith.constant dense<0xFF800000> : vector<16xf32>
    %115 = vector.multi_reduction <maximumf>, %114, %cst_42 [1] : vector<16x16xf32> to vector<16xf32>
    %116 = vector.shape_cast %115 : vector<16xf32> to vector<16x1xf32>
    %117 = vector.broadcast %116 : vector<16x1xf32> to vector<16x16xf32>
    %118 = arith.subf %114, %117 : vector<16x16xf32>
    %119 = math.exp %118 : vector<16x16xf32>
    %cst_43 = arith.constant dense<0.000000e+00> : vector<16xf32>
    %120 = vector.multi_reduction <add>, %119, %cst_43 [1] : vector<16x16xf32> to vector<16xf32>
    %121 = vector.shape_cast %120 : vector<16xf32> to vector<16x1xf32>
    %122 = tpu.reciprocal %121 {approx = true} : vector<16x1xf32> -> vector<16x1xf32>
    %123 = vector.broadcast %122 : vector<16x1xf32> to vector<16x16xf32>
    %124 = arith.mulf %119, %123 : vector<16x16xf32>
    %125 = arith.truncf %124 : vector<16x16xf32> to vector<16x16xbf16>
    %cst_44 = arith.constant dense<0.000000e+00> : vector<16x32xf32>
    %126 = tpu.matmul %125, %109, %cst_44 {dimension_numbers = #tpu.dot_dimension_numbers<[1], [0], [0], [1], [0, 0, 1, 1], [], []>} : vector<16x16xbf16>, vector<16x32xbf16>, vector<16x32xf32> -> vector<16x32xf32>
    %127 = arith.truncf %126 : vector<16x32xf32> to vector<16x32xbf16>
    %128 = vector.extract_strided_slice %48 {offsets = [64, 0], sizes = [32, 128], strides = [1, 1]} : vector<128x128xbf16> to vector<32x128xbf16>
    %cst_45 = arith.constant dense<0.000000e+00> : vector<16x128xf32>
    %129 = tpu.matmul %127, %128, %cst_45 {dimension_numbers = #tpu.dot_dimension_numbers<[1], [0], [0], [1], [0, 0, 1, 1], [], []>} : vector<16x32xbf16>, vector<32x128xbf16>, vector<16x128xf32> -> vector<16x128xf32>
    %130 = arith.addf %103, %129 : vector<16x128xf32>
    %131 = vector.extract_strided_slice %44 {offsets = [0, 96], sizes = [16, 32], strides = [1, 1]} : vector<16x128xf32> to vector<16x32xf32>
    %132 = arith.truncf %131 : vector<16x32xf32> to vector<16x32xbf16>
    %133 = vector.extract_strided_slice %45 {offsets = [0, 96], sizes = [16, 32], strides = [1, 1]} : vector<16x128xf32> to vector<16x32xf32>
    %134 = arith.truncf %133 : vector<16x32xf32> to vector<16x32xbf16>
    %135 = vector.extract_strided_slice %46 {offsets = [0, 96], sizes = [16, 32], strides = [1, 1]} : vector<16x128xf32> to vector<16x32xf32>
    %136 = arith.truncf %135 : vector<16x32xf32> to vector<16x32xbf16>
    %cst_46 = arith.constant dense<0.000000e+00> : vector<16x16xf32>
    %137 = tpu.matmul %132, %134, %cst_46 {dimension_numbers = #tpu.dot_dimension_numbers<[1], [1], [0], [0], [0, 0, 1, 0], [], []>} : vector<16x32xbf16>, vector<16x32xbf16>, vector<16x16xf32> -> vector<16x16xf32>
    %cst_47 = arith.constant 0.176776692 : f32
    %138 = vector.broadcast %cst_47 : f32 to vector<16x16xf32>
    %139 = arith.mulf %137, %138 : vector<16x16xf32>
    %cst_48 = arith.constant 0xFF800000 : f32
    %140 = vector.broadcast %cst_48 : f32 to vector<16x16xf32>
    %141 = arith.select %13, %139, %140 : vector<16x16xi1>, vector<16x16xf32>
    %cst_49 = arith.constant dense<0xFF800000> : vector<16xf32>
    %142 = vector.multi_reduction <maximumf>, %141, %cst_49 [1] : vector<16x16xf32> to vector<16xf32>
    %143 = vector.shape_cast %142 : vector<16xf32> to vector<16x1xf32>
    %144 = vector.broadcast %143 : vector<16x1xf32> to vector<16x16xf32>
    %145 = arith.subf %141, %144 : vector<16x16xf32>
    %146 = math.exp %145 : vector<16x16xf32>
    %cst_50 = arith.constant dense<0.000000e+00> : vector<16xf32>
    %147 = vector.multi_reduction <add>, %146, %cst_50 [1] : vector<16x16xf32> to vector<16xf32>
    %148 = vector.shape_cast %147 : vector<16xf32> to vector<16x1xf32>
    %149 = tpu.reciprocal %148 {approx = true} : vector<16x1xf32> -> vector<16x1xf32>
    %150 = vector.broadcast %149 : vector<16x1xf32> to vector<16x16xf32>
    %151 = arith.mulf %146, %150 : vector<16x16xf32>
    %152 = arith.truncf %151 : vector<16x16xf32> to vector<16x16xbf16>
    %cst_51 = arith.constant dense<0.000000e+00> : vector<16x32xf32>
    %153 = tpu.matmul %152, %136, %cst_51 {dimension_numbers = #tpu.dot_dimension_numbers<[1], [0], [0], [1], [0, 0, 1, 1], [], []>} : vector<16x16xbf16>, vector<16x32xbf16>, vector<16x32xf32> -> vector<16x32xf32>
    %154 = arith.truncf %153 : vector<16x32xf32> to vector<16x32xbf16>
    %155 = vector.extract_strided_slice %48 {offsets = [96, 0], sizes = [32, 128], strides = [1, 1]} : vector<128x128xbf16> to vector<32x128xbf16>
    %cst_52 = arith.constant dense<0.000000e+00> : vector<16x128xf32>
    %156 = tpu.matmul %154, %155, %cst_52 {dimension_numbers = #tpu.dot_dimension_numbers<[1], [0], [0], [1], [0, 0, 1, 1], [], []>} : vector<16x32xbf16>, vector<32x128xbf16>, vector<16x128xf32> -> vector<16x128xf32>
    %157 = arith.addf %130, %156 : vector<16x128xf32>
    %158 = arith.addf %10, %157 : vector<16x128xf32>
    %c0_53 = arith.constant 0 : index
    %c0_54 = arith.constant 0 : index
    %c0_55 = arith.constant 0 : index
    %159 = vector.load %arg8[%c0_53, %c0_54, %c0_55] : memref<2x1x128xf32, #tpu.memory_space<vmem>>, vector<1x1x128xf32>
    %160 = vector.shape_cast %159 : vector<1x1x128xf32> to vector<1x128xf32>
    %161 = vector.broadcast %160 : vector<1x128xf32> to vector<16x128xf32>
    %162 = arith.addf %158, %161 : vector<16x128xf32>
    %c0_56 = arith.constant 0 : index
    %c0_57 = arith.constant 0 : index
    %c0_58 = arith.constant 0 : index
    %163 = vector.load %arg9[%c0_56, %c0_57, %c0_58] : memref<2x1x128xf32, #tpu.memory_space<vmem>>, vector<1x1x128xf32>
    %164 = vector.shape_cast %163 : vector<1x1x128xf32> to vector<1x128xf32>
    %c0_59 = arith.constant 0 : index
    %c0_60 = arith.constant 0 : index
    %c0_61 = arith.constant 0 : index
    %165 = vector.load %arg10[%c0_59, %c0_60, %c0_61] : memref<2x1x128xf32, #tpu.memory_space<vmem>>, vector<1x1x128xf32>
    %166 = vector.shape_cast %165 : vector<1x1x128xf32> to vector<1x128xf32>
    %cst_62 = arith.constant dense<0.000000e+00> : vector<16xf32>
    %167 = vector.multi_reduction <add>, %162, %cst_62 [1] : vector<16x128xf32> to vector<16xf32>
    %168 = vector.shape_cast %167 : vector<16xf32> to vector<16x1xf32>
    %cst_63 = arith.constant 1.280000e+02 : f32
    %169 = vector.broadcast %cst_63 : f32 to vector<16x1xf32>
    %170 = arith.divf %168, %169 : vector<16x1xf32>
    %171 = vector.broadcast %170 : vector<16x1xf32> to vector<16x128xf32>
    %172 = arith.subf %162, %171 : vector<16x128xf32>
    %173 = arith.mulf %172, %172 : vector<16x128xf32>
    %cst_64 = arith.constant dense<0.000000e+00> : vector<16xf32>
    %174 = vector.multi_reduction <add>, %173, %cst_64 [1] : vector<16x128xf32> to vector<16xf32>
    %175 = vector.shape_cast %174 : vector<16xf32> to vector<16x1xf32>
    %cst_65 = arith.constant 1.280000e+02 : f32
    %176 = vector.broadcast %cst_65 : f32 to vector<16x1xf32>
    %177 = arith.divf %175, %176 : vector<16x1xf32>
    %178 = vector.broadcast %170 : vector<16x1xf32> to vector<16x128xf32>
    %179 = arith.subf %162, %178 : vector<16x128xf32>
    %cst_66 = arith.constant 9.99999974E-6 : f32
    %180 = vector.broadcast %cst_66 : f32 to vector<16x1xf32>
    %181 = arith.addf %177, %180 : vector<16x1xf32>
    %182 = math.rsqrt %181 : vector<16x1xf32>
    %183 = vector.broadcast %182 : vector<16x1xf32> to vector<16x128xf32>
    %184 = arith.mulf %179, %183 : vector<16x128xf32>
    %185 = vector.broadcast %164 : vector<1x128xf32> to vector<16x128xf32>
    %186 = arith.mulf %184, %185 : vector<16x128xf32>
    %187 = vector.broadcast %166 : vector<1x128xf32> to vector<16x128xf32>
    %188 = arith.addf %186, %187 : vector<16x128xf32>
    %189 = arith.truncf %188 : vector<16x128xf32> to vector<16x128xbf16>
    %c0_67 = arith.constant 0 : index
    %c0_68 = arith.constant 0 : index
    %c0_69 = arith.constant 0 : index
    %190 = vector.load %arg11[%c0_67, %c0_68, %c0_69] : memref<2x128x512xbf16, #tpu.memory_space<vmem>>, vector<1x128x512xbf16>
    %191 = vector.shape_cast %190 : vector<1x128x512xbf16> to vector<128x512xbf16>
    %cst_70 = arith.constant dense<0.000000e+00> : vector<16x512xf32>
    %192 = tpu.matmul %189, %191, %cst_70 {dimension_numbers = #tpu.dot_dimension_numbers<[1], [0], [0], [1], [0, 0, 1, 1], [], []>} : vector<16x128xbf16>, vector<128x512xbf16>, vector<16x512xf32> -> vector<16x512xf32>
    %c0_71 = arith.constant 0 : index
    %c0_72 = arith.constant 0 : index
    %c0_73 = arith.constant 0 : index
    %193 = vector.load %arg12[%c0_71, %c0_72, %c0_73] : memref<2x1x512xf32, #tpu.memory_space<vmem>>, vector<1x1x512xf32>
    %194 = vector.shape_cast %193 : vector<1x1x512xf32> to vector<1x512xf32>
    %195 = vector.broadcast %194 : vector<1x512xf32> to vector<16x512xf32>
    %196 = arith.addf %192, %195 : vector<16x512xf32>
    %cst_74 = arith.constant 0.000000e+00 : f32
    %197 = vector.broadcast %cst_74 : f32 to vector<16x512xf32>
    %198 = arith.maximumf %196, %197 : vector<16x512xf32>
    %199 = arith.truncf %198 : vector<16x512xf32> to vector<16x512xbf16>
    %c0_75 = arith.constant 0 : index
    %c0_76 = arith.constant 0 : index
    %c0_77 = arith.constant 0 : index
    %200 = vector.load %arg13[%c0_75, %c0_76, %c0_77] : memref<2x512x128xbf16, #tpu.memory_space<vmem>>, vector<1x512x128xbf16>
    %201 = vector.shape_cast %200 : vector<1x512x128xbf16> to vector<512x128xbf16>
    %cst_78 = arith.constant dense<0.000000e+00> : vector<16x128xf32>
    %202 = tpu.matmul %199, %201, %cst_78 {dimension_numbers = #tpu.dot_dimension_numbers<[1], [0], [0], [1], [0, 0, 1, 1], [], []>} : vector<16x512xbf16>, vector<512x128xbf16>, vector<16x128xf32> -> vector<16x128xf32>
    %c0_79 = arith.constant 0 : index
    %c0_80 = arith.constant 0 : index
    %c0_81 = arith.constant 0 : index
    %203 = vector.load %arg14[%c0_79, %c0_80, %c0_81] : memref<2x1x128xf32, #tpu.memory_space<vmem>>, vector<1x1x128xf32>
    %204 = vector.shape_cast %203 : vector<1x1x128xf32> to vector<1x128xf32>
    %205 = vector.broadcast %204 : vector<1x128xf32> to vector<16x128xf32>
    %206 = arith.addf %202, %205 : vector<16x128xf32>
    %207 = arith.addf %162, %206 : vector<16x128xf32>
    %c1 = arith.constant 1 : index
    %c0_82 = arith.constant 0 : index
    %c0_83 = arith.constant 0 : index
    %208 = vector.load %arg4[%c1, %c0_82, %c0_83] : memref<2x1x128xf32, #tpu.memory_space<vmem>>, vector<1x1x128xf32>
    %209 = vector.shape_cast %208 : vector<1x1x128xf32> to vector<1x128xf32>
    %c1_84 = arith.constant 1 : index
    %c0_85 = arith.constant 0 : index
    %c0_86 = arith.constant 0 : index
    %210 = vector.load %arg5[%c1_84, %c0_85, %c0_86] : memref<2x1x128xf32, #tpu.memory_space<vmem>>, vector<1x1x128xf32>
    %211 = vector.shape_cast %210 : vector<1x1x128xf32> to vector<1x128xf32>
    %cst_87 = arith.constant dense<0.000000e+00> : vector<16xf32>
    %212 = vector.multi_reduction <add>, %207, %cst_87 [1] : vector<16x128xf32> to vector<16xf32>
    %213 = vector.shape_cast %212 : vector<16xf32> to vector<16x1xf32>
    %cst_88 = arith.constant 1.280000e+02 : f32
    %214 = vector.broadcast %cst_88 : f32 to vector<16x1xf32>
    %215 = arith.divf %213, %214 : vector<16x1xf32>
    %216 = vector.broadcast %215 : vector<16x1xf32> to vector<16x128xf32>
    %217 = arith.subf %207, %216 : vector<16x128xf32>
    %218 = arith.mulf %217, %217 : vector<16x128xf32>
    %cst_89 = arith.constant dense<0.000000e+00> : vector<16xf32>
    %219 = vector.multi_reduction <add>, %218, %cst_89 [1] : vector<16x128xf32> to vector<16xf32>
    %220 = vector.shape_cast %219 : vector<16xf32> to vector<16x1xf32>
    %cst_90 = arith.constant 1.280000e+02 : f32
    %221 = vector.broadcast %cst_90 : f32 to vector<16x1xf32>
    %222 = arith.divf %220, %221 : vector<16x1xf32>
    %223 = vector.broadcast %215 : vector<16x1xf32> to vector<16x128xf32>
    %224 = arith.subf %207, %223 : vector<16x128xf32>
    %cst_91 = arith.constant 9.99999974E-6 : f32
    %225 = vector.broadcast %cst_91 : f32 to vector<16x1xf32>
    %226 = arith.addf %222, %225 : vector<16x1xf32>
    %227 = math.rsqrt %226 : vector<16x1xf32>
    %228 = vector.broadcast %227 : vector<16x1xf32> to vector<16x128xf32>
    %229 = arith.mulf %224, %228 : vector<16x128xf32>
    %230 = vector.broadcast %209 : vector<1x128xf32> to vector<16x128xf32>
    %231 = arith.mulf %229, %230 : vector<16x128xf32>
    %232 = vector.broadcast %211 : vector<1x128xf32> to vector<16x128xf32>
    %233 = arith.addf %231, %232 : vector<16x128xf32>
    %234 = arith.truncf %233 : vector<16x128xf32> to vector<16x128xbf16>
    %c1_92 = arith.constant 1 : index
    %c0_93 = arith.constant 0 : index
    %c0_94 = arith.constant 0 : index
    %235 = vector.load %arg6[%c1_92, %c0_93, %c0_94] : memref<2x128x384xbf16, #tpu.memory_space<vmem>>, vector<1x128x384xbf16>
    %236 = vector.shape_cast %235 : vector<1x128x384xbf16> to vector<128x384xbf16>
    %cst_95 = arith.constant dense<0.000000e+00> : vector<16x384xf32>
    %237 = tpu.matmul %234, %236, %cst_95 {dimension_numbers = #tpu.dot_dimension_numbers<[1], [0], [0], [1], [0, 0, 1, 1], [], []>} : vector<16x128xbf16>, vector<128x384xbf16>, vector<16x384xf32> -> vector<16x384xf32>
    %238 = vector.extract_strided_slice %237 {offsets = [0, 0], sizes = [16, 128], strides = [1, 1]} : vector<16x384xf32> to vector<16x128xf32>
    %239 = vector.extract_strided_slice %237 {offsets = [0, 128], sizes = [16, 128], strides = [1, 1]} : vector<16x384xf32> to vector<16x128xf32>
    %240 = vector.extract_strided_slice %237 {offsets = [0, 256], sizes = [16, 128], strides = [1, 1]} : vector<16x384xf32> to vector<16x128xf32>
    %c1_96 = arith.constant 1 : index
    %c0_97 = arith.constant 0 : index
    %c0_98 = arith.constant 0 : index
    %241 = vector.load %arg7[%c1_96, %c0_97, %c0_98] : memref<2x128x128xbf16, #tpu.memory_space<vmem>>, vector<1x128x128xbf16>
    %242 = vector.shape_cast %241 : vector<1x128x128xbf16> to vector<128x128xbf16>
    %cst_99 = arith.constant 0.000000e+00 : f32
    %243 = vector.broadcast %cst_99 : f32 to vector<16x128xf32>
    %244 = vector.extract_strided_slice %238 {offsets = [0, 0], sizes = [16, 32], strides = [1, 1]} : vector<16x128xf32> to vector<16x32xf32>
    %245 = arith.truncf %244 : vector<16x32xf32> to vector<16x32xbf16>
    %246 = vector.extract_strided_slice %239 {offsets = [0, 0], sizes = [16, 32], strides = [1, 1]} : vector<16x128xf32> to vector<16x32xf32>
    %247 = arith.truncf %246 : vector<16x32xf32> to vector<16x32xbf16>
    %248 = vector.extract_strided_slice %240 {offsets = [0, 0], sizes = [16, 32], strides = [1, 1]} : vector<16x128xf32> to vector<16x32xf32>
    %249 = arith.truncf %248 : vector<16x32xf32> to vector<16x32xbf16>
    %cst_100 = arith.constant dense<0.000000e+00> : vector<16x16xf32>
    %250 = tpu.matmul %245, %247, %cst_100 {dimension_numbers = #tpu.dot_dimension_numbers<[1], [1], [0], [0], [0, 0, 1, 0], [], []>} : vector<16x32xbf16>, vector<16x32xbf16>, vector<16x16xf32> -> vector<16x16xf32>
    %cst_101 = arith.constant 0.176776692 : f32
    %251 = vector.broadcast %cst_101 : f32 to vector<16x16xf32>
    %252 = arith.mulf %250, %251 : vector<16x16xf32>
    %cst_102 = arith.constant 0xFF800000 : f32
    %253 = vector.broadcast %cst_102 : f32 to vector<16x16xf32>
    %254 = arith.select %13, %252, %253 : vector<16x16xi1>, vector<16x16xf32>
    %cst_103 = arith.constant dense<0xFF800000> : vector<16xf32>
    %255 = vector.multi_reduction <maximumf>, %254, %cst_103 [1] : vector<16x16xf32> to vector<16xf32>
    %256 = vector.shape_cast %255 : vector<16xf32> to vector<16x1xf32>
    %257 = vector.broadcast %256 : vector<16x1xf32> to vector<16x16xf32>
    %258 = arith.subf %254, %257 : vector<16x16xf32>
    %259 = math.exp %258 : vector<16x16xf32>
    %cst_104 = arith.constant dense<0.000000e+00> : vector<16xf32>
    %260 = vector.multi_reduction <add>, %259, %cst_104 [1] : vector<16x16xf32> to vector<16xf32>
    %261 = vector.shape_cast %260 : vector<16xf32> to vector<16x1xf32>
    %262 = tpu.reciprocal %261 {approx = true} : vector<16x1xf32> -> vector<16x1xf32>
    %263 = vector.broadcast %262 : vector<16x1xf32> to vector<16x16xf32>
    %264 = arith.mulf %259, %263 : vector<16x16xf32>
    %265 = arith.truncf %264 : vector<16x16xf32> to vector<16x16xbf16>
    %cst_105 = arith.constant dense<0.000000e+00> : vector<16x32xf32>
    %266 = tpu.matmul %265, %249, %cst_105 {dimension_numbers = #tpu.dot_dimension_numbers<[1], [0], [0], [1], [0, 0, 1, 1], [], []>} : vector<16x16xbf16>, vector<16x32xbf16>, vector<16x32xf32> -> vector<16x32xf32>
    %267 = arith.truncf %266 : vector<16x32xf32> to vector<16x32xbf16>
    %268 = vector.extract_strided_slice %242 {offsets = [0, 0], sizes = [32, 128], strides = [1, 1]} : vector<128x128xbf16> to vector<32x128xbf16>
    %cst_106 = arith.constant dense<0.000000e+00> : vector<16x128xf32>
    %269 = tpu.matmul %267, %268, %cst_106 {dimension_numbers = #tpu.dot_dimension_numbers<[1], [0], [0], [1], [0, 0, 1, 1], [], []>} : vector<16x32xbf16>, vector<32x128xbf16>, vector<16x128xf32> -> vector<16x128xf32>
    %270 = arith.addf %243, %269 : vector<16x128xf32>
    %271 = vector.extract_strided_slice %238 {offsets = [0, 32], sizes = [16, 32], strides = [1, 1]} : vector<16x128xf32> to vector<16x32xf32>
    %272 = arith.truncf %271 : vector<16x32xf32> to vector<16x32xbf16>
    %273 = vector.extract_strided_slice %239 {offsets = [0, 32], sizes = [16, 32], strides = [1, 1]} : vector<16x128xf32> to vector<16x32xf32>
    %274 = arith.truncf %273 : vector<16x32xf32> to vector<16x32xbf16>
    %275 = vector.extract_strided_slice %240 {offsets = [0, 32], sizes = [16, 32], strides = [1, 1]} : vector<16x128xf32> to vector<16x32xf32>
    %276 = arith.truncf %275 : vector<16x32xf32> to vector<16x32xbf16>
    %cst_107 = arith.constant dense<0.000000e+00> : vector<16x16xf32>
    %277 = tpu.matmul %272, %274, %cst_107 {dimension_numbers = #tpu.dot_dimension_numbers<[1], [1], [0], [0], [0, 0, 1, 0], [], []>} : vector<16x32xbf16>, vector<16x32xbf16>, vector<16x16xf32> -> vector<16x16xf32>
    %cst_108 = arith.constant 0.176776692 : f32
    %278 = vector.broadcast %cst_108 : f32 to vector<16x16xf32>
    %279 = arith.mulf %277, %278 : vector<16x16xf32>
    %cst_109 = arith.constant 0xFF800000 : f32
    %280 = vector.broadcast %cst_109 : f32 to vector<16x16xf32>
    %281 = arith.select %13, %279, %280 : vector<16x16xi1>, vector<16x16xf32>
    %cst_110 = arith.constant dense<0xFF800000> : vector<16xf32>
    %282 = vector.multi_reduction <maximumf>, %281, %cst_110 [1] : vector<16x16xf32> to vector<16xf32>
    %283 = vector.shape_cast %282 : vector<16xf32> to vector<16x1xf32>
    %284 = vector.broadcast %283 : vector<16x1xf32> to vector<16x16xf32>
    %285 = arith.subf %281, %284 : vector<16x16xf32>
    %286 = math.exp %285 : vector<16x16xf32>
    %cst_111 = arith.constant dense<0.000000e+00> : vector<16xf32>
    %287 = vector.multi_reduction <add>, %286, %cst_111 [1] : vector<16x16xf32> to vector<16xf32>
    %288 = vector.shape_cast %287 : vector<16xf32> to vector<16x1xf32>
    %289 = tpu.reciprocal %288 {approx = true} : vector<16x1xf32> -> vector<16x1xf32>
    %290 = vector.broadcast %289 : vector<16x1xf32> to vector<16x16xf32>
    %291 = arith.mulf %286, %290 : vector<16x16xf32>
    %292 = arith.truncf %291 : vector<16x16xf32> to vector<16x16xbf16>
    %cst_112 = arith.constant dense<0.000000e+00> : vector<16x32xf32>
    %293 = tpu.matmul %292, %276, %cst_112 {dimension_numbers = #tpu.dot_dimension_numbers<[1], [0], [0], [1], [0, 0, 1, 1], [], []>} : vector<16x16xbf16>, vector<16x32xbf16>, vector<16x32xf32> -> vector<16x32xf32>
    %294 = arith.truncf %293 : vector<16x32xf32> to vector<16x32xbf16>
    %295 = vector.extract_strided_slice %242 {offsets = [32, 0], sizes = [32, 128], strides = [1, 1]} : vector<128x128xbf16> to vector<32x128xbf16>
    %cst_113 = arith.constant dense<0.000000e+00> : vector<16x128xf32>
    %296 = tpu.matmul %294, %295, %cst_113 {dimension_numbers = #tpu.dot_dimension_numbers<[1], [0], [0], [1], [0, 0, 1, 1], [], []>} : vector<16x32xbf16>, vector<32x128xbf16>, vector<16x128xf32> -> vector<16x128xf32>
    %297 = arith.addf %270, %296 : vector<16x128xf32>
    %298 = vector.extract_strided_slice %238 {offsets = [0, 64], sizes = [16, 32], strides = [1, 1]} : vector<16x128xf32> to vector<16x32xf32>
    %299 = arith.truncf %298 : vector<16x32xf32> to vector<16x32xbf16>
    %300 = vector.extract_strided_slice %239 {offsets = [0, 64], sizes = [16, 32], strides = [1, 1]} : vector<16x128xf32> to vector<16x32xf32>
    %301 = arith.truncf %300 : vector<16x32xf32> to vector<16x32xbf16>
    %302 = vector.extract_strided_slice %240 {offsets = [0, 64], sizes = [16, 32], strides = [1, 1]} : vector<16x128xf32> to vector<16x32xf32>
    %303 = arith.truncf %302 : vector<16x32xf32> to vector<16x32xbf16>
    %cst_114 = arith.constant dense<0.000000e+00> : vector<16x16xf32>
    %304 = tpu.matmul %299, %301, %cst_114 {dimension_numbers = #tpu.dot_dimension_numbers<[1], [1], [0], [0], [0, 0, 1, 0], [], []>} : vector<16x32xbf16>, vector<16x32xbf16>, vector<16x16xf32> -> vector<16x16xf32>
    %cst_115 = arith.constant 0.176776692 : f32
    %305 = vector.broadcast %cst_115 : f32 to vector<16x16xf32>
    %306 = arith.mulf %304, %305 : vector<16x16xf32>
    %cst_116 = arith.constant 0xFF800000 : f32
    %307 = vector.broadcast %cst_116 : f32 to vector<16x16xf32>
    %308 = arith.select %13, %306, %307 : vector<16x16xi1>, vector<16x16xf32>
    %cst_117 = arith.constant dense<0xFF800000> : vector<16xf32>
    %309 = vector.multi_reduction <maximumf>, %308, %cst_117 [1] : vector<16x16xf32> to vector<16xf32>
    %310 = vector.shape_cast %309 : vector<16xf32> to vector<16x1xf32>
    %311 = vector.broadcast %310 : vector<16x1xf32> to vector<16x16xf32>
    %312 = arith.subf %308, %311 : vector<16x16xf32>
    %313 = math.exp %312 : vector<16x16xf32>
    %cst_118 = arith.constant dense<0.000000e+00> : vector<16xf32>
    %314 = vector.multi_reduction <add>, %313, %cst_118 [1] : vector<16x16xf32> to vector<16xf32>
    %315 = vector.shape_cast %314 : vector<16xf32> to vector<16x1xf32>
    %316 = tpu.reciprocal %315 {approx = true} : vector<16x1xf32> -> vector<16x1xf32>
    %317 = vector.broadcast %316 : vector<16x1xf32> to vector<16x16xf32>
    %318 = arith.mulf %313, %317 : vector<16x16xf32>
    %319 = arith.truncf %318 : vector<16x16xf32> to vector<16x16xbf16>
    %cst_119 = arith.constant dense<0.000000e+00> : vector<16x32xf32>
    %320 = tpu.matmul %319, %303, %cst_119 {dimension_numbers = #tpu.dot_dimension_numbers<[1], [0], [0], [1], [0, 0, 1, 1], [], []>} : vector<16x16xbf16>, vector<16x32xbf16>, vector<16x32xf32> -> vector<16x32xf32>
    %321 = arith.truncf %320 : vector<16x32xf32> to vector<16x32xbf16>
    %322 = vector.extract_strided_slice %242 {offsets = [64, 0], sizes = [32, 128], strides = [1, 1]} : vector<128x128xbf16> to vector<32x128xbf16>
    %cst_120 = arith.constant dense<0.000000e+00> : vector<16x128xf32>
    %323 = tpu.matmul %321, %322, %cst_120 {dimension_numbers = #tpu.dot_dimension_numbers<[1], [0], [0], [1], [0, 0, 1, 1], [], []>} : vector<16x32xbf16>, vector<32x128xbf16>, vector<16x128xf32> -> vector<16x128xf32>
    %324 = arith.addf %297, %323 : vector<16x128xf32>
    %325 = vector.extract_strided_slice %238 {offsets = [0, 96], sizes = [16, 32], strides = [1, 1]} : vector<16x128xf32> to vector<16x32xf32>
    %326 = arith.truncf %325 : vector<16x32xf32> to vector<16x32xbf16>
    %327 = vector.extract_strided_slice %239 {offsets = [0, 96], sizes = [16, 32], strides = [1, 1]} : vector<16x128xf32> to vector<16x32xf32>
    %328 = arith.truncf %327 : vector<16x32xf32> to vector<16x32xbf16>
    %329 = vector.extract_strided_slice %240 {offsets = [0, 96], sizes = [16, 32], strides = [1, 1]} : vector<16x128xf32> to vector<16x32xf32>
    %330 = arith.truncf %329 : vector<16x32xf32> to vector<16x32xbf16>
    %cst_121 = arith.constant dense<0.000000e+00> : vector<16x16xf32>
    %331 = tpu.matmul %326, %328, %cst_121 {dimension_numbers = #tpu.dot_dimension_numbers<[1], [1], [0], [0], [0, 0, 1, 0], [], []>} : vector<16x32xbf16>, vector<16x32xbf16>, vector<16x16xf32> -> vector<16x16xf32>
    %cst_122 = arith.constant 0.176776692 : f32
    %332 = vector.broadcast %cst_122 : f32 to vector<16x16xf32>
    %333 = arith.mulf %331, %332 : vector<16x16xf32>
    %cst_123 = arith.constant 0xFF800000 : f32
    %334 = vector.broadcast %cst_123 : f32 to vector<16x16xf32>
    %335 = arith.select %13, %333, %334 : vector<16x16xi1>, vector<16x16xf32>
    %cst_124 = arith.constant dense<0xFF800000> : vector<16xf32>
    %336 = vector.multi_reduction <maximumf>, %335, %cst_124 [1] : vector<16x16xf32> to vector<16xf32>
    %337 = vector.shape_cast %336 : vector<16xf32> to vector<16x1xf32>
    %338 = vector.broadcast %337 : vector<16x1xf32> to vector<16x16xf32>
    %339 = arith.subf %335, %338 : vector<16x16xf32>
    %340 = math.exp %339 : vector<16x16xf32>
    %cst_125 = arith.constant dense<0.000000e+00> : vector<16xf32>
    %341 = vector.multi_reduction <add>, %340, %cst_125 [1] : vector<16x16xf32> to vector<16xf32>
    %342 = vector.shape_cast %341 : vector<16xf32> to vector<16x1xf32>
    %343 = tpu.reciprocal %342 {approx = true} : vector<16x1xf32> -> vector<16x1xf32>
    %344 = vector.broadcast %343 : vector<16x1xf32> to vector<16x16xf32>
    %345 = arith.mulf %340, %344 : vector<16x16xf32>
    %346 = arith.truncf %345 : vector<16x16xf32> to vector<16x16xbf16>
    %cst_126 = arith.constant dense<0.000000e+00> : vector<16x32xf32>
    %347 = tpu.matmul %346, %330, %cst_126 {dimension_numbers = #tpu.dot_dimension_numbers<[1], [0], [0], [1], [0, 0, 1, 1], [], []>} : vector<16x16xbf16>, vector<16x32xbf16>, vector<16x32xf32> -> vector<16x32xf32>
    %348 = arith.truncf %347 : vector<16x32xf32> to vector<16x32xbf16>
    %349 = vector.extract_strided_slice %242 {offsets = [96, 0], sizes = [32, 128], strides = [1, 1]} : vector<128x128xbf16> to vector<32x128xbf16>
    %cst_127 = arith.constant dense<0.000000e+00> : vector<16x128xf32>
    %350 = tpu.matmul %348, %349, %cst_127 {dimension_numbers = #tpu.dot_dimension_numbers<[1], [0], [0], [1], [0, 0, 1, 1], [], []>} : vector<16x32xbf16>, vector<32x128xbf16>, vector<16x128xf32> -> vector<16x128xf32>
    %351 = arith.addf %324, %350 : vector<16x128xf32>
    %352 = arith.addf %207, %351 : vector<16x128xf32>
    %c1_128 = arith.constant 1 : index
    %c0_129 = arith.constant 0 : index
    %c0_130 = arith.constant 0 : index
    %353 = vector.load %arg8[%c1_128, %c0_129, %c0_130] : memref<2x1x128xf32, #tpu.memory_space<vmem>>, vector<1x1x128xf32>
    %354 = vector.shape_cast %353 : vector<1x1x128xf32> to vector<1x128xf32>
    %355 = vector.broadcast %354 : vector<1x128xf32> to vector<16x128xf32>
    %356 = arith.addf %352, %355 : vector<16x128xf32>
    %c1_131 = arith.constant 1 : index
    %c0_132 = arith.constant 0 : index
    %c0_133 = arith.constant 0 : index
    %357 = vector.load %arg9[%c1_131, %c0_132, %c0_133] : memref<2x1x128xf32, #tpu.memory_space<vmem>>, vector<1x1x128xf32>
    %358 = vector.shape_cast %357 : vector<1x1x128xf32> to vector<1x128xf32>
    %c1_134 = arith.constant 1 : index
    %c0_135 = arith.constant 0 : index
    %c0_136 = arith.constant 0 : index
    %359 = vector.load %arg10[%c1_134, %c0_135, %c0_136] : memref<2x1x128xf32, #tpu.memory_space<vmem>>, vector<1x1x128xf32>
    %360 = vector.shape_cast %359 : vector<1x1x128xf32> to vector<1x128xf32>
    %cst_137 = arith.constant dense<0.000000e+00> : vector<16xf32>
    %361 = vector.multi_reduction <add>, %356, %cst_137 [1] : vector<16x128xf32> to vector<16xf32>
    %362 = vector.shape_cast %361 : vector<16xf32> to vector<16x1xf32>
    %cst_138 = arith.constant 1.280000e+02 : f32
    %363 = vector.broadcast %cst_138 : f32 to vector<16x1xf32>
    %364 = arith.divf %362, %363 : vector<16x1xf32>
    %365 = vector.broadcast %364 : vector<16x1xf32> to vector<16x128xf32>
    %366 = arith.subf %356, %365 : vector<16x128xf32>
    %367 = arith.mulf %366, %366 : vector<16x128xf32>
    %cst_139 = arith.constant dense<0.000000e+00> : vector<16xf32>
    %368 = vector.multi_reduction <add>, %367, %cst_139 [1] : vector<16x128xf32> to vector<16xf32>
    %369 = vector.shape_cast %368 : vector<16xf32> to vector<16x1xf32>
    %cst_140 = arith.constant 1.280000e+02 : f32
    %370 = vector.broadcast %cst_140 : f32 to vector<16x1xf32>
    %371 = arith.divf %369, %370 : vector<16x1xf32>
    %372 = vector.broadcast %364 : vector<16x1xf32> to vector<16x128xf32>
    %373 = arith.subf %356, %372 : vector<16x128xf32>
    %cst_141 = arith.constant 9.99999974E-6 : f32
    %374 = vector.broadcast %cst_141 : f32 to vector<16x1xf32>
    %375 = arith.addf %371, %374 : vector<16x1xf32>
    %376 = math.rsqrt %375 : vector<16x1xf32>
    %377 = vector.broadcast %376 : vector<16x1xf32> to vector<16x128xf32>
    %378 = arith.mulf %373, %377 : vector<16x128xf32>
    %379 = vector.broadcast %358 : vector<1x128xf32> to vector<16x128xf32>
    %380 = arith.mulf %378, %379 : vector<16x128xf32>
    %381 = vector.broadcast %360 : vector<1x128xf32> to vector<16x128xf32>
    %382 = arith.addf %380, %381 : vector<16x128xf32>
    %383 = arith.truncf %382 : vector<16x128xf32> to vector<16x128xbf16>
    %c1_142 = arith.constant 1 : index
    %c0_143 = arith.constant 0 : index
    %c0_144 = arith.constant 0 : index
    %384 = vector.load %arg11[%c1_142, %c0_143, %c0_144] : memref<2x128x512xbf16, #tpu.memory_space<vmem>>, vector<1x128x512xbf16>
    %385 = vector.shape_cast %384 : vector<1x128x512xbf16> to vector<128x512xbf16>
    %cst_145 = arith.constant dense<0.000000e+00> : vector<16x512xf32>
    %386 = tpu.matmul %383, %385, %cst_145 {dimension_numbers = #tpu.dot_dimension_numbers<[1], [0], [0], [1], [0, 0, 1, 1], [], []>} : vector<16x128xbf16>, vector<128x512xbf16>, vector<16x512xf32> -> vector<16x512xf32>
    %c1_146 = arith.constant 1 : index
    %c0_147 = arith.constant 0 : index
    %c0_148 = arith.constant 0 : index
    %387 = vector.load %arg12[%c1_146, %c0_147, %c0_148] : memref<2x1x512xf32, #tpu.memory_space<vmem>>, vector<1x1x512xf32>
    %388 = vector.shape_cast %387 : vector<1x1x512xf32> to vector<1x512xf32>
    %389 = vector.broadcast %388 : vector<1x512xf32> to vector<16x512xf32>
    %390 = arith.addf %386, %389 : vector<16x512xf32>
    %cst_149 = arith.constant 0.000000e+00 : f32
    %391 = vector.broadcast %cst_149 : f32 to vector<16x512xf32>
    %392 = arith.maximumf %390, %391 : vector<16x512xf32>
    %393 = arith.truncf %392 : vector<16x512xf32> to vector<16x512xbf16>
    %c1_150 = arith.constant 1 : index
    %c0_151 = arith.constant 0 : index
    %c0_152 = arith.constant 0 : index
    %394 = vector.load %arg13[%c1_150, %c0_151, %c0_152] : memref<2x512x128xbf16, #tpu.memory_space<vmem>>, vector<1x512x128xbf16>
    %395 = vector.shape_cast %394 : vector<1x512x128xbf16> to vector<512x128xbf16>
    %cst_153 = arith.constant dense<0.000000e+00> : vector<16x128xf32>
    %396 = tpu.matmul %393, %395, %cst_153 {dimension_numbers = #tpu.dot_dimension_numbers<[1], [0], [0], [1], [0, 0, 1, 1], [], []>} : vector<16x512xbf16>, vector<512x128xbf16>, vector<16x128xf32> -> vector<16x128xf32>
    %c1_154 = arith.constant 1 : index
    %c0_155 = arith.constant 0 : index
    %c0_156 = arith.constant 0 : index
    %397 = vector.load %arg14[%c1_154, %c0_155, %c0_156] : memref<2x1x128xf32, #tpu.memory_space<vmem>>, vector<1x1x128xf32>
    %398 = vector.shape_cast %397 : vector<1x1x128xf32> to vector<1x128xf32>
    %399 = vector.broadcast %398 : vector<1x128xf32> to vector<16x128xf32>
    %400 = arith.addf %396, %399 : vector<16x128xf32>
    %401 = arith.addf %356, %400 : vector<16x128xf32>
    %c0_157 = arith.constant 0 : index
    %c0_158 = arith.constant 0 : index
    %402 = vector.load %arg15[%c0_157, %c0_158] : memref<1x128xf32, #tpu.memory_space<vmem>>, vector<1x128xf32>
    %c0_159 = arith.constant 0 : index
    %c0_160 = arith.constant 0 : index
    %403 = vector.load %arg16[%c0_159, %c0_160] : memref<1x128xf32, #tpu.memory_space<vmem>>, vector<1x128xf32>
    %cst_161 = arith.constant dense<0.000000e+00> : vector<16xf32>
    %404 = vector.multi_reduction <add>, %401, %cst_161 [1] : vector<16x128xf32> to vector<16xf32>
    %405 = vector.shape_cast %404 : vector<16xf32> to vector<16x1xf32>
    %cst_162 = arith.constant 1.280000e+02 : f32
    %406 = vector.broadcast %cst_162 : f32 to vector<16x1xf32>
    %407 = arith.divf %405, %406 : vector<16x1xf32>
    %408 = vector.broadcast %407 : vector<16x1xf32> to vector<16x128xf32>
    %409 = arith.subf %401, %408 : vector<16x128xf32>
    %410 = arith.mulf %409, %409 : vector<16x128xf32>
    %cst_163 = arith.constant dense<0.000000e+00> : vector<16xf32>
    %411 = vector.multi_reduction <add>, %410, %cst_163 [1] : vector<16x128xf32> to vector<16xf32>
    %412 = vector.shape_cast %411 : vector<16xf32> to vector<16x1xf32>
    %cst_164 = arith.constant 1.280000e+02 : f32
    %413 = vector.broadcast %cst_164 : f32 to vector<16x1xf32>
    %414 = arith.divf %412, %413 : vector<16x1xf32>
    %415 = vector.broadcast %407 : vector<16x1xf32> to vector<16x128xf32>
    %416 = arith.subf %401, %415 : vector<16x128xf32>
    %cst_165 = arith.constant 9.99999974E-6 : f32
    %417 = vector.broadcast %cst_165 : f32 to vector<16x1xf32>
    %418 = arith.addf %414, %417 : vector<16x1xf32>
    %419 = math.rsqrt %418 : vector<16x1xf32>
    %420 = vector.broadcast %419 : vector<16x1xf32> to vector<16x128xf32>
    %421 = arith.mulf %416, %420 : vector<16x128xf32>
    %422 = vector.broadcast %402 : vector<1x128xf32> to vector<16x128xf32>
    %423 = arith.mulf %421, %422 : vector<16x128xf32>
    %424 = vector.broadcast %403 : vector<1x128xf32> to vector<16x128xf32>
    %425 = arith.addf %423, %424 : vector<16x128xf32>
    %426 = arith.truncf %425 : vector<16x128xf32> to vector<16x128xbf16>
    %c0_166 = arith.constant 0 : index
    %c0_167 = arith.constant 0 : index
    %427 = vector.load %arg17[%c0_166, %c0_167] : memref<128x128xbf16, #tpu.memory_space<vmem>>, vector<128x128xbf16>
    %cst_168 = arith.constant dense<0.000000e+00> : vector<16x128xf32>
    %428 = tpu.matmul %426, %427, %cst_168 {dimension_numbers = #tpu.dot_dimension_numbers<[1], [0], [0], [1], [0, 0, 1, 1], [], []>} : vector<16x128xbf16>, vector<128x128xbf16>, vector<16x128xf32> -> vector<16x128xf32>
    %c0_169 = arith.constant 0 : index
    %c0_170 = arith.constant 0 : index
    %429 = vector.load %arg18[%c0_169, %c0_170] : memref<1x128xf32, #tpu.memory_space<vmem>>, vector<1x128xf32>
    %430 = vector.broadcast %429 : vector<1x128xf32> to vector<16x128xf32>
    %431 = arith.addf %428, %430 : vector<16x128xf32>
    %c0_171 = arith.constant 0 : index
    %c0_172 = arith.constant 0 : index
    %c0_173 = arith.constant 0 : index
    %432 = vector.load %arg19[%c0_171, %c0_172, %c0_173] : memref<1x16x128xf32, #tpu.memory_space<vmem>>, vector<1x16x128xf32>
    %433 = vector.shape_cast %432 : vector<1x16x128xf32> to vector<16x128xf32>
    %434 = vector.shape_cast %431 : vector<16x128xf32> to vector<1x16x128xf32>
    tpu.vector_store %arg19[%c0_171, %c0_172, %c0_173], %434 {strides = array<i32>} : memref<1x16x128xf32, #tpu.memory_space<vmem>>, vector<1x16x128xf32>,
    return
  }
  func.func @transform_0(%arg0: i32) -> (i32, i32, i32) {
    %c0_i32 = arith.constant 0 : i32
    %c0_i32_0 = arith.constant 0 : i32
    %c0_i32_1 = arith.constant 0 : i32
    return %arg0, %c0_i32, %c0_i32_0 : i32, i32, i32
  }
  func.func @transform_1(%arg0: i32) -> (i32, i32) {
    %c0_i32 = arith.constant 0 : i32
    %c0_i32_0 = arith.constant 0 : i32
    %c0_i32_1 = arith.constant 0 : i32
    return %c0_i32, %c0_i32_0 : i32, i32
  }
  func.func @transform_2(%arg0: i32) -> (i32, i32) {
    %c0_i32 = arith.constant 0 : i32
    %c0_i32_0 = arith.constant 0 : i32
    %c0_i32_1 = arith.constant 0 : i32
    return %c0_i32, %c0_i32_0 : i32, i32
  }
  func.func @transform_3(%arg0: i32) -> (i32, i32, i32) {
    %c0_i32 = arith.constant 0 : i32
    %c0_i32_0 = arith.constant 0 : i32
    %c0_i32_1 = arith.constant 0 : i32
    %c0_i32_2 = arith.constant 0 : i32
    return %c0_i32, %c0_i32_0, %c0_i32_1 : i32, i32, i32
  }
  func.func @transform_4(%arg0: i32) -> (i32, i32, i32) {
    %c0_i32 = arith.constant 0 : i32
    %c0_i32_0 = arith.constant 0 : i32
    %c0_i32_1 = arith.constant 0 : i32
    %c0_i32_2 = arith.constant 0 : i32
    return %c0_i32, %c0_i32_0, %c0_i32_1 : i32, i32, i32
  }
  func.func @transform_5(%arg0: i32) -> (i32, i32, i32) {
    %c0_i32 = arith.constant 0 : i32
    %c0_i32_0 = arith.constant 0 : i32
    %c0_i32_1 = arith.constant 0 : i32
    %c0_i32_2 = arith.constant 0 : i32
    return %c0_i32, %c0_i32_0, %c0_i32_1 : i32, i32, i32
  }
  func.func @transform_6(%arg0: i32) -> (i32, i32, i32) {
    %c0_i32 = arith.constant 0 : i32
    %c0_i32_0 = arith.constant 0 : i32
    %c0_i32_1 = arith.constant 0 : i32
    %c0_i32_2 = arith.constant 0 : i32
    return %c0_i32, %c0_i32_0, %c0_i32_1 : i32, i32, i32
  }
  func.func @transform_7(%arg0: i32) -> (i32, i32, i32) {
    %c0_i32 = arith.constant 0 : i32
    %c0_i32_0 = arith.constant 0 : i32
    %c0_i32_1 = arith.constant 0 : i32
    %c0_i32_2 = arith.constant 0 : i32
    return %c0_i32, %c0_i32_0, %c0_i32_1 : i32, i32, i32
  }
  func.func @transform_8(%arg0: i32) -> (i32, i32, i32) {
    %c0_i32 = arith.constant 0 : i32
    %c0_i32_0 = arith.constant 0 : i32
    %c0_i32_1 = arith.constant 0 : i32
    %c0_i32_2 = arith.constant 0 : i32
    return %c0_i32, %c0_i32_0, %c0_i32_1 : i32, i32, i32
  }
  func.func @transform_9(%arg0: i32) -> (i32, i32, i32) {
    %c0_i32 = arith.constant 0 : i32
    %c0_i32_0 = arith.constant 0 : i32
    %c0_i32_1 = arith.constant 0 : i32
    %c0_i32_2 = arith.constant 0 : i32
    return %c0_i32, %c0_i32_0, %c0_i32_1 : i32, i32, i32
  }
  func.func @transform_10(%arg0: i32) -> (i32, i32, i32) {
    %c0_i32 = arith.constant 0 : i32
    %c0_i32_0 = arith.constant 0 : i32
    %c0_i32_1 = arith.constant 0 : i32
    %c0_i32_2 = arith.constant 0 : i32
    return %c0_i32, %c0_i32_0, %c0_i32_1 : i32, i32, i32
  }
  func.func @transform_11(%arg0: i32) -> (i32, i32, i32) {
    %c0_i32 = arith.constant 0 : i32
    %c0_i32_0 = arith.constant 0 : i32
    %c0_i32_1 = arith.constant 0 : i32
    %c0_i32_2 = arith.constant 0 : i32
    return %c0_i32, %c0_i32_0, %c0_i32_1 : i32, i32, i32
  }
  func.func @transform_12(%arg0: i32) -> (i32, i32, i32) {
    %c0_i32 = arith.constant 0 : i32
    %c0_i32_0 = arith.constant 0 : i32
    %c0_i32_1 = arith.constant 0 : i32
    %c0_i32_2 = arith.constant 0 : i32
    return %c0_i32, %c0_i32_0, %c0_i32_1 : i32, i32, i32
  }
  func.func @transform_13(%arg0: i32) -> (i32, i32, i32) {
    %c0_i32 = arith.constant 0 : i32
    %c0_i32_0 = arith.constant 0 : i32
    %c0_i32_1 = arith.constant 0 : i32
    %c0_i32_2 = arith.constant 0 : i32
    return %c0_i32, %c0_i32_0, %c0_i32_1 : i32, i32, i32
  }
  func.func @transform_14(%arg0: i32) -> (i32, i32) {
    %c0_i32 = arith.constant 0 : i32
    %c0_i32_0 = arith.constant 0 : i32
    %c0_i32_1 = arith.constant 0 : i32
    return %c0_i32, %c0_i32_0 : i32, i32
  }
  func.func @transform_15(%arg0: i32) -> (i32, i32) {
    %c0_i32 = arith.constant 0 : i32
    %c0_i32_0 = arith.constant 0 : i32
    %c0_i32_1 = arith.constant 0 : i32
    return %c0_i32, %c0_i32_0 : i32, i32
  }
  func.func @transform_16(%arg0: i32) -> (i32, i32) {
    %c0_i32 = arith.constant 0 : i32
    %c0_i32_0 = arith.constant 0 : i32
    %c0_i32_1 = arith.constant 0 : i32
    return %c0_i32, %c0_i32_0 : i32, i32
  }
  func.func @transform_17(%arg0: i32) -> (i32, i32) {
    %c0_i32 = arith.constant 0 : i32
    %c0_i32_0 = arith.constant 0 : i32
    %c0_i32_1 = arith.constant 0 : i32
    return %c0_i32, %c0_i32_0 : i32, i32
  }
  func.func @transform_18(%arg0: i32) -> (i32, i32, i32) {
    %c0_i32 = arith.constant 0 : i32
    %c0_i32_0 = arith.constant 0 : i32
    %c0_i32_1 = arith.constant 0 : i32
    return %arg0, %c0_i32, %c0_i32_0 : i32, i32, i32
  }
}

</mosaic_0001>

<bundles_post_ra>
// kernel: gpt_forward.1
= control target key start
LH: loop header
LB: loop body
LE: loop exit
PB: predicated region body
PF: predicated region fallthrough
CT: control target
= control target key end

     0   :  { %s6752_s0 = inlined_call_operand.vmem [shape: s32[2,16,1], index: 0, kind: input, shape index: {}]   ;;  %s6753_s1 = inlined_call_operand.hbm [shape: f32[128,128], index: 1, kind: input, shape index: {}]   ;;  %s6754_s2 = inlined_call_operand.vmem [shape: f32[16,128], index: 2, kind: input, shape index: {}]   ;;  %s6755_s3 = inlined_call_operand.vmem [shape: f32[2,1,128], index: 3, kind: input, shape index: {}]   ;;  %s6756_s4 = inlined_call_operand.vmem [shape: f32[2,1,128], index: 4, kind: input, shape index: {}]   ;;  %s6757_s5 = inlined_call_operand.hbm [shape: bf16[2,128,384], index: 5, kind: input, shape index: {}]   ;;  %s6758_s6 = inlined_call_operand.hbm [shape: bf16[2,128,128], index: 6, kind: input, shape index: {}]   ;;  %s6759_s7 = inlined_call_operand.vmem [shape: f32[2,1,128], index: 7, kind: input, shape index: {}]   ;;  %s6760_s8 = inlined_call_operand.vmem [shape: f32[2,1,128], index: 8, kind: input, shape index: {}]   ;;  %s6761_s9 = inlined_call_operand.vmem [shape: f32[2,1,128], index: 9, kind: input, shape index: {}]   ;;  %s6762_s10 = inlined_call_operand.hbm [shape: bf16[2,128,512], index: 10, kind: input, shape index: {}]   ;;  %s6763_s11 = inlined_call_operand.vmem [shape: f32[2,1,512], index: 11, kind: input, shape index: {}]   ;;  %s6764_s12 = inlined_call_operand.hbm [shape: bf16[2,512,128], index: 12, kind: input, shape index: {}]   ;;  %s6765_s13 = inlined_call_operand.vmem [shape: f32[2,1,128], index: 13, kind: input, shape index: {}]   ;;  %s6766_s14 = inlined_call_operand.vmem [shape: f32[1,128], index: 14, kind: input, shape index: {}]   ;;  %s6767_s15 = inlined_call_operand.vmem [shape: f32[1,128], index: 15, kind: input, shape index: {}]   ;;  %s6768_s16 = inlined_call_operand.hbm [shape: bf16[128,128], index: 16, kind: input, shape index: {}]   ;;  %s6769_s17 = inlined_call_operand.vmem [shape: f32[1,128], index: 17, kind: input, shape index: {}]   ;;  %s6770_s18 = inlined_call_operand.hbm [shape: f32[2,16,128], index: 18, kind: output, shape index: {}]  }
   0x1   :  { %6783 = sst [smem:[#allocation26_spill]] %s6752_s0 }
   0x2   :  { %6784 = sst [smem:[#allocation27_spill]] %s6753_s1 }
   0x3   :  { %6785 = sst [smem:[#allocation28_spill]] %s6754_s2 }
   0x4   :  { %6786 = sst [smem:[#allocation29_spill]] %s6755_s3 }
   0x5   :  { %6787 = sst [smem:[#allocation30_spill]] %s6770_s18 }
   0x6   :  { %23 = vsyncpa [#allocation3], 0 }
   0x7   :  { %24 = vsyncpa [#allocation6], 0 }
   0x8   :  { %25 = vsyncpa [#allocation9], 0 }
   0x9   :  { %26 = vsyncpa [#allocation12], 0 }
   0xa   :  { %27 = vsyncpa [#allocation4], 0 }
   0xb   :  { %29 = vsyncpa [#allocation4 + $0x1], 0  ;;  %s6091_s27 = smov 0   ;;  %s6093_s28 = smov 0  }
   0xc   :  { %s6095_s29 = smov 0   ;;  %s6097_s30 = smov 0  }
   0xd LB: > { %6788 = sst [smem:[#allocation19_spill]] %s5958_s27  ;;  %s6112_s0 = sadd.s32 4294967295, %s5970_s30   ;;  %s5970_s30 = sphi %s6097_s30, %s6824_s30   ;;  %s5966_s29 = sphi %s6095_s29, %s6826_s29   ;;  %s5962_s28 = sphi %s6093_s28, %s6828_s28   ;;  %s5958_s27 = sphi %s6091_s27, %s6827_s27  }
   0xe   : > { %6789 = sst [smem:[#allocation20_spill]] %s5966_s29  ;;  %s4568_s19 = sadd.s32 4294967294, %s5970_s30  }
   0xf   : > { %6790 = sst [smem:[#allocation21_spill]] %s5970_s30  ;;  %s6116_s1 = sadd.s32 1, %s5970_s30  }
  0x10   : > { %6791 = sst [smem:[#allocation22_spill]] %s6116_s1  ;;  %s425_s20 = sadd.s32 1, %s5966_s29 }
  0x11   : > { %s422_s21 = ssub.s32 %s5970_s30, %s6116_s1  ;;  %p435_p0 = scmp.ne.s32.totalorder %s5966_s29, %s5962_s28 }
  0x12   : > { %p423_p1 = scmp.eq.s32.totalorder %s422_s21, 0  ;;  %p436_p2 = scmp.eq.s32.totalorder %s6112_s0, 1 }
  0x13   : > { %p441_p3 = scmp.ne.s32.totalorder %s5962_s28, %s5958_s27  ;;  %p442_p4 = scmp.eq.s32.totalorder %s4568_s19, 1 }
  0x14   : > { %s6127_s22 = scalar_select %p423_p1, %s5966_s29, %s425_s20  }
  0x15   : > { %p6129_p5 = por %p436_p2, %p435_p0  ;;  %p6133_p6 = por %p442_p4, %p441_p3 }
  0x16   : > { %6792 = sst [smem:[#allocation23_spill]] %s6127_s22  ;;  %p4569_p7 = scmp.ge.s32.totalorder %s5970_s30, 1 }
  0x17   : > { %s6793_s2 = scalar_select %p6129_p5, 1, 0 }
  0x18   : > { %s6795_s23 = scalar_select %p6133_p6, 1, 0 }
  0x19   : > { %6794 = sst [smem:[#allocation24_spill]] %s6793_s2  ;;  %p449_p8 = scmp.lt.s32.totalorder %s5970_s30, 3 }
  0x1a   : > { %6796 = sst [smem:[#allocation25_spill]] %s6795_s23  ;;  %p6777_p9 = scmp.eq.s32.totalorder %s6112_s0, 0 }
  0x1b   : > { %p6140_p10 = pnand %p4569_p7, %p449_p8  ;;  %s5972_s25 = smov [#allocation5]  }
  0x1c   : > { %s483_s26 = sshll.u32 %s5972_s25, 4  ;;  %s5973_s20 = smov [#allocation8]   ;;  %s484_s26 = int_to_ptr.vmem [resolvable:$true] %s483_s26 }
  0x1d   : > { %p5314_p11 = pneg %p6140_p10  ;;  %s518_s21 = sshll.u32 %s5973_s20, 4  ;;  %s519_s21 = int_to_ptr.vmem [resolvable:$true] %s518_s21 }
  0x1e   : > { %s5749_s29 = scalar_lea.vmem %s484_s26, 6144  ;;  %p5757_p3 = scmp.lt.s32.totalorder %s484_s26, %s484_s26 }
  0x1f   : > { %p6148_p12 = pnand %p6777_p9, %p5314_p11  ;;  %p5750_p0 = scmp.ne.s32.totalorder %s484_s26, %s5749_s29 }
  0x20   : > { %p5758_p4 = scmp.lt.s32.totalorder %s5749_s29, %s5749_s29 }
  0x21   : > { %p6154_p13 = pneg %p6148_p12 }
  0x22   : > { %p5759_p7 = por %p5758_p4, %p5757_p3 }
  0x23   : > { %p5752_p1 = pnand %p5750_p0, %p6154_p13 }
  0x25   : > { %p5753_p2 = pneg %p5752_p1 }
  0x27   : > { %p5760_p8 = pnand %p5759_p7, %p5753_p2 }
  0x29   : > { %5763 = shalt.err (!%p5760_p8)
}
  0x2a   : > { %s5974_s25 = smov 192   ;;  %s5975_s20 = smov 12  }
  0x2b   : > { %5320 = dma.hbm_to_vmem [thread:$0]  (!%p6148_p12), %s6757_s5, 6144, %s484_s26, [#allocation6], %s5974_s25, %s5974_s25, %s5975_s20  }
  0x2c   : > { %s5775_s27 = scalar_lea.vmem %s519_s21, 8192  ;;  %p5783_p1 = scmp.lt.s32.totalorder %s519_s21, %s519_s21 }
  0x2d   : > { %p5776_p11 = scmp.ne.s32.totalorder %s519_s21, %s5775_s27  ;;  %p5784_p6 = scmp.lt.s32.totalorder %s5775_s27, %s5775_s27 }
  0x2f   : > { %p5778_p9 = pnand %p5776_p11, %p6154_p13  ;;  %p5785_p5 = por %p5784_p6, %p5783_p1 }
  0x31   : > { %p5779_p0 = pneg %p5778_p9 }
  0x33   : > { %p5786_p3 = pnand %p5785_p5, %p5779_p0 }
  0x35   : > { %5789 = shalt.err (!%p5786_p3)
}
  0x36   : > { %s5976_s29 = smov 256   ;;  %s5977_s30 = smov 16  }
  0x37   : > { %5326 = dma.hbm_to_vmem [thread:$0]  (!%p6148_p12), %s6762_s10, 8192, %s519_s21, [#allocation9], %s5976_s29, %s5976_s29, %s5977_s30  }
  0x38   : > { %s5978_s1 = smov [#allocation2]  }
  0x39   : > { %s461_s23 = sshll.u32 %s5978_s1, 4  ;;  %s462_s23 = int_to_ptr.vmem [resolvable:$true] %s461_s23 }
  0x3a   : > { %s5801_s26 = scalar_lea.vmem %s462_s23, 2048  ;;  %p5809_p6 = scmp.lt.s32.totalorder %s462_s23, %s462_s23 }
  0x3b   : > { %p5802_p2 = scmp.ne.s32.totalorder %s462_s23, %s5801_s26  ;;  %p5810_p5 = scmp.lt.s32.totalorder %s5801_s26, %s5801_s26 }
  0x3d   : > { %p5804_p9 = pnand %p5802_p2, %p6154_p13  ;;  %p5811_p7 = por %p5810_p5, %p5809_p6 }
  0x3f   : > { %p5805_p4 = pneg %p5804_p9 }
  0x41   : > { %p5812_p8 = pnand %p5811_p7, %p5805_p4 }
  0x43   : > { %5815 = shalt.err (!%p5812_p8)
}
  0x44   : > { %s5979_s27 = smov 128   ;;  %s5980_s25 = smov 8  }
  0x45   : > { %s6800_s2 = sld [smem:[#allocation27_spill]]  ;;  %s5981_s21 = smov [#allocation7]  }
  0x46   : > { %s496_s20 = sshll.u32 %s5981_s21, 4  ;;  %s497_s20 = int_to_ptr.vmem [resolvable:$true] %s496_s20 }
  0x47   : > { %s5827_s29 = scalar_lea.vmem %s497_s20, 2048  ;;  %p5835_p3 = scmp.lt.s32.totalorder %s497_s20, %s497_s20 }
  0x48   : > { %p5828_p11 = scmp.ne.s32.totalorder %s497_s20, %s5827_s29  ;;  %p5836_p2 = scmp.lt.s32.totalorder %s5827_s29, %s5827_s29 }
  0x4a   : > { %p5830_p0 = pnand %p5828_p11, %p6154_p13  ;;  %p5837_p9 = por %p5836_p2, %p5835_p3 }
  0x4b   : > { %5317 = dma.hbm_to_vmem [thread:$0]  (!%p6148_p12), %s6800_s2, 2048, %s462_s23, [#allocation3], %s5979_s27, %s5979_s27, %s5980_s25  }
  0x4c   : > { %p5831_p1 = pneg %p5830_p0 }
  0x4e   : > { %p5838_p4 = pnand %p5837_p9, %p5831_p1 }
  0x50   : > { %5841 = shalt.err (!%p5838_p4)
}
  0x51   : > { %s5982_s1 = smov 64   ;;  %s5983_s26 = smov 4  }
  0x52   : > { %5323 = dma.hbm_to_vmem [thread:$0]  (!%p6148_p12), %s6758_s6, 2048, %s497_s20, [#allocation6], %s5982_s1, %s5982_s1, %s5983_s26  }
  0x53   : > { %s5984_s25 = smov [#allocation10]   ;;  %s5985_s30 = smov [#allocation11]  }
  0x54   : > { %s534_s18 = sshll.u32 %s5984_s25, 4  ;;  %s556_s2 = sshll.u32 %s5985_s30, 4  ;;  %s535_s18 = int_to_ptr.vmem [resolvable:$true] %s534_s18  ;;  %s557_s2 = int_to_ptr.vmem [resolvable:$true] %s556_s2 }
  0x55   : > { %s5853_s21 = scalar_lea.vmem %s535_s18, 8192  ;;  %p5861_p8 = scmp.lt.s32.totalorder %s535_s18, %s535_s18 }
  0x56   : > { %p5854_p6 = scmp.ne.s32.totalorder %s535_s18, %s5853_s21  ;;  %p5862_p11 = scmp.lt.s32.totalorder %s5853_s21, %s5853_s21 }
  0x58   : > { %p5856_p5 = pnand %p5854_p6, %p6154_p13  ;;  %p5863_p0 = por %p5862_p11, %p5861_p8 }
  0x5a   : > { %p5857_p7 = pneg %p5856_p5 }
  0x5c   : > { %p5864_p1 = pnand %p5863_p0, %p5857_p7 }
  0x5e   : > { %5867 = shalt.err (!%p5864_p1)
}
  0x5f   : > { %5329 = dma.hbm_to_vmem [thread:$0]  (!%p6148_p12), %s6764_s12, 8192, %s535_s18, [#allocation9], %s5982_s1, %s5982_s1, %s5983_s26  }
  0x60   : > { %s5879_s23 = scalar_lea.vmem %s557_s2, 1024  ;;  %p5887_p4 = scmp.lt.s32.totalorder %s557_s2, %s557_s2 }
  0x61   : > { %p5880_p3 = scmp.ne.s32.totalorder %s557_s2, %s5879_s23  ;;  %p5888_p6 = scmp.lt.s32.totalorder %s5879_s23, %s5879_s23 }
  0x63   : > { %p5882_p2 = pnand %p5880_p3, %p6154_p13  ;;  %p5889_p5 = por %p5888_p6, %p5887_p4 }
  0x65   : > { %p5883_p9 = pneg %p5882_p2 }
  0x67   : > { %p5890_p7 = pnand %p5889_p5, %p5883_p9 }
  0x69   : > { %5893 = shalt.err (!%p5890_p7)
}
  0x6a   : > { %5332 = dma.hbm_to_vmem [thread:$0]  (!%p6148_p12), %s6768_s16, 1024, %s557_s2, [#allocation12], %s5982_s1, %s5982_s1, %s5983_s26  }
  0x6b   : > { %583 = sbr.rel (%p6140_p10) target bundleno = 8421 (0x20e5), region = 92  ;;  %p6801_p13 = scmp.eq.s32.totalorder (!%p6140_p10), %s6112_s0, 0 }
  0x70   : > { %5937 = dma.done.wait (%p6801_p13), [#allocation3], 2048   ;;  %p6802_p8 = pmov %p6801_p13 }
  0x72   : > { %5939 = vsyncadd (%p6802_p8), [#allocation3], 4294965248  ;;  %p6803_p11 = pmov %p6802_p8 }
  0x73   : > { %p6804_p0 = pmov %p6802_p8 }
  0x74   : > { %5941 = dma.done.wait (%p6803_p11), [#allocation6], 8192  }
  0x75   : > { %5943 = vsyncadd (%p6804_p0), [#allocation6], 4294959104  ;;  %p6805_p1 = pmov %p6804_p0 }
  0x76   : > { %p6806_p12 = pmov %p6804_p0 }
  0x77   : > { %5945 = dma.done.wait (%p6805_p1), [#allocation9], 16384  }
  0x78   : > { %5947 = vsyncadd (%p6806_p12), [#allocation9], 4294950912  ;;  %p6807_p10 = pmov %p6804_p0 }
  0x79   : > { %p6808_p3 = pmov %p6804_p0 }
  0x7a   : > { %5949 = dma.done.wait (%p6807_p10), [#allocation12], 1024  }
  0x7b   : > { %5951 = vsyncadd (%p6808_p3), [#allocation12], 4294966272  ;;  %p657_p2 = scmp.lt.s32.totalorder %s6112_s0, 1  ;;  %v5986_v0 = vmov 0   ;;  %s6809_s26 = sld [smem:[#allocation26_spill]]  ;;  %v694_v2 = vld [vmem:[#allocation2 + $0x78] sm:$0xff]  ;;  %v665_v19 = vlaneseq }
  0x7c   : > { %5405 = vset.pattern.permute.xlu0 %v5986_v0  ;;  %1011 = vmatprep.mubr.bf16.mxu1 %v5986_v0  ;;  %v693_v3 = vld [vmem:[#allocation2 + $0x70] sm:$0xff]  ;;  %v692_v5 = vld [vmem:[#allocation2 + $0x68] sm:$0xff]  ;;  %v691_v6 = vld [vmem:[#allocation2 + $0x60] sm:$0xff]  ;;  %v5987_v22 = vmov 1.0   ;;  %s6810_s21 = sld [smem:[#allocation28_spill]]  ;;  %v5988_v32 = vmov 0.0  }
  0x7d   : > { %s658_s22 = scalar_select %p657_p2, %s6112_s0, 1  ;;  %5033 = vmatprep.subr.mxu0 %v694_v2  ;;  %v690_v7 = vld [vmem:[#allocation2 + $0x58] sm:$0xff]  ;;  %v689_v8 = vld [vmem:[#allocation2 + $0x50] sm:$0xff]  ;;  %v688_v9 = vld [vmem:[#allocation2 + $0x48] sm:$0xff]  ;;  %v6235_v20 = vand.u32 127, %v665_v19  ;;  %vm5989_vm2 = vmmov 0  }
  0x7e   : > { %5034 = vmatpush3.msra.mxu0 %v694_v2  ;;  %v687_v10 = vld [vmem:[#allocation2 + $0x40] sm:$0xff]  ;;  %v686_v11 = vld [vmem:[#allocation2 + $0x38] sm:$0xff]  ;;  %v685_v12 = vld [vmem:[#allocation2 + $0x30] sm:$0xff]  ;;  %s6811_s3 = sld [smem:[#allocation29_spill]]  ;;  %vm1082_vm3 = vcmask 261120   ;;  %vm1134_vm5 = vcmask 130048  }
  0x7f   : > { %s4842_s24 = sshll.u32 %s658_s22, 4  ;;  %5035 = vmatprep.subr.mxu0 %v693_v3  ;;  %v684_v13 = vld [vmem:[#allocation2 + $0x28] sm:$0xff]  ;;  %v683_v14 = vld [vmem:[#allocation2 + $0x20] sm:$0xff]  ;;  %v682_v15 = vld [vmem:[#allocation2 + $0x18] sm:$0xff]  ;;  %s5991_s19 = smov 64  }
  0x80   : > { %5036 = vmatpush3.msra.mxu0 %v693_v3  ;;  %v681_v16 = vld [vmem:[#allocation2 + $0x10] sm:$0xff]  ;;  %v680_v17 = vld [vmem:[#allocation2 + $0x8] sm:$0xff]  ;;  %v679_v18 = vld [vmem:[#allocation2] sm:$0xff]  ;;  %s5992_s1 = smov 32   ;;  %s6816_s23 = sld [smem:[#allocation24_spill]] }
  0x81   : > { %s661_s18 = scalar_lea.vmem %s6809_s26, %s4842_s24  ;;  %5037 = vmatprep.subr.mxu0 %v692_v5  ;;  %v5406_v30 = vld [vmem:[#allocation5 + $0xac] ss:$12 sps:$4 sm:$0xff]   ;;  %v5408_v31 = vld [vmem:[#allocation5 + $0xa8] ss:$12 sps:$4 sm:$0xff]   ;;  %v5409_v33 = vld [vmem:[#allocation5 + $0xb0] ss:$12 sps:$4 sm:$0xff]  }
  0x82   : > { %v663_v1 = vld [vmem:[%s661_s18] sm:$0xff]  ;;  %v664_v4 = vld [vmem:[%s661_s18 + $0x8] sm:$0xff]  ;;  %5038 = vmatpush3.msra.mxu0 %v692_v5  ;;  %979 = vmatprep.subr.bf16.mxu1 %v5406_v30  ;;  %v5412_v43 = vld [vmem:[#allocation5 + $0x90] ss:$12 sps:$4 sm:$0xff]   ;;  %s5990_s24 = smov 96   ;;  %s4843_s22 = sshll.u32 %s6112_s0, 8 }
  0x83   : > { %668 = vperm.xlu0 %5405, %v663_v1   ;;  %5039 = vmatprep.subr.mxu0 %v691_v6  ;;  %v695_v25 = vld [vmem:[%s6810_s21] sm:$0xff]  ;;  %v696_v28 = vld [vmem:[%s6810_s21 + $0x8] sm:$0xff]  ;;  %v5425_v53 = vld [vmem:[#allocation5 + $0x50] ss:$12 sps:$4 sm:$0xff]   ;;  %s6817_s30 = sld [smem:[#allocation30_spill]]  ;;  %s5993_s0 = smov [#allocation13]  }
  0x84   : > { %5040 = vmatpush3.msra.mxu0 %v691_v6  ;;  %980 = vmatpush1.bf16.msra.mxu1 %v5408_v31  ;;  %v5410_v42 = vld [vmem:[#allocation5 + $0x94] ss:$12 sps:$4 sm:$0xff]   ;;  %v5413_v44 = vld [vmem:[#allocation5 + $0x98] ss:$12 sps:$4 sm:$0xff]   ;;  %v5414_v45 = vld [vmem:[#allocation5 + $0x7c] ss:$12 sps:$4 sm:$0xff]  }
  0x85   : > { %5041 = vmatprep.subr.mxu0 %v690_v7  ;;  %981 = vmatprep.subr.bf16.mxu1 %v5410_v42  ;;  %v5416_v46 = vld [vmem:[#allocation5 + $0x78] ss:$12 sps:$4 sm:$0xff]   ;;  %v5417_v47 = vld [vmem:[#allocation5 + $0x80] ss:$12 sps:$4 sm:$0xff]   ;;  %v5421_v50 = vld [vmem:[#allocation5 + $0x68] ss:$12 sps:$4 sm:$0xff]  }
  0x86   : > { %5042 = vmatpush3.msra.mxu0 %v690_v7  ;;  %v5418_v48 = vld [vmem:[#allocation5 + $0x64] ss:$12 sps:$4 sm:$0xff]   ;;  %v5420_v49 = vld [vmem:[#allocation5 + $0x60] ss:$12 sps:$4 sm:$0xff]   ;;  %v5424_v52 = vld [vmem:[#allocation5 + $0x48] ss:$12 sps:$4 sm:$0xff]  }
  0x87   : > { %671 = vperm.xlu0 %5405, %v664_v4   ;;  %5043 = vmatprep.subr.mxu0 %v689_v8  ;;  %v5422_v51 = vld [vmem:[#allocation5 + $0x4c] ss:$12 sps:$4 sm:$0xff]   ;;  %v5426_v54 = vld [vmem:[#allocation5 + $0x34] ss:$12 sps:$4 sm:$0xff]   ;;  %v5428_v55 = vld [vmem:[#allocation5 + $0x30] ss:$12 sps:$4 sm:$0xff]  }
  0x88   : > { %5044 = vmatpush3.msra.mxu0 %v689_v8  ;;  %982 = vmatpush1.bf16.msra.mxu1 %v5412_v43  ;;  %v5429_v56 = vld [vmem:[#allocation5 + $0x38] ss:$12 sps:$4 sm:$0xff]   ;;  %v5430_v57 = vld [vmem:[#allocation5 + $0x1c] ss:$12 sps:$4 sm:$0xff]   ;;  %v5433_v59 = vld [vmem:[#allocation5 + $0x20] ss:$12 sps:$4 sm:$0xff]  }
  0x89   : > { %5045 = vmatprep.subr.mxu0 %v688_v9  ;;  %983 = vmatprep.subr.bf16.mxu1 %v5414_v45  ;;  %v5432_v58 = vld [vmem:[#allocation5 + $0x18] ss:$12 sps:$4 sm:$0xff]   ;;  %v5436_v61 = vld [vmem:[#allocation5] ss:$12 sps:$4 sm:$0xff]   ;;  %v5437_v62 = vld [vmem:[#allocation5 + $0x8] ss:$12 sps:$4 sm:$0xff]   ;;  %s6818_s2 = smov %s6817_s30 }
  0x8a   : > { %5046 = vmatpush3.msra.mxu0 %v688_v9  ;;  %v5434_v60 = vld [vmem:[#allocation5 + $0x4] ss:$12 sps:$4 sm:$0xff]   ;;  %v4591_v8 = vld [vmem:[%s6811_s3] ss:$0 sm:$0xff]  ;;  %p6819_p4 = scmp.ne.s32.totalorder %s6816_s23, 0  ;;  %s5898_s29 = sshll.u32 %s5993_s0, 4  ;;  %s5899_s29 = int_to_ptr.vmem [resolvable:$false] %s5898_s29 }
  0x8b   : > { %5047 = vmatprep.subr.mxu0 %v687_v10 }
  0x8c   : > { %5048 = vmatpush3.msra.mxu0 %v687_v10  ;;  %984 = vmatpush1.bf16.msra.mxu1 %v5416_v46 }
  0x8d   : > { %5049 = vmatprep.subr.mxu0 %v686_v11  ;;  %985 = vmatprep.subr.bf16.mxu1 %v5418_v48 }
  0x8e   : > { %5050 = vmatpush3.msra.mxu0 %v686_v11 }
  0x8f   : > { %5051 = vmatprep.subr.mxu0 %v685_v12 }
  0x90   : > { %5052 = vmatpush3.msra.mxu0 %v685_v12  ;;  %986 = vmatpush1.bf16.msra.mxu1 %v5420_v49  ;;  %v4592_v12 = vld [vmem:[%s6756_s4] ss:$0 sm:$0xff] }
  0x91   : > { %5053 = vmatprep.subr.mxu0 %v684_v13  ;;  %987 = vmatprep.subr.bf16.mxu1 %v5422_v51 }
  0x92   : > { %5054 = vmatpush3.msra.mxu0 %v684_v13 }
  0x93   : > { %5055 = vmatprep.subr.mxu0 %v683_v14 }
  0x94   : > { %5056 = vmatpush3.msra.mxu0 %v683_v14  ;;  %988 = vmatpush1.bf16.msra.mxu1 %v5424_v52 }
  0x95   : > { %5057 = vmatprep.subr.mxu0 %v682_v15  ;;  %989 = vmatprep.subr.bf16.mxu1 %v5426_v54 }
  0x96   : > { %5058 = vmatpush3.msra.mxu0 %v682_v15 }
  0x97   : > { %5059 = vmatprep.subr.mxu0 %v681_v16 }
  0x98   : > { %5060 = vmatpush3.msra.mxu0 %v681_v16  ;;  %990 = vmatpush1.bf16.msra.mxu1 %v5428_v55 }
  0x99   : > { %5061 = vmatprep.subr.mxu0 %v680_v17  ;;  %991 = vmatprep.subr.bf16.mxu1 %v5430_v57 }
  0x9a   : > { %5062 = vmatpush3.msra.mxu0 %v680_v17 }
  0x9b   : > { %5063 = vmatprep.subr.mxu0 %v679_v18 }
  0x9c   : > { %5064 = vmatpush3.msra.mxu0 %v679_v18  ;;  %992 = vmatpush1.bf16.msra.mxu1 %v5432_v58 }
  0x9d   : > { %5068 = vmatprep.subr.bf16.mxu0 %v5988_v32  ;;  %993 = vmatprep.subr.bf16.mxu1 %v5434_v60 }
  0xa0   : > { %994 = vmatpush1.bf16.msra.mxu1 %v5436_v61 }
  0xa1   : > { %5088 = vmatprep.subr.bf16.mxu1 %v5988_v32 }
  0xfe   : > { %v669_v21 = vpop.permute.xlu0 %668 }
  0xff   : > { %vm673_vm0 = vcmp.eq.s32.totalorder %v6235_v20, %v669_v21 }
 0x100   : > { %5065 = vmatprep.mubr.msk.f32.mxu0 %vm673_vm0, %v5987_v22 }
 0x102   : > { %v672_v23 = vpop.permute.xlu0 %671 }
 0x103   : > { %vm674_vm1 = vcmp.eq.s32.totalorder %v6235_v20, %v672_v23 }
 0x104   : > { %5066 = vmatmul.mubr.msk.f32.vlgmr.msra.gmra.mxu0 %vm674_vm1, %v5987_v22 }
 0x105   : > { %5069 = vmatpush3.bf16.msra.mxu0 %v5409_v33  ;;  %5084 = vmatprep.mubr.msk.bf16.mxu0 %vm5989_vm2, %v5988_v32 }
 0x106   : > { %5070 = vmatprep.subr.bf16.mxu0 %v5988_v32 }
 0x109   : > { %5071 = vmatpush3.bf16.msra.mxu0 %v5413_v44 }
 0x10a   : > { %5072 = vmatprep.subr.bf16.mxu0 %v5988_v32 }
 0x10d   : > { %5073 = vmatpush3.bf16.msra.mxu0 %v5417_v47 }
 0x10e   : > { %5074 = vmatprep.subr.bf16.mxu0 %v5988_v32 }
 0x111   : > { %5075 = vmatpush3.bf16.msra.mxu0 %v5421_v50 }
 0x112   : > { %5076 = vmatprep.subr.bf16.mxu0 %v5988_v32 }
 0x115   : > { %5077 = vmatpush3.bf16.msra.mxu0 %v5425_v53 }
 0x116   : > { %5078 = vmatprep.subr.bf16.mxu0 %v5988_v32 }
 0x119   : > { %5079 = vmatpush3.bf16.msra.mxu0 %v5429_v56 }
 0x11a   : > { %5080 = vmatprep.subr.bf16.mxu0 %v5988_v32 }
 0x11d   : > { %5081 = vmatpush3.bf16.msra.mxu0 %v5433_v59 }
 0x11e   : > { %5082 = vmatprep.subr.bf16.mxu0 %v5988_v32 }
 0x121   : > { %5083 = vmatpush3.bf16.msra.mxu0 %v5437_v62 }
 0x122   : > { %5140 = vmatprep.subr.bf16.mxu0 %v5988_v32 }
 0x1c4   : > { %v5067_v24 = vpop.f32.mrf.mxu0 }
 0x1c5   : > { %v6248_v29 = vadd.f32 %v5067_v24, %v696_v28 }
 0x1c6   : > { %v763_v26 = vpop.f32.mrf.mxu0 }
 0x1c7   : > { %v6242_v27 = vadd.f32 %v763_v26, %v695_v25 }
 0x1c9   : > { %779 = vadd.xlane.f32.xlu1 %v6242_v27 }
 0x1cd   : > { %781 = vadd.xlane.f32.xlu1 %v6248_v29 }
 0x252   : > { %v780_v34 = vpop.xlane.xlu1 %779 }
 0x253   : > { %v784_v35 = vmul.f32 0.0078125, %v780_v34  ;;  %v6303_v34 = vshrl.u32 %v665_v19, 7 }
 0x255   : > { %v6254_v36 = vsub.f32 %v6242_v27, %v784_v35  ;;  %v774_v35 = vadd.s32 8, %v6303_v34  ;;  %vm6308_vm4 = vcmp.ge.s32.totalorder %v6303_v34, %v6235_v20 }
 0x256   : > { %v782_v37 = vpop.xlane.xlu1 %781 }
 0x257   : > { %v785_v38 = vmul.f32 0.0078125, %v782_v37  ;;  %v788_v39 = vmul.f32 %v6254_v36, %v6254_v36  ;;  %vm6315_vm6 = vcmp.ge.s32.totalorder %v774_v35, %v6235_v20 }
 0x259   : > { %v6259_v40 = vsub.f32 %v6248_v29, %v785_v38  ;;  %790 = vadd.xlane.f32.xlu0 %v788_v39 }
 0x25b   : > { %v789_v41 = vmul.f32 %v6259_v40, %v6259_v40 }
 0x25d   : > { %792 = vadd.xlane.f32.xlu1 %v789_v41 }
 0x2e2   : > { %v791_v63 = vpop.xlane.xlu0 %790 }
 0x2e3   : > { %v794_v1 = vmul.f32 0.0078125, %v791_v63 }
 0x2e5   : > { %v796_v2 = vadd.f32 1e-05, %v794_v1 }
 0x2e6   : > { %v793_v3 = vpop.xlane.xlu1 %792 }
 0x2e7   : > { %5654 = vrsqrt.f32 %v796_v2  ;;  %v795_v4 = vmul.f32 0.0078125, %v793_v3 }
 0x2e9   : > { %v797_v5 = vadd.f32 1e-05, %v795_v4 }
 0x2eb   : > { %5656 = vrsqrt.f32 %v797_v5 }
 0x2f4   : > { %v5655_v6 = vpop.eup %5654 }
 0x2f5   : > { %v800_v7 = vmul.f32 %v5655_v6, %v6254_v36 }
 0x2f7   : > { %v808_v11 = vmul.f32 %v4591_v8, %v800_v7 }
 0x2f8   : > { %v5657_v9 = vpop.eup %5656 }
 0x2f9   : > { %v801_v10 = vmul.f32 %v5657_v9, %v6259_v40  ;;  %v816_v14 = vadd.f32 %v4592_v12, %v808_v11 }
 0x2fb   : > { %v809_v13 = vmul.f32 %v4591_v8, %v801_v10 }
 0x2fd   : > { %v817_v15 = vadd.f32 %v4592_v12, %v809_v13 }
 0x2ff   : > { %v818_v16 = vpack.c.bf16 %v817_v15, %v816_v14 }
 0x301   : > { %1012 = vmatmul.mubr.bf16.vlgmr.msra.gmra.mxu1 %v818_v16  ;;  %5085 = vmatmul.mubr.bf16.vlgmr.msra.gmra.mxu0 %v818_v16 }
 0x302   : > { %5090 = vmatprep.mubr.msk.bf16.mxu1 %vm5989_vm2, %v5988_v32  ;;  %5144 = vmatprep.mubr.msk.bf16.mxu0 %vm5989_vm2, %v5988_v32 }
 0x3c1   : > { %v1013_v17 = vpop.f32.mrf.mxu1  ;;  %v1056_v18 = vpop.f32.mrf.mxu0 }
 0x3c3   : > { %v1015_v21 = vpop.f32.mrf.mxu1  ;;  %v5086_v22 = vpop.f32.mrf.mxu0 }
 0x3c5   : > { %v1017_v23 = vpop.f32.mrf.mxu1  ;;  %v1059_v24 = vpop.f32.mrf.mxu0 }
 0x3c6   : > { %v6285_v25 = vpack.c.bf16 %v1017_v23, %v1013_v17  ;;  %v6294_v33 = vpack.c.bf16 %v1059_v24, %v1056_v18 }
 0x3c7   : > { %v1019_v26 = vpop.f32.mrf.mxu1  ;;  %v5087_v28 = vpop.f32.mrf.mxu0 }
 0x3c8   : > { %v6287_v30 = vpack.c.bf16 %v1019_v26, %v1015_v21  ;;  %1204 = vrot.lane.b32.xlu0 %v6285_v25, %s5990_s24 }
 0x3ca   : > { %v1087_v31 = vsel %vm1082_vm3, %v6287_v30, 0 }
 0x3cb   : > { %5089 = vmatpush3.bf16.xpose.msra.mxu1 %v1087_v31 }
 0x3cc   : > { %5094 = vmatprep.subr.bf16.mxu1 %v5988_v32 }
 0x3d2   : > { %5091 = vmatmul.mubr.msk.bf16.vlgmr.msra.gmra.mxu1 %vm1082_vm3, %v6285_v25 }
 0x3d3   : > { %5095 = vmatpush3.bf16.msra.mxu1 %v6294_v33  ;;  %5096 = vmatprep.mubr.msk.bf16.mxu1 %vm5989_vm2, %v5988_v32 }
 0x3d4   : > { %5100 = vmatprep.subr.bf16.mxu1 %v5988_v32 }
 0x43a   : > { %v1205_v2 = vpop.permute.xlu0 %1204 }
 0x492   : > { %v1123_v37 = vpop.f32.mrf.mxu1 }
 0x493   : > { %v1130_v38 = vmul.f32 0.17677669, %v1123_v37 }
 0x494   : > { %v5092_v39 = vpop.f32.mrf.mxu1 }
 0x495   : > { %v1132_v40 = vsel %vm6308_vm4, %v1130_v38, -inf }
 0x496   : > { %v1126_v19 = vpop.f32.mrf.mxu1  ;;  %v1135_v42 = vsel %vm1134_vm5, %v1132_v40, -inf }
 0x497   : > { %v1131_v43 = vmul.f32 0.17677669, %v1126_v19  ;;  %1136 = vmax.xlane.f32.xlu1 %v1135_v42 }
 0x498   : > { %v5093_v44 = vpop.f32.mrf.mxu1 }
 0x499   : > { %v1133_v45 = vsel %vm6315_vm6, %v1131_v43, -inf }
 0x49a   : > { %v1138_v46 = vsel %vm1134_vm5, %v1133_v45, -inf }
 0x49b   : > { %1139 = vmax.xlane.f32.xlu1 %v1138_v46 }
 0x520   : > { %v1137_v47 = vpop.xlane.xlu1 %1136 }
 0x521   : > { %v1141_v48 = vsub.f32 %v1132_v40, %v1137_v47  ;;  %v5439_v47 = vld [vmem:[#allocation7 + $0x10] sm:$0xff]  }
 0x523   : > { %v1143_v49 = vmul.f32 1.442695, %v1141_v48 }
 0x524   : > { %v1140_v50 = vpop.xlane.xlu1 %1139 }
 0x525   : > { %5658 = vpow2.f32 %v1143_v49  ;;  %v1142_v20 = vsub.f32 %v1133_v45, %v1140_v50  ;;  %v5438_v45 = vld [vmem:[#allocation7 + $0x18] sm:$0xff]  }
 0x527   : > { %v1145_v51 = vmul.f32 1.442695, %v1142_v20  ;;  %v5440_v20 = vld [vmem:[#allocation7 + $0x8] sm:$0xff]  }
 0x529   : > { %5660 = vpow2.f32 %v1145_v51 }
 0x532   : > { %v5659_v52 = vpop.eup %5658 }
 0x533   : > { %v1147_v53 = vsel %vm1134_vm5, %v5659_v52, 0.0 }
 0x534   : > { %1148 = vadd.xlane.f32.xlu1 %v1147_v53  ;;  %v5441_v53 = vld [vmem:[#allocation7] sm:$0xff]  }
 0x536   : > { %v5661_v54 = vpop.eup %5660 }
 0x537   : > { %v1150_v55 = vsel %vm1134_vm5, %v5661_v54, 0.0 }
 0x538   : > { %1151 = vadd.xlane.f32.xlu1 %v1150_v55 }
 0x549   : > { %1207 = vrot.lane.b32.xlu1 %v6287_v30, %s5990_s24 }
 0x5bd   : > { %v1149_v56 = vpop.xlane.xlu1 %1148 }
 0x5be   : > { %5662 = vrcp.f32 %v1149_v56 }
 0x5c1   : > { %v1152_v57 = vpop.xlane.xlu1 %1151 }
 0x5c2   : > { %5664 = vrcp.f32 %v1152_v57 }
 0x5c5   : > { %v1208_v62 = vpop.permute.xlu1 %1207 }
 0x5c6   : > { %v1213_v1 = vsel %vm1082_vm3, %v1208_v62, 0 }
 0x5cb   : > { %v5663_v58 = vpop.eup %5662 }
 0x5cc   : > { %v1155_v60 = vmul.f32 %v5663_v58, %v5659_v52 }
 0x5cf   : > { %v5665_v59 = vpop.eup %5664 }
 0x5d0   : > { %v1156_v61 = vmul.f32 %v5665_v59, %v5661_v54 }
 0x5d2   : > { %v1157_v63 = vpack.c.bf16 %v1156_v61, %v1155_v60 }
 0x5d4   : > { %5097 = vmatmul.mubr.msk.bf16.vlgmr.msra.gmra.mxu1 %vm1134_vm5, %v1157_v63 }
 0x5d5   : > { %5101 = vmatpush3.bf16.xpose.msra.mxu1 %v1213_v1  ;;  %5102 = vmatprep.mubr.msk.bf16.mxu1 %vm5989_vm2, %v5988_v32 }
 0x5d6   : > { %5106 = vmatprep.subr.bf16.mxu1 %v5988_v32 }
 0x5dc   : > { %5103 = vmatmul.mubr.msk.bf16.vlgmr.msra.gmra.mxu1 %vm1082_vm3, %v1205_v2 }
 0x5dd   : > { %5108 = vmatprep.mubr.msk.bf16.mxu1 %vm5989_vm2, %v5988_v32 }
 0x694   : > { %v6335_v3 = vpop.f32.mrf.mxu1 }
 0x696   : > { %v5098_v4 = vpop.f32.mrf.mxu1 }
 0x698   : > { %v6337_v5 = vpop.f32.mrf.mxu1 }
 0x699   : > { %v1202_v6 = vpack.c.bf16 %v6337_v5, %v6335_v3 }
 0x69a   : > { %v5099_v7 = vpop.f32.mrf.mxu1 }
 0x69c   : > { %v1249_v8 = vpop.f32.mrf.mxu1 }
 0x69d   : > { %v1256_v9 = vmul.f32 0.17677669, %v1249_v8 }
 0x69e   : > { %v5104_v10 = vpop.f32.mrf.mxu1 }
 0x69f   : > { %v1258_v11 = vsel %vm6308_vm4, %v1256_v9, -inf }
 0x6a0   : > { %v1252_v12 = vpop.f32.mrf.mxu1  ;;  %v1260_v13 = vsel %vm1134_vm5, %v1258_v11, -inf }
 0x6a1   : > { %v1257_v14 = vmul.f32 0.17677669, %v1252_v12  ;;  %1261 = vmax.xlane.f32.xlu1 %v1260_v13 }
 0x6a2   : > { %v5105_v15 = vpop.f32.mrf.mxu1 }
 0x6a3   : > { %v1259_v16 = vsel %vm6315_vm6, %v1257_v14, -inf }
 0x6a4   : > { %v1263_v17 = vsel %vm1134_vm5, %v1259_v16, -inf }
 0x6a5   : > { %1264 = vmax.xlane.f32.xlu0 %v1263_v17 }
 0x6bb   : > { %1446 = vrot.lane.b32.xlu0 %v6287_v30, %s5991_s19 }
 0x72a   : > { %v1262_v18 = vpop.xlane.xlu1 %1261 }
 0x72b   : > { %v1266_v21 = vsub.f32 %v1258_v11, %v1262_v18 }
 0x72d   : > { %v1268_v22 = vmul.f32 1.442695, %v1266_v21 }
 0x72e   : > { %v1265_v23 = vpop.xlane.xlu0 %1264 }
 0x72f   : > { %5666 = vpow2.f32 %v1268_v22  ;;  %v1267_v24 = vsub.f32 %v1259_v16, %v1265_v23 }
 0x731   : > { %v1270_v26 = vmul.f32 1.442695, %v1267_v24 }
 0x732   : > { %v1447_v54 = vpop.permute.xlu0 %1446 }
 0x733   : > { %5668 = vpow2.f32 %v1270_v26  ;;  %v1452_v55 = vsel %vm1082_vm3, %v1447_v54, 0 }
 0x73c   : > { %v5667_v28 = vpop.eup %5666 }
 0x73d   : > { %v1272_v31 = vsel %vm1134_vm5, %v5667_v28, 0.0 }
 0x73e   : > { %1273 = vadd.xlane.f32.xlu1 %v1272_v31 }
 0x740   : > { %v5669_v35 = vpop.eup %5668 }
 0x741   : > { %v1275_v37 = vsel %vm1134_vm5, %v5669_v35, 0.0 }
 0x742   : > { %1276 = vadd.xlane.f32.xlu1 %v1275_v37 }
 0x753   : > { %1284 = vrot.lane.b32.xlu1 %v6294_v33, %s5990_s24 }
 0x757   : > { %1444 = vrot.lane.b32.xlu1 %v6285_v25, %s5991_s19 }
 0x7c7   : > { %v1274_v38 = vpop.xlane.xlu1 %1273 }
 0x7c8   : > { %5670 = vrcp.f32 %v1274_v38 }
 0x7cb   : > { %v1277_v39 = vpop.xlane.xlu1 %1276 }
 0x7cc   : > { %5672 = vrcp.f32 %v1277_v39 }
 0x7cf   : > { %v1285_v40 = vpop.permute.xlu1 %1284 }
 0x7d0   : > { %5107 = vmatpush3.bf16.msra.mxu1 %v1285_v40 }
 0x7d1   : > { %5112 = vmatprep.subr.bf16.mxu1 %v5988_v32 }
 0x7d3   : > { %v1445_v56 = vpop.permute.xlu1 %1444 }
 0x7d5   : > { %v5671_v19 = vpop.eup %5670 }
 0x7d6   : > { %v1280_v43 = vmul.f32 %v5671_v19, %v5667_v28 }
 0x7d9   : > { %v5673_v42 = vpop.eup %5672 }
 0x7da   : > { %v1281_v44 = vmul.f32 %v5673_v42, %v5669_v35 }
 0x7dc   : > { %v1282_v46 = vpack.c.bf16 %v1281_v44, %v1280_v43  ;;  %v5442_v43 = vld [vmem:[#allocation7 + $0x28] sm:$0xff]   ;;  %v5443_v44 = vld [vmem:[#allocation7 + $0x20] sm:$0xff]  }
 0x7dd   : > { %5141 = vmatpush3.bf16.msra.mxu0 %v5442_v43 }
 0x7de   : > { %5109 = vmatmul.mubr.msk.bf16.vlgmr.msra.gmra.mxu1 %vm1134_vm5, %v1282_v46  ;;  %5142 = vmatprep.subr.bf16.mxu0 %v5988_v32 }
 0x7df   : > { %5113 = vmatpush3.bf16.msra.mxu1 %v5438_v45  ;;  %5116 = vmatprep.mubr.msk.bf16.mxu1 %vm5989_vm2, %v5988_v32 }
 0x7e0   : > { %5114 = vmatprep.subr.bf16.mxu1 %v5988_v32 }
 0x7e1   : > { %5143 = vmatpush3.bf16.msra.mxu0 %v5443_v44 }
 0x7e2   : > { %5154 = vmatprep.subr.bf16.mxu0 %v5988_v32 }
 0x7e3   : > { %5115 = vmatpush3.bf16.msra.mxu1 %v5439_v47 }
 0x7e4   : > { %5120 = vmatprep.subr.bf16.mxu1 %v5988_v32 }
 0x89e   : > { %v1324_v48 = vpop.f32.mrf.mxu1 }
 0x8a0   : > { %v5110_v49 = vpop.f32.mrf.mxu1 }
 0x8a2   : > { %v1327_v50 = vpop.f32.mrf.mxu1 }
 0x8a3   : > { %v1331_v51 = vpack.c.bf16 %v1327_v50, %v1324_v48 }
 0x8a4   : > { %v5111_v52 = vpop.f32.mrf.mxu1 }
 0x8a5   : > { %5117 = vmatmul.mubr.msk.bf16.vlgmr.msra.gmra.mxu1 %vm1082_vm3, %v1331_v51 }
 0x8a6   : > { %5121 = vmatpush3.bf16.msra.mxu1 %v5440_v20  ;;  %5124 = vmatprep.mubr.msk.bf16.mxu1 %vm5989_vm2, %v5988_v32 }
 0x8a7   : > { %5122 = vmatprep.subr.bf16.mxu1 %v5988_v32 }
 0x8aa   : > { %5123 = vmatpush3.bf16.msra.mxu1 %v5441_v53 }
 0x8ab   : > { %5128 = vmatprep.subr.bf16.mxu1 %v5988_v32 }
 0x8ad   : > { %5125 = vmatmul.mubr.msk.bf16.vlgmr.msra.gmra.mxu1 %vm1082_vm3, %v1202_v6 }
 0x8ae   : > { %5129 = vmatpush3.bf16.xpose.msra.mxu1 %v1452_v55  ;;  %5130 = vmatprep.mubr.msk.bf16.mxu1 %vm5989_vm2, %v5988_v32 }
 0x8af   : > { %5134 = vmatprep.subr.bf16.mxu1 %v5988_v32 }
 0x8b5   : > { %5131 = vmatmul.mubr.msk.bf16.vlgmr.msra.gmra.mxu1 %vm1082_vm3, %v1445_v56 }
 0x8b6   : > { %5136 = vmatprep.mubr.msk.bf16.mxu1 %vm5989_vm2, %v5988_v32 }
 0x965   : > { %v1381_v57 = vpop.f32.mrf.mxu1 }
 0x967   : > { %v5118_v58 = vpop.f32.mrf.mxu1 }
 0x969   : > { %v1384_v59 = vpop.f32.mrf.mxu1 }
 0x96b   : > { %v5119_v60 = vpop.f32.mrf.mxu1 }
 0x96d   : > { %v1437_v61 = vpop.f32.mrf.mxu1 }
 0x96e   : > { %v6377_v62 = vadd.f32 %v1437_v61, %v1381_v57 }
 0x96f   : > { %v5126_v63 = vpop.f32.mrf.mxu1 }
 0x971   : > { %v1440_v1 = vpop.f32.mrf.mxu1 }
 0x972   : > { %v6379_v2 = vadd.f32 %v1440_v1, %v1384_v59 }
 0x973   : > { %v5127_v3 = vpop.f32.mrf.mxu1 }
 0x975   : > { %v1488_v4 = vpop.f32.mrf.mxu1 }
 0x976   : > { %v1495_v5 = vmul.f32 0.17677669, %v1488_v4 }
 0x977   : > { %v5132_v6 = vpop.f32.mrf.mxu1 }
 0x978   : > { %v1497_v7 = vsel %vm6308_vm4, %v1495_v5, -inf }
 0x979   : > { %v1491_v8 = vpop.f32.mrf.mxu1  ;;  %v1499_v9 = vsel %vm1134_vm5, %v1497_v7, -inf }
 0x97a   : > { %v1496_v10 = vmul.f32 0.17677669, %v1491_v8  ;;  %1500 = vmax.xlane.f32.xlu1 %v1499_v9 }
 0x97b   : > { %v5133_v11 = vpop.f32.mrf.mxu1 }
 0x97c   : > { %v1498_v12 = vsel %vm6315_vm6, %v1496_v10, -inf }
 0x97d   : > { %v1502_v13 = vsel %vm1134_vm5, %v1498_v12, -inf }
 0x97e   : > { %1503 = vmax.xlane.f32.xlu0 %v1502_v13 }
 0xa03   : > { %v1501_v14 = vpop.xlane.xlu1 %1500 }
 0xa04   : > { %v1505_v15 = vsub.f32 %v1497_v7, %v1501_v14 }
 0xa06   : > { %v1507_v16 = vmul.f32 1.442695, %v1505_v15 }
 0xa07   : > { %v1504_v17 = vpop.xlane.xlu0 %1503 }
 0xa08   : > { %5674 = vpow2.f32 %v1507_v16  ;;  %v1506_v18 = vsub.f32 %v1498_v12, %v1504_v17 }
 0xa0a   : > { %v1509_v21 = vmul.f32 1.442695, %v1506_v18 }
 0xa0c   : > { %5676 = vpow2.f32 %v1509_v21 }
 0xa15   : > { %v5675_v22 = vpop.eup %5674 }
 0xa16   : > { %v1511_v23 = vsel %vm1134_vm5, %v5675_v22, 0.0 }
 0xa17   : > { %1512 = vadd.xlane.f32.xlu0 %v1511_v23  ;;  %v5444_v23 = vld [vmem:[#allocation7 + $0x38] sm:$0xff]  }
 0xa19   : > { %v5677_v24 = vpop.eup %5676 }
 0xa1a   : > { %v1514_v26 = vsel %vm1134_vm5, %v5677_v24, 0.0 }
 0xa1b   : > { %1515 = vadd.xlane.f32.xlu1 %v1514_v26 }
 0xa2c   : > { %1630 = vrot.lane.b32.xlu1 %v6287_v30, %s5992_s1 }
 0xa2d   : > { %1522 = vrot.lane.b32.xlu0 %v6294_v33, %s5991_s19 }
 0xa30   : > { %1628 = vrot.lane.b32.xlu1 %v6285_v25, %s5992_s1 }
 0xaa0   : > { %v1513_v28 = vpop.xlane.xlu0 %1512 }
 0xaa1   : > { %5678 = vrcp.f32 %v1513_v28 }
 0xaa4   : > { %v1516_v31 = vpop.xlane.xlu1 %1515  ;;  %v1523_v35 = vpop.permute.xlu0 %1522 }
 0xaa5   : > { %5680 = vrcp.f32 %v1516_v31  ;;  %5135 = vmatpush3.bf16.msra.mxu1 %v1523_v35 }
 0xaa6   : > { %5148 = vmatprep.subr.bf16.mxu1 %v5988_v32 }
 0xaa8   : > { %v1631_v19 = vpop.permute.xlu1 %1630 }
 0xaa9   : > { %v1636_v42 = vsel %vm1082_vm3, %v1631_v19, 0 }
 0xaac   : > { %v1629_v25 = vpop.permute.xlu1 %1628 }
 0xaae   : > { %v5679_v37 = vpop.eup %5678 }
 0xaaf   : > { %v1519_v39 = vmul.f32 %v5679_v37, %v5675_v22 }
 0xab2   : > { %v5681_v38 = vpop.eup %5680 }
 0xab3   : > { %v1520_v40 = vmul.f32 %v5681_v38, %v5677_v24 }
 0xab5   : > { %v1521_v30 = vpack.c.bf16 %v1520_v40, %v1519_v39  ;;  %v4637_v39 = vld [vmem:[%s6759_s7] ss:$0 sm:$0xff] }
 0xab7   : > { %5137 = vmatmul.mubr.msk.bf16.vlgmr.msra.gmra.mxu1 %vm1134_vm5, %v1521_v30 }
 0xab8   : > { %5149 = vmatpush3.bf16.xpose.msra.mxu1 %v1636_v42  ;;  %5150 = vmatprep.mubr.msk.bf16.mxu1 %vm5989_vm2, %v5988_v32 }
 0xab9   : > { %5160 = vmatprep.subr.bf16.mxu1 %v5988_v32 }
 0xabf   : > { %5151 = vmatmul.mubr.msk.bf16.vlgmr.msra.gmra.mxu1 %vm1082_vm3, %v1629_v25 }
 0xac0   : > { %5164 = vmatprep.mubr.msk.bf16.mxu1 %vm5989_vm2, %v5988_v32  ;;  %5161 = vmatpush3.bf16.msra.mxu1 %v5444_v23  ;;  %v5495_v23 = vld [vmem:[#allocation10 + $0xf8] sm:$0xff]  }
 0xac1   : > { %5162 = vmatprep.subr.bf16.mxu1 %v5988_v32 }
 0xb77   : > { %v1562_v45 = vpop.f32.mrf.mxu1 }
 0xb79   : > { %v5138_v46 = vpop.f32.mrf.mxu1 }
 0xb7a   : > { %v5448_v46 = vld [vmem:[#allocation8 + $0xe4] ss:$16 sps:$4 sm:$0xff]  }
 0xb7b   : > { %v1565_v47 = vpop.f32.mrf.mxu1 }
 0xb7c   : > { %v1569_v48 = vpack.c.bf16 %v1565_v47, %v1562_v45  ;;  %v5446_v45 = vld [vmem:[#allocation8 + $0xe0] ss:$16 sps:$4 sm:$0xff]   ;;  %v5449_v47 = vld [vmem:[#allocation8 + $0xe8] ss:$16 sps:$4 sm:$0xff]  }
 0xb7d   : > { %v5139_v49 = vpop.f32.mrf.mxu1 }
 0xb7e   : > { %5145 = vmatmul.mubr.msk.bf16.vlgmr.msra.gmra.mxu0 %vm1082_vm3, %v1569_v48  ;;  %v5451_v48 = vld [vmem:[#allocation8 + $0xec] ss:$16 sps:$4 sm:$0xff]  }
 0xb7f   : > { %v1672_v50 = vpop.f32.mrf.mxu1  ;;  %5156 = vmatprep.mubr.msk.bf16.mxu0 %vm5989_vm2, %v5988_v32 }
 0xb80   : > { %v1679_v20 = vmul.f32 0.17677669, %v1672_v50 }
 0xb81   : > { %v5152_v51 = vpop.f32.mrf.mxu1 }
 0xb82   : > { %v1681_v52 = vsel %vm6308_vm4, %v1679_v20, -inf }
 0xb83   : > { %v1675_v53 = vpop.f32.mrf.mxu1  ;;  %v1683_v54 = vsel %vm1134_vm5, %v1681_v52, -inf }
 0xb84   : > { %v1680_v55 = vmul.f32 0.17677669, %v1675_v53  ;;  %1684 = vmax.xlane.f32.xlu0 %v1683_v54  ;;  %v5454_v54 = vld [vmem:[#allocation8 + $0xc4] ss:$16 sps:$4 sm:$0xff]  }
 0xb85   : > { %v5153_v56 = vpop.f32.mrf.mxu1 }
 0xb86   : > { %v1682_v57 = vsel %vm6315_vm6, %v1680_v55, -inf  ;;  %v5457_v55 = vld [vmem:[#allocation8 + $0xcc] ss:$16 sps:$4 sm:$0xff]   ;;  %v5452_v56 = vld [vmem:[#allocation8 + $0xc0] ss:$16 sps:$4 sm:$0xff]  }
 0xb87   : > { %v1686_v58 = vsel %vm1134_vm5, %v1682_v57, -inf }
 0xb88   : > { %1687 = vmax.xlane.f32.xlu1 %v1686_v58  ;;  %v5460_v58 = vld [vmem:[#allocation8 + $0xa4] ss:$16 sps:$4 sm:$0xff]  }
 0xb99   : > { %1706 = vrot.lane.b32.xlu1 %v6294_v33, %s5992_s1 }
 0xc0d   : > { %v1685_v59 = vpop.xlane.xlu0 %1684 }
 0xc0e   : > { %v1689_v60 = vsub.f32 %v1681_v52, %v1685_v59  ;;  %v5463_v59 = vld [vmem:[#allocation8 + $0xac] ss:$16 sps:$4 sm:$0xff]  }
 0xc10   : > { %v1691_v61 = vmul.f32 1.442695, %v1689_v60  ;;  %v5458_v60 = vld [vmem:[#allocation8 + $0xa0] ss:$16 sps:$4 sm:$0xff]  }
 0xc11   : > { %v1688_v63 = vpop.xlane.xlu1 %1687 }
 0xc12   : > { %5682 = vpow2.f32 %v1691_v61  ;;  %v1690_v1 = vsub.f32 %v1682_v57, %v1688_v63  ;;  %v5455_v57 = vld [vmem:[#allocation8 + $0xc8] ss:$16 sps:$4 sm:$0xff]   ;;  %v5464_v63 = vld [vmem:[#allocation8 + $0x80] ss:$16 sps:$4 sm:$0xff]  }
 0xc13   : > { %v5461_v61 = vld [vmem:[#allocation8 + $0xa8] ss:$16 sps:$4 sm:$0xff]  }
 0xc14   : > { %v1693_v3 = vmul.f32 1.442695, %v1690_v1  ;;  %v5466_v1 = vld [vmem:[#allocation8 + $0x84] ss:$16 sps:$4 sm:$0xff]  }
 0xc15   : > { %v1707_v4 = vpop.permute.xlu1 %1706 }
 0xc16   : > { %5684 = vpow2.f32 %v1693_v3  ;;  %5155 = vmatpush3.bf16.msra.mxu0 %v1707_v4  ;;  %v5467_v3 = vld [vmem:[#allocation8 + $0x88] ss:$16 sps:$4 sm:$0xff]   ;;  %v5469_v4 = vld [vmem:[#allocation8 + $0x8c] ss:$16 sps:$4 sm:$0xff]  }
 0xc17   : > { %2078 = vmatprep.subr.bf16.mxu0 %v5448_v46  ;;  %v5496_v46 = vld [vmem:[#allocation10 + $0x38] sm:$0xff]  }
 0xc1f   : > { %v5683_v5 = vpop.eup %5682 }
 0xc20   : > { %v1695_v6 = vsel %vm1134_vm5, %v5683_v5, 0.0 }
 0xc21   : > { %1696 = vadd.xlane.f32.xlu0 %v1695_v6  ;;  %v5475_v6 = vld [vmem:[#allocation8 + $0x6c] ss:$16 sps:$4 sm:$0xff]  }
 0xc23   : > { %v5685_v7 = vpop.eup %5684 }
 0xc24   : > { %v1698_v8 = vsel %vm1134_vm5, %v5685_v7, 0.0 }
 0xc25   : > { %1699 = vadd.xlane.f32.xlu0 %v1698_v8  ;;  %v5473_v8 = vld [vmem:[#allocation8 + $0x68] ss:$16 sps:$4 sm:$0xff]  }
 0xc3e   : > { %v1619_v9 = vpop.f32.mrf.mxu0 }
 0xc3f   : > { %v1626_v33 = vadd.f32 %v1619_v9, %v6377_v62  ;;  %v5445_v62 = vld [vmem:[#allocation7 + $0x30] sm:$0xff]  }
 0xc40   : > { %v5146_v10 = vpop.f32.mrf.mxu0  ;;  %5163 = vmatpush3.bf16.msra.mxu1 %v5445_v62  ;;  %v5478_v9 = vld [vmem:[#allocation8 + $0x44] ss:$16 sps:$4 sm:$0xff]  }
 0xc41   : > { %2121 = vmatprep.subr.bf16.mxu1 %v5451_v48  ;;  %v5476_v10 = vld [vmem:[#allocation8 + $0x40] ss:$16 sps:$4 sm:$0xff]  }
 0xc42   : > { %v1622_v11 = vpop.f32.mrf.mxu0 }
 0xc43   : > { %v1627_v12 = vadd.f32 %v1622_v11, %v6379_v2  ;;  %v5479_v11 = vld [vmem:[#allocation8 + $0x48] ss:$16 sps:$4 sm:$0xff]  }
 0xc44   : > { %v5147_v13 = vpop.f32.mrf.mxu0 }
 0xc45   : > { %v5487_v13 = vld [vmem:[#allocation8 + $0x2c] ss:$16 sps:$4 sm:$0xff]  }
 0xcaa   : > { %v1697_v14 = vpop.xlane.xlu0 %1696 }
 0xcab   : > { %5686 = vrcp.f32 %v1697_v14  ;;  %v5482_v14 = vld [vmem:[#allocation8 + $0x20] ss:$16 sps:$4 sm:$0xff]  }
 0xcae   : > { %v1700_v15 = vpop.xlane.xlu0 %1699 }
 0xcaf   : > { %5688 = vrcp.f32 %v1700_v15  ;;  %v5485_v15 = vld [vmem:[#allocation8 + $0x28] ss:$16 sps:$4 sm:$0xff]  }
 0xcb8   : > { %v5687_v16 = vpop.eup %5686 }
 0xcb9   : > { %v1703_v18 = vmul.f32 %v5687_v16, %v5683_v5  ;;  %v5472_v5 = vld [vmem:[#allocation8 + $0x64] ss:$16 sps:$4 sm:$0xff]  }
 0xcba   : > { %v5490_v16 = vld [vmem:[#allocation8 + $0x4] ss:$16 sps:$4 sm:$0xff]  }
 0xcbc   : > { %v5689_v17 = vpop.eup %5688 }
 0xcbd   : > { %v1704_v21 = vmul.f32 %v5689_v17, %v5685_v7  ;;  %v5470_v7 = vld [vmem:[#allocation8 + $0x60] ss:$16 sps:$4 sm:$0xff]   ;;  %v5493_v17 = vld [vmem:[#allocation8 + $0xc] ss:$16 sps:$4 sm:$0xff]  }
 0xcbf   : > { %v1705_v22 = vpack.c.bf16 %v1704_v21, %v1703_v18  ;;  %v5488_v18 = vld [vmem:[#allocation8] ss:$16 sps:$4 sm:$0xff]   ;;  %v5491_v21 = vld [vmem:[#allocation8 + $0x8] ss:$16 sps:$4 sm:$0xff]  }
 0xcc1   : > { %5157 = vmatmul.mubr.msk.bf16.vlgmr.msra.gmra.mxu0 %vm1134_vm5, %v1705_v22  ;;  %v5494_v22 = vld [vmem:[#allocation10 + $0x78] sm:$0xff]  }
 0xcc2   : > { %2110 = vmatprep.mubr.bf16.mxu0 %v5986_v0  ;;  %2079 = vmatpush1.bf16.msra.mxu0 %v5446_v45 }
 0xcc3   : > { %2080 = vmatprep.subr.bf16.mxu0 %v5454_v54  ;;  %v5506_v54 = vld [vmem:[#allocation10 + $0x60] sm:$0xff]  }
 0xcc6   : > { %2081 = vmatpush1.bf16.msra.mxu0 %v5452_v56  ;;  %v5508_v56 = vld [vmem:[#allocation10 + $0x20] sm:$0xff]  }
 0xcc7   : > { %2082 = vmatprep.subr.bf16.mxu0 %v5460_v58  ;;  %v5510_v58 = vld [vmem:[#allocation10 + $0x58] sm:$0xff]  }
 0xcca   : > { %2083 = vmatpush1.bf16.msra.mxu0 %v5458_v60  ;;  %v5512_v60 = vld [vmem:[#allocation10 + $0x18] sm:$0xff]  }
 0xccb   : > { %2084 = vmatprep.subr.bf16.mxu0 %v5466_v1  ;;  %v5515_v1 = vld [vmem:[#allocation10 + $0xd0] sm:$0xff]  }
 0xcce   : > { %2085 = vmatpush1.bf16.msra.mxu0 %v5464_v63  ;;  %v5514_v63 = vld [vmem:[#allocation10 + $0x50] sm:$0xff]  }
 0xccf   : > { %2086 = vmatprep.subr.bf16.mxu0 %v5472_v5  ;;  %v5518_v5 = vld [vmem:[#allocation10 + $0x48] sm:$0xff]  }
 0xcd2   : > { %2087 = vmatpush1.bf16.msra.mxu0 %v5470_v7  ;;  %v5520_v7 = vld [vmem:[#allocation10 + $0x8] sm:$0xff]  }
 0xcd3   : > { %2088 = vmatprep.subr.bf16.mxu0 %v5478_v9  ;;  %v5522_v9 = vld [vmem:[#allocation10 + $0x40] sm:$0xff]  }
 0xcd6   : > { %2089 = vmatpush1.bf16.msra.mxu0 %v5476_v10  ;;  %v5524_v10 = vld [vmem:[#allocation10] sm:$0xff]  }
 0xd81   : > { %v1746_v2 = vpop.f32.mrf.mxu0 }
 0xd83   : > { %v5158_v24 = vpop.f32.mrf.mxu0 }
 0xd85   : > { %v1749_v26 = vpop.f32.mrf.mxu0 }
 0xd86   : > { %v1753_v28 = vpack.c.bf16 %v1749_v26, %v1746_v2 }
 0xd87   : > { %v5159_v31 = vpop.f32.mrf.mxu0 }
 0xd88   : > { %5165 = vmatmul.mubr.msk.bf16.vlgmr.msra.gmra.mxu1 %vm1082_vm3, %v1753_v28 }
 0xd89   : > { %2153 = vmatprep.mubr.bf16.mxu1 %v5986_v0  ;;  %2122 = vmatpush1.bf16.msra.mxu1 %v5449_v47  ;;  %v5497_v47 = vld [vmem:[#allocation10 + $0xb8] sm:$0xff]  }
 0xd8a   : > { %2123 = vmatprep.subr.bf16.mxu1 %v5457_v55  ;;  %v5507_v55 = vld [vmem:[#allocation10 + $0xe0] sm:$0xff]  }
 0xd8d   : > { %2124 = vmatpush1.bf16.msra.mxu1 %v5455_v57  ;;  %v5509_v57 = vld [vmem:[#allocation10 + $0xa0] sm:$0xff]  }
 0xd8e   : > { %2125 = vmatprep.subr.bf16.mxu1 %v5463_v59  ;;  %v5511_v59 = vld [vmem:[#allocation10 + $0xd8] sm:$0xff]  }
 0xd91   : > { %2126 = vmatpush1.bf16.msra.mxu1 %v5461_v61  ;;  %v5513_v61 = vld [vmem:[#allocation10 + $0x98] sm:$0xff]  }
 0xd92   : > { %2127 = vmatprep.subr.bf16.mxu1 %v5469_v4  ;;  %v5517_v4 = vld [vmem:[#allocation10 + $0x90] sm:$0xff]  }
 0xd95   : > { %2128 = vmatpush1.bf16.msra.mxu1 %v5467_v3  ;;  %v5516_v3 = vld [vmem:[#allocation10 + $0x10] sm:$0xff]  }
 0xd96   : > { %2129 = vmatprep.subr.bf16.mxu1 %v5475_v6  ;;  %v5519_v6 = vld [vmem:[#allocation10 + $0xc8] sm:$0xff]  }
 0xd99   : > { %2130 = vmatpush1.bf16.msra.mxu1 %v5473_v8  ;;  %v5521_v8 = vld [vmem:[#allocation10 + $0x88] sm:$0xff]  }
 0xe48   : > { %v1803_v35 = vpop.f32.mrf.mxu1 }
 0xe49   : > { %v1810_v37 = vadd.f32 %v1803_v35, %v1626_v33  ;;  %v5481_v33 = vld [vmem:[#allocation8 + $0x4c] ss:$16 sps:$4 sm:$0xff]  }
 0xe4a   : > { %v5166_v38 = vpop.f32.mrf.mxu1  ;;  %2131 = vmatprep.subr.bf16.mxu1 %v5481_v33  ;;  %v5523_v33 = vld [vmem:[#allocation10 + $0xc0] sm:$0xff]  }
 0xe4b   : > { %v1812_v40 = vadd.f32 %v1810_v37, %v6242_v27  ;;  %2132 = vmatpush1.bf16.msra.mxu1 %v5479_v11  ;;  %v4638_v38 = vld [vmem:[%s6760_s8] ss:$0 sm:$0xff] }
 0xe4c   : > { %v1806_v19 = vpop.f32.mrf.mxu1  ;;  %2133 = vmatprep.subr.bf16.mxu1 %v5487_v13  ;;  %v5525_v11 = vld [vmem:[#allocation10 + $0x80] sm:$0xff]   ;;  %v1912_v13 = vsub.s32 3, %v6303_v34 }
 0xe4d   : > { %v1811_v30 = vadd.f32 %v1806_v19, %v1627_v12  ;;  %v6430_v42 = vadd.f32 %v4637_v39, %v1812_v40  ;;  %v5484_v12 = vld [vmem:[#allocation8 + $0x24] ss:$16 sps:$4 sm:$0xff]  }
 0xe4e   : > { %v5167_v25 = vpop.f32.mrf.mxu1  ;;  %2090 = vmatprep.subr.bf16.mxu0 %v5484_v12  ;;  %v1904_v12 = vsub.s32 1, %v6303_v34 }
 0xe4f   : > { %v1813_v43 = vadd.f32 %v1811_v30, %v6248_v29  ;;  %1825 = vadd.xlane.f32.xlu0 %v6430_v42  ;;  %2091 = vmatpush1.bf16.msra.mxu0 %v5482_v14  ;;  %v4639_v30 = vld [vmem:[%s6761_s9] ss:$0 sm:$0xff]  ;;  %v1900_v14 = vsub.s32 0, %v6303_v34 }
 0xe50   : > { %2134 = vmatpush1.bf16.msra.mxu1 %v5485_v15  ;;  %2092 = vmatprep.subr.bf16.mxu0 %v5490_v16  ;;  %v1908_v15 = vsub.s32 2, %v6303_v34  ;;  %v1896_v16 = vld [vmem:[%s6763_s11] sm:$0xf] }
 0xe51   : > { %v6434_v44 = vadd.f32 %v4637_v39, %v1813_v43  ;;  %2135 = vmatprep.subr.bf16.mxu1 %v5493_v17 }
 0xe53   : > { %1827 = vadd.xlane.f32.xlu0 %v6434_v44  ;;  %2093 = vmatpush1.bf16.msra.mxu0 %v5488_v18 }
 0xe54   : > { %2136 = vmatpush1.bf16.msra.mxu1 %v5491_v21  ;;  %4899 = vmatprep.subr.bf16.mxu0 %v5494_v22  ;;  %v1905_v21 = vrot.slane %v1896_v16, %v1904_v12  ;;  %v1913_v22 = vrot.slane %v1896_v16, %v1912_v13 }
 0xe55   : > { %4921 = vmatprep.subr.bf16.mxu1 %v5495_v23  ;;  %v1901_v23 = vrot.slane %v1896_v16, %v1900_v14 }
 0xed8   : > { %v1826_v27 = vpop.xlane.xlu0 %1825 }
 0xed9   : > { %v1829_v49 = vmul.f32 0.0078125, %v1826_v27  ;;  %v5498_v27 = vld [vmem:[#allocation10 + $0x70] sm:$0xff]  }
 0xedb   : > { %v6438_v50 = vsub.f32 %v6430_v42, %v1829_v49  ;;  %v5499_v49 = vld [vmem:[#allocation10 + $0xf0] sm:$0xff]  }
 0xedc   : > { %v1828_v29 = vpop.xlane.xlu0 %1827 }
 0xedd   : > { %v1830_v20 = vmul.f32 0.0078125, %v1828_v29  ;;  %v1833_v51 = vmul.f32 %v6438_v50, %v6438_v50  ;;  %v5501_v29 = vld [vmem:[#allocation10 + $0xb0] sm:$0xff]  }
 0xedf   : > { %v6443_v52 = vsub.f32 %v6434_v44, %v1830_v20  ;;  %1835 = vadd.xlane.f32.xlu0 %v1833_v51  ;;  %v5502_v20 = vld [vmem:[#allocation10 + $0x68] sm:$0xff]  }
 0xee0   : > { %v5503_v51 = vld [vmem:[#allocation10 + $0xe8] sm:$0xff]  }
 0xee1   : > { %v1834_v53 = vmul.f32 %v6443_v52, %v6443_v52 }
 0xee3   : > { %1837 = vadd.xlane.f32.xlu0 %v1834_v53  ;;  %v5505_v53 = vld [vmem:[#allocation10 + $0xa8] sm:$0xff]  }
 0xf68   : > { %v1836_v62 = vpop.xlane.xlu0 %1835 }
 0xf69   : > { %v1839_v2 = vmul.f32 0.0078125, %v1836_v62  ;;  %v1909_v62 = vrot.slane %v1896_v16, %v1908_v15  ;;  %v5528_v16 = vld [vmem:[#allocation5 + $0x16c] ss:$12 sps:$4 sm:$0xff]  }
 0xf6b   : > { %v1841_v24 = vadd.f32 1e-05, %v1839_v2 }
 0xf6c   : > { %v1838_v26 = vpop.xlane.xlu0 %1837 }
 0xf6d   : > { %5690 = vrsqrt.f32 %v1841_v24  ;;  %v1840_v28 = vmul.f32 0.0078125, %v1838_v26 }
 0xf6f   : > { %v1842_v31 = vadd.f32 1e-05, %v1840_v28 }
 0xf71   : > { %5692 = vrsqrt.f32 %v1842_v31 }
 0xf7a   : > { %v5691_v35 = vpop.eup %5690 }
 0xf7b   : > { %v1845_v37 = vmul.f32 %v5691_v35, %v6438_v50  ;;  %v5500_v50 = vld [vmem:[#allocation10 + $0x30] sm:$0xff]  }
 0xf7d   : > { %v1853_v19 = vmul.f32 %v4638_v38, %v1845_v37 }
 0xf7e   : > { %v5693_v39 = vpop.eup %5692 }
 0xf7f   : > { %v1846_v40 = vmul.f32 %v5693_v39, %v6443_v52  ;;  %v1861_v43 = vadd.f32 %v4639_v30, %v1853_v19  ;;  %v5504_v52 = vld [vmem:[#allocation10 + $0x28] sm:$0xff]  }
 0xf81   : > { %v1854_v25 = vmul.f32 %v4638_v38, %v1846_v40 }
 0xf83   : > { %v1862_v45 = vadd.f32 %v4639_v30, %v1854_v25 }
 0xf85   : > { %v1863_v48 = vpack.c.bf16 %v1862_v45, %v1861_v43 }
 0xf87   : > { %2111 = vmatmul.mubr.bf16.vlgmr.msra.gmra.mxu0 %v1863_v48  ;;  %2154 = vmatmul.mubr.bf16.vlgmr.msra.gmra.mxu1 %v1863_v48 }
 0xf88   : > { %4900 = vmatpush3.bf16.msra.mxu0 %v5496_v46  ;;  %4922 = vmatpush3.bf16.msra.mxu1 %v5497_v47 }
 0xf89   : > { %4901 = vmatprep.subr.bf16.mxu0 %v5498_v27  ;;  %4923 = vmatprep.subr.bf16.mxu1 %v5499_v49 }
 0xf8c   : > { %4902 = vmatpush3.bf16.msra.mxu0 %v5500_v50  ;;  %4924 = vmatpush3.bf16.msra.mxu1 %v5501_v29 }
 0xf8d   : > { %4903 = vmatprep.subr.bf16.mxu0 %v5502_v20  ;;  %4925 = vmatprep.subr.bf16.mxu1 %v5503_v51 }
 0xf90   : > { %4904 = vmatpush3.bf16.msra.mxu0 %v5504_v52  ;;  %4926 = vmatpush3.bf16.msra.mxu1 %v5505_v53 }
 0xf91   : > { %4905 = vmatprep.subr.bf16.mxu0 %v5506_v54  ;;  %4927 = vmatprep.subr.bf16.mxu1 %v5507_v55 }
 0xf94   : > { %4906 = vmatpush3.bf16.msra.mxu0 %v5508_v56  ;;  %4928 = vmatpush3.bf16.msra.mxu1 %v5509_v57  ;;  %v4672_v56 = vld [vmem:[%s6765_s13] ss:$0 sm:$0xff] }
 0xf95   : > { %4907 = vmatprep.subr.bf16.mxu0 %v5510_v58  ;;  %4929 = vmatprep.subr.bf16.mxu1 %v5511_v59 }
 0xf98   : > { %4908 = vmatpush3.bf16.msra.mxu0 %v5512_v60  ;;  %4930 = vmatpush3.bf16.msra.mxu1 %v5513_v61 }
 0xf99   : > { %4909 = vmatprep.subr.bf16.mxu0 %v5514_v63  ;;  %4931 = vmatprep.subr.bf16.mxu1 %v5515_v1 }
 0xf9c   : > { %4910 = vmatpush3.bf16.msra.mxu0 %v5516_v3  ;;  %4932 = vmatpush3.bf16.msra.mxu1 %v5517_v4 }
 0xf9d   : > { %4911 = vmatprep.subr.bf16.mxu0 %v5518_v5  ;;  %4933 = vmatprep.subr.bf16.mxu1 %v5519_v6 }
 0xfa0   : > { %4912 = vmatpush3.bf16.msra.mxu0 %v5520_v7  ;;  %4934 = vmatpush3.bf16.msra.mxu1 %v5521_v8 }
 0xfa1   : > { %4913 = vmatprep.subr.bf16.mxu0 %v5522_v9  ;;  %4935 = vmatprep.subr.bf16.mxu1 %v5523_v33 }
 0xfa4   : > { %4914 = vmatpush3.bf16.msra.mxu0 %v5524_v10  ;;  %4936 = vmatpush3.bf16.msra.mxu1 %v5525_v11  ;;  %v5526_v11 = vld [vmem:[#allocation5 + $0x168] ss:$12 sps:$4 sm:$0xff]  }
 0xfa5   : > { %5168 = vmatprep.subr.bf16.mxu1 %v5988_v32  ;;  %2727 = vmatprep.subr.bf16.mxu0 %v5528_v16 }
0x1047   : > { %v2112_v17 = vpop.f32.mrf.mxu0  ;;  %v2155_v18 = vpop.f32.mrf.mxu1 }
0x1048   : > { %v2113_v39 = vadd.f32 %v2112_v17, %v1901_v23  ;;  %v2156_v40 = vadd.f32 %v2155_v18, %v1909_v62  ;;  %v5529_v17 = vld [vmem:[#allocation5 + $0x170] ss:$12 sps:$4 sm:$0xff]  }
0x1049   : > { %v2114_v2 = vpop.f32.mrf.mxu0  ;;  %v2157_v24 = vpop.f32.mrf.mxu1 }
0x104a   : > { %v2115_v31 = vadd.f32 %v2114_v2, %v1905_v21  ;;  %v2158_v35 = vadd.f32 %v2157_v24, %v1913_v22  ;;  %v2164_v50 = vmax.f32 %v2113_v39, 0.0  ;;  %v2166_v29 = vmax.f32 %v2156_v40, 0.0  ;;  %v5532_v24 = vld [vmem:[#allocation5 + $0x154] ss:$12 sps:$4 sm:$0xff]   ;;  %v5540_v39 = vld [vmem:[#allocation5 + $0x124] ss:$12 sps:$4 sm:$0xff]  }
0x104b   : > { %v2116_v26 = vpop.f32.mrf.mxu0  ;;  %v2159_v28 = vpop.f32.mrf.mxu1  ;;  %v5541_v40 = vld [vmem:[#allocation5 + $0x128] ss:$12 sps:$4 sm:$0xff]  }
0x104c   : > { %v2117_v37 = vadd.f32 %v2116_v26, %v1901_v23  ;;  %v2160_v38 = vadd.f32 %v2159_v28, %v1909_v62  ;;  %v2165_v47 = vmax.f32 %v2115_v31, 0.0  ;;  %v2167_v48 = vmax.f32 %v2158_v35, 0.0  ;;  %v5530_v26 = vld [vmem:[#allocation5 + $0x150] ss:$12 sps:$4 sm:$0xff]   ;;  %v5533_v28 = vld [vmem:[#allocation5 + $0x158] ss:$12 sps:$4 sm:$0xff]  }
0x104d   : > { %v2118_v19 = vpop.f32.mrf.mxu0  ;;  %v2161_v30 = vpop.f32.mrf.mxu1  ;;  %v5536_v31 = vld [vmem:[#allocation5 + $0x13c] ss:$12 sps:$4 sm:$0xff]   ;;  %v5534_v35 = vld [vmem:[#allocation5 + $0x138] ss:$12 sps:$4 sm:$0xff]  }
0x104e   : > { %v2119_v25 = vadd.f32 %v2118_v19, %v1905_v21  ;;  %v2162_v43 = vadd.f32 %v2161_v30, %v1913_v22  ;;  %v2168_v45 = vmax.f32 %v2117_v37, 0.0  ;;  %v2170_v46 = vmax.f32 %v2160_v38, 0.0  ;;  %v5537_v37 = vld [vmem:[#allocation5 + $0x140] ss:$12 sps:$4 sm:$0xff]   ;;  %v5542_v30 = vld [vmem:[#allocation5 + $0x108] ss:$12 sps:$4 sm:$0xff]  }
0x104f   : > { %v5538_v38 = vld [vmem:[#allocation5 + $0x120] ss:$12 sps:$4 sm:$0xff]  }
0x1050   : > { %v2169_v27 = vmax.f32 %v2119_v25, 0.0  ;;  %v2171_v49 = vmax.f32 %v2162_v43, 0.0  ;;  %v2172_v52 = vpack.c.bf16 %v2168_v45, %v2164_v50  ;;  %v2174_v53 = vpack.c.bf16 %v2170_v46, %v2166_v29  ;;  %v5544_v19 = vld [vmem:[#allocation5 + $0x10c] ss:$12 sps:$4 sm:$0xff]   ;;  %v5545_v25 = vld [vmem:[#allocation5 + $0x110] ss:$12 sps:$4 sm:$0xff]  }
0x1051   : > { %v5548_v43 = vld [vmem:[#allocation5 + $0xf4] ss:$12 sps:$4 sm:$0xff]   ;;  %v5546_v45 = vld [vmem:[#allocation5 + $0xf0] ss:$12 sps:$4 sm:$0xff]   ;;  %v5549_v46 = vld [vmem:[#allocation5 + $0xf8] ss:$12 sps:$4 sm:$0xff]  }
0x1052   : > { %v2173_v20 = vpack.c.bf16 %v2169_v27, %v2165_v47  ;;  %v2175_v51 = vpack.c.bf16 %v2171_v49, %v2167_v48  ;;  %v5552_v47 = vld [vmem:[#allocation5 + $0xdc] ss:$12 sps:$4 sm:$0xff]   ;;  %v5550_v48 = vld [vmem:[#allocation5 + $0xd8] ss:$12 sps:$4 sm:$0xff]   ;;  %v5553_v27 = vld [vmem:[#allocation5 + $0xe0] ss:$12 sps:$4 sm:$0xff]  }
0x1053   : > { %v5556_v49 = vld [vmem:[#allocation5 + $0xc4] ss:$12 sps:$4 sm:$0xff]   ;;  %v5554_v50 = vld [vmem:[#allocation5 + $0xc0] ss:$12 sps:$4 sm:$0xff]   ;;  %v5557_v29 = vld [vmem:[#allocation5 + $0xc8] ss:$12 sps:$4 sm:$0xff]  }
0x1054   : > { %2471 = vmatprep.mubr.bf16.mxu0 %v2173_v20  ;;  %2512 = vmatprep.mubr.bf16.mxu1 %v2175_v51 }
0x1055   : > { %2472 = vmatmul.mubr.bf16.vlgmr.msra.gmra.mxu0 %v2172_v52  ;;  %2513 = vmatmul.mubr.bf16.vlgmr.msra.gmra.mxu1 %v2174_v53 }
0x1056   : > { %2759 = vmatprep.mubr.bf16.mxu0 %v5986_v0  ;;  %5184 = vmatprep.mubr.msk.bf16.mxu1 %vm5989_vm2, %v5988_v32 }
0x1057   : > { %5169 = vmatpush3.bf16.msra.mxu1 %v5529_v17  ;;  %2728 = vmatpush1.bf16.msra.mxu0 %v5526_v11 }
0x1058   : > { %5170 = vmatprep.subr.bf16.mxu1 %v5988_v32  ;;  %2729 = vmatprep.subr.bf16.mxu0 %v5532_v24 }
0x105b   : > { %2730 = vmatpush1.bf16.msra.mxu0 %v5530_v26  ;;  %5171 = vmatpush3.bf16.msra.mxu1 %v5533_v28 }
0x105c   : > { %5172 = vmatprep.subr.bf16.mxu1 %v5988_v32  ;;  %2731 = vmatprep.subr.bf16.mxu0 %v5536_v31 }
0x105f   : > { %2732 = vmatpush1.bf16.msra.mxu0 %v5534_v35  ;;  %5173 = vmatpush3.bf16.msra.mxu1 %v5537_v37 }
0x1060   : > { %5174 = vmatprep.subr.bf16.mxu1 %v5988_v32  ;;  %2733 = vmatprep.subr.bf16.mxu0 %v5540_v39 }
0x1063   : > { %2734 = vmatpush1.bf16.msra.mxu0 %v5538_v38  ;;  %5175 = vmatpush3.bf16.msra.mxu1 %v5541_v40 }
0x1064   : > { %2735 = vmatprep.subr.bf16.mxu0 %v5544_v19  ;;  %5176 = vmatprep.subr.bf16.mxu1 %v5988_v32 }
0x1067   : > { %2736 = vmatpush1.bf16.msra.mxu0 %v5542_v30  ;;  %5177 = vmatpush3.bf16.msra.mxu1 %v5545_v25 }
0x1068   : > { %2737 = vmatprep.subr.bf16.mxu0 %v5548_v43  ;;  %5178 = vmatprep.subr.bf16.mxu1 %v5988_v32 }
0x106b   : > { %2738 = vmatpush1.bf16.msra.mxu0 %v5546_v45  ;;  %5179 = vmatpush3.bf16.msra.mxu1 %v5549_v46 }
0x106c   : > { %2739 = vmatprep.subr.bf16.mxu0 %v5552_v47  ;;  %5180 = vmatprep.subr.bf16.mxu1 %v5988_v32 }
0x106f   : > { %2740 = vmatpush1.bf16.msra.mxu0 %v5550_v48  ;;  %5181 = vmatpush3.bf16.msra.mxu1 %v5553_v27 }
0x1070   : > { %2741 = vmatprep.subr.bf16.mxu0 %v5556_v49  ;;  %5182 = vmatprep.subr.bf16.mxu1 %v5988_v32 }
0x1073   : > { %2742 = vmatpush1.bf16.msra.mxu0 %v5554_v50  ;;  %5183 = vmatpush3.bf16.msra.mxu1 %v5557_v29 }
0x1074   : > { %5194 = vmatprep.subr.bf16.mxu1 %v5988_v32  ;;  %5188 = vmatprep.subr.bf16.mxu0 %v5988_v32 }
0x1115   : > { %v4915_v54 = vpop.f32.mrf.mxu0  ;;  %v4937_v55 = vpop.f32.mrf.mxu1 }
0x1117   : > { %v4916_v57 = vpop.f32.mrf.mxu0  ;;  %v4938_v58 = vpop.f32.mrf.mxu1 }
0x1118   : > { %v4917_v59 = vadd.f32 %v4916_v57, %v4915_v54  ;;  %v4939_v1 = vadd.f32 %v4938_v58, %v4937_v55  ;;  %v4707_v58 = vld [vmem:[%s6811_s3 + $0x1] ss:$0 sm:$0xff]  ;;  %s5900_s3 = scalar_lea.vmem %s5899_s29, 512 }
0x1119   : > { %v4918_v60 = vpop.f32.mrf.mxu0  ;;  %v4940_v61 = vpop.f32.mrf.mxu1 }
0x111a   : > { %v2474_v63 = vadd.f32 %v4917_v59, %v4672_v56 }
0x111b   : > { %v4919_v3 = vpop.f32.mrf.mxu0  ;;  %v4941_v4 = vpop.f32.mrf.mxu1 }
0x111c   : > { %v2515_v5 = vadd.f32 %v4939_v1, %v2474_v63  ;;  %v4920_v6 = vadd.f32 %v4919_v3, %v4918_v60  ;;  %v4942_v8 = vadd.f32 %v4941_v4, %v4940_v61  ;;  %v4708_v63 = vld [vmem:[%s6756_s4 + $0x1] ss:$0 sm:$0xff] }
0x111e   : > { %v2477_v7 = vadd.f32 %v4920_v6, %v4672_v56  ;;  %v6478_v9 = vadd.f32 %v2515_v5, %v6430_v42 }
0x1120   : > { %v2518_v33 = vadd.f32 %v4942_v8, %v2477_v7  ;;  %2527 = vadd.xlane.f32.xlu1 %v6478_v9 }
0x1122   : > { %v6482_v10 = vadd.f32 %v2518_v33, %v6434_v44 }
0x1124   : > { %2529 = vadd.xlane.f32.xlu0 %v6482_v10 }
0x11a9   : > { %v2528_v18 = vpop.xlane.xlu1 %2527 }
0x11aa   : > { %v2531_v21 = vmul.f32 0.0078125, %v2528_v18 }
0x11ac   : > { %v6487_v42 = vsub.f32 %v6478_v9, %v2531_v21 }
0x11ad   : > { %v2530_v22 = vpop.xlane.xlu0 %2529 }
0x11ae   : > { %v2532_v23 = vmul.f32 0.0078125, %v2530_v22  ;;  %v2535_v44 = vmul.f32 %v6487_v42, %v6487_v42 }
0x11b0   : > { %v6492_v62 = vsub.f32 %v6482_v10, %v2532_v23  ;;  %2537 = vadd.xlane.f32.xlu0 %v2535_v44 }
0x11b2   : > { %v2536_v2 = vmul.f32 %v6492_v62, %v6492_v62 }
0x11b4   : > { %2539 = vadd.xlane.f32.xlu0 %v2536_v2 }
0x1239   : > { %v2538_v20 = vpop.xlane.xlu0 %2537 }
0x123a   : > { %v2541_v51 = vmul.f32 0.0078125, %v2538_v20 }
0x123c   : > { %v2543_v52 = vadd.f32 1e-05, %v2541_v51 }
0x123d   : > { %v2540_v53 = vpop.xlane.xlu0 %2539 }
0x123e   : > { %5694 = vrsqrt.f32 %v2543_v52  ;;  %v2542_v54 = vmul.f32 0.0078125, %v2540_v53 }
0x1240   : > { %v2544_v55 = vadd.f32 1e-05, %v2542_v54 }
0x1242   : > { %5696 = vrsqrt.f32 %v2544_v55 }
0x124b   : > { %v5695_v56 = vpop.eup %5694 }
0x124c   : > { %v2547_v57 = vmul.f32 %v5695_v56, %v6487_v42 }
0x124e   : > { %v2555_v61 = vmul.f32 %v4707_v58, %v2547_v57 }
0x124f   : > { %v5697_v59 = vpop.eup %5696 }
0x1250   : > { %v2548_v60 = vmul.f32 %v5697_v59, %v6492_v62  ;;  %v2563_v3 = vadd.f32 %v4708_v63, %v2555_v61 }
0x1252   : > { %v2556_v1 = vmul.f32 %v4707_v58, %v2548_v60 }
0x1254   : > { %v2564_v4 = vadd.f32 %v4708_v63, %v2556_v1 }
0x1256   : > { %v2565_v5 = vpack.c.bf16 %v2564_v4, %v2563_v3 }
0x1258   : > { %2760 = vmatmul.mubr.bf16.vlgmr.msra.gmra.mxu0 %v2565_v5  ;;  %5185 = vmatmul.mubr.bf16.vlgmr.msra.gmra.mxu1 %v2565_v5 }
0x1259   : > { %5190 = vmatprep.mubr.msk.bf16.mxu0 %vm5989_vm2, %v5988_v32  ;;  %5196 = vmatprep.mubr.msk.bf16.mxu1 %vm5989_vm2, %v5988_v32 }
0x1318   : > { %v2761_v6 = vpop.f32.mrf.mxu0  ;;  %v2804_v7 = vpop.f32.mrf.mxu1 }
0x131a   : > { %v2763_v8 = vpop.f32.mrf.mxu0  ;;  %v5186_v33 = vpop.f32.mrf.mxu1 }
0x131c   : > { %v2765_v11 = vpop.f32.mrf.mxu0  ;;  %v2807_v16 = vpop.f32.mrf.mxu1 }
0x131d   : > { %v6516_v17 = vpack.c.bf16 %v2807_v16, %v2804_v7  ;;  %v6526_v23 = vpack.c.bf16 %v2765_v11, %v2761_v6 }
0x131e   : > { %v2767_v18 = vpop.f32.mrf.mxu0  ;;  %v5187_v21 = vpop.f32.mrf.mxu1 }
0x131f   : > { %v6518_v42 = vpack.c.bf16 %v2767_v18, %v2763_v8  ;;  %5195 = vmatpush3.bf16.msra.mxu1 %v6516_v17 }
0x1320   : > { %5206 = vmatprep.subr.bf16.mxu1 %v5988_v32 }
0x1321   : > { %2954 = vrot.lane.b32.xlu0 %v6518_v42, %s5990_s24  ;;  %v2835_v22 = vsel %vm1082_vm3, %v6518_v42, 0 }
0x1322   : > { %5189 = vmatpush3.bf16.xpose.msra.mxu0 %v2835_v22 }
0x1323   : > { %5200 = vmatprep.subr.bf16.mxu0 %v5988_v32 }
0x1325   : > { %2951 = vrot.lane.b32.xlu0 %v6526_v23, %s5990_s24 }
0x1329   : > { %5191 = vmatmul.mubr.msk.bf16.vlgmr.msra.gmra.mxu0 %vm1082_vm3, %v6526_v23 }
0x132a   : > { %5202 = vmatprep.mubr.msk.bf16.mxu0 %vm5989_vm2, %v5988_v32 }
0x1393   : > { %v2955_v44 = vpop.permute.xlu0 %2954 }
0x1394   : > { %v2960_v62 = vsel %vm1082_vm3, %v2955_v44, 0  ;;  %v5560_v44 = vld [vmem:[#allocation7 + $0x58] sm:$0xff]  }
0x1395   : > { %5201 = vmatpush3.bf16.xpose.msra.mxu0 %v2960_v62 }
0x1396   : > { %5212 = vmatprep.subr.bf16.mxu0 %v5988_v32 }
0x1397   : > { %v2952_v2 = vpop.permute.xlu0 %2951 }
0x139c   : > { %5203 = vmatmul.mubr.msk.bf16.vlgmr.msra.gmra.mxu0 %vm1082_vm3, %v2952_v2 }
0x139d   : > { %5216 = vmatprep.mubr.msk.bf16.mxu0 %vm5989_vm2, %v5988_v32  ;;  %5213 = vmatpush3.bf16.msra.mxu0 %v5560_v44 }
0x139e   : > { %5214 = vmatprep.subr.bf16.mxu0 %v5988_v32 }
0x13e9   : > { %v2871_v24 = vpop.f32.mrf.mxu0 }
0x13ea   : > { %v2878_v26 = vmul.f32 0.17677669, %v2871_v24 }
0x13eb   : > { %v5192_v28 = vpop.f32.mrf.mxu0 }
0x13ec   : > { %v2880_v31 = vsel %vm6308_vm4, %v2878_v26, -inf }
0x13ed   : > { %v2874_v35 = vpop.f32.mrf.mxu0  ;;  %v2882_v37 = vsel %vm1134_vm5, %v2880_v31, -inf }
0x13ee   : > { %v2879_v38 = vmul.f32 0.17677669, %v2874_v35  ;;  %2883 = vmax.xlane.f32.xlu1 %v2882_v37  ;;  %v5558_v37 = vld [vmem:[#allocation7 + $0x48] sm:$0xff]  }
0x13ef   : > { %v5193_v39 = vpop.f32.mrf.mxu0 }
0x13f0   : > { %v2881_v40 = vsel %vm6315_vm6, %v2879_v38, -inf  ;;  %v5559_v39 = vld [vmem:[#allocation7 + $0x40] sm:$0xff]  }
0x13f1   : > { %v2885_v19 = vsel %vm1134_vm5, %v2881_v40, -inf }
0x13f2   : > { %2886 = vmax.xlane.f32.xlu0 %v2885_v19 }
0x1408   : > { %3193 = vrot.lane.b32.xlu0 %v6518_v42, %s5991_s19 }
0x145c   : > { %v2996_v30 = vpop.f32.mrf.mxu0 }
0x145d   : > { %v3003_v25 = vmul.f32 0.17677669, %v2996_v30 }
0x145e   : > { %v5204_v43 = vpop.f32.mrf.mxu0 }
0x145f   : > { %v3005_v45 = vsel %vm6308_vm4, %v3003_v25, -inf }
0x1460   : > { %v2999_v46 = vpop.f32.mrf.mxu0  ;;  %v3007_v47 = vsel %vm1134_vm5, %v3005_v45, -inf }
0x1461   : > { %v3004_v48 = vmul.f32 0.17677669, %v2999_v46  ;;  %3008 = vmax.xlane.f32.xlu1 %v3007_v47 }
0x1462   : > { %v5205_v27 = vpop.f32.mrf.mxu0 }
0x1463   : > { %v3006_v49 = vsel %vm6315_vm6, %v3004_v48, -inf }
0x1464   : > { %v3010_v50 = vsel %vm1134_vm5, %v3006_v49, -inf }
0x1465   : > { %3011 = vmax.xlane.f32.xlu1 %v3010_v50 }
0x1477   : > { %v2884_v29 = vpop.xlane.xlu1 %2883 }
0x1478   : > { %v2888_v20 = vsub.f32 %v2880_v31, %v2884_v29 }
0x147a   : > { %v2890_v51 = vmul.f32 1.442695, %v2888_v20 }
0x147b   : > { %v2887_v52 = vpop.xlane.xlu0 %2886 }
0x147c   : > { %5698 = vpow2.f32 %v2890_v51  ;;  %v2889_v53 = vsub.f32 %v2881_v40, %v2887_v52  ;;  %v5561_v40 = vld [vmem:[#allocation7 + $0x50] sm:$0xff]  }
0x147d   : > { %5215 = vmatpush3.bf16.msra.mxu0 %v5561_v40 }
0x147e   : > { %v2892_v54 = vmul.f32 1.442695, %v2889_v53  ;;  %5228 = vmatprep.subr.bf16.mxu0 %v5988_v32 }
0x147f   : > { %v3194_v48 = vpop.permute.xlu0 %3193 }
0x1480   : > { %5700 = vpow2.f32 %v2892_v54  ;;  %v3199_v29 = vsel %vm1082_vm3, %v3194_v48, 0 }
0x1489   : > { %v5699_v55 = vpop.eup %5698 }
0x148a   : > { %v2894_v56 = vsel %vm1134_vm5, %v5699_v55, 0.0 }
0x148b   : > { %2895 = vadd.xlane.f32.xlu1 %v2894_v56 }
0x148d   : > { %v5701_v57 = vpop.eup %5700 }
0x148e   : > { %v2897_v58 = vsel %vm1134_vm5, %v5701_v57, 0.0 }
0x148f   : > { %2898 = vadd.xlane.f32.xlu1 %v2897_v58 }
0x14ea   : > { %v3009_v59 = vpop.xlane.xlu1 %3008 }
0x14eb   : > { %v3013_v60 = vsub.f32 %v3005_v45, %v3009_v59 }
0x14ed   : > { %v3015_v61 = vmul.f32 1.442695, %v3013_v60 }
0x14ee   : > { %v3012_v63 = vpop.xlane.xlu1 %3011 }
0x14ef   : > { %5702 = vpow2.f32 %v3015_v61  ;;  %v3014_v1 = vsub.f32 %v3006_v49, %v3012_v63 }
0x14f1   : > { %v3017_v3 = vmul.f32 1.442695, %v3014_v1 }
0x14f3   : > { %5704 = vpow2.f32 %v3017_v3 }
0x14fc   : > { %v5703_v4 = vpop.eup %5702 }
0x14fd   : > { %v3019_v5 = vsel %vm1134_vm5, %v5703_v4, 0.0 }
0x14fe   : > { %3020 = vadd.xlane.f32.xlu1 %v3019_v5 }
0x1500   : > { %v5705_v6 = vpop.eup %5704 }
0x1501   : > { %v3022_v7 = vsel %vm1134_vm5, %v5705_v6, 0.0 }
0x1502   : > { %3023 = vadd.xlane.f32.xlu1 %v3022_v7 }
0x1513   : > { %3031 = vrot.lane.b32.xlu1 %v6516_v17, %s5990_s24  ;;  %s6710_s24 = scalar_lea.hbm %s6817_s30, %s4843_s22 }
0x1514   : > { %v2896_v8 = vpop.xlane.xlu1 %2895 }
0x1515   : > { %5706 = vrcp.f32 %v2896_v8 }
0x1517   : > { %3191 = vrot.lane.b32.xlu1 %v6526_v23, %s5991_s19 }
0x1518   : > { %v2899_v33 = vpop.xlane.xlu1 %2898 }
0x1519   : > { %5708 = vrcp.f32 %v2899_v33 }
0x1522   : > { %v5707_v11 = vpop.eup %5706 }
0x1523   : > { %v2902_v18 = vmul.f32 %v5707_v11, %v5699_v55 }
0x1526   : > { %v5709_v16 = vpop.eup %5708 }
0x1527   : > { %v2903_v21 = vmul.f32 %v5709_v16, %v5701_v57 }
0x1529   : > { %v2904_v22 = vpack.c.bf16 %v2903_v21, %v2902_v18 }
0x152b   : > { %5197 = vmatmul.mubr.msk.bf16.vlgmr.msra.gmra.mxu1 %vm1134_vm5, %v2904_v22 }
0x152c   : > { %5208 = vmatprep.mubr.msk.bf16.mxu1 %vm5989_vm2, %v5988_v32 }
0x1587   : > { %v3021_v62 = vpop.xlane.xlu1 %3020 }
0x1588   : > { %5710 = vrcp.f32 %v3021_v62 }
0x158b   : > { %v3024_v2 = vpop.xlane.xlu1 %3023 }
0x158c   : > { %5712 = vrcp.f32 %v3024_v2 }
0x158f   : > { %v3032_v24 = vpop.permute.xlu1 %3031 }
0x1590   : > { %5207 = vmatpush3.bf16.msra.mxu1 %v3032_v24 }
0x1591   : > { %5220 = vmatprep.subr.bf16.mxu1 %v5988_v32 }
0x1593   : > { %v3192_v20 = vpop.permute.xlu1 %3191 }
0x1595   : > { %v5711_v26 = vpop.eup %5710 }
0x1596   : > { %v3027_v31 = vmul.f32 %v5711_v26, %v5703_v4 }
0x1599   : > { %v5713_v28 = vpop.eup %5712 }
0x159a   : > { %v3028_v35 = vmul.f32 %v5713_v28, %v5705_v6 }
0x159c   : > { %v3029_v38 = vpack.c.bf16 %v3028_v35, %v3027_v31 }
0x159e   : > { %5209 = vmatmul.mubr.msk.bf16.vlgmr.msra.gmra.mxu1 %vm1134_vm5, %v3029_v38 }
0x159f   : > { %5221 = vmatpush3.bf16.msra.mxu1 %v5558_v37  ;;  %5224 = vmatprep.mubr.msk.bf16.mxu1 %vm5989_vm2, %v5988_v32 }
0x15a0   : > { %5222 = vmatprep.subr.bf16.mxu1 %v5988_v32 }
0x15a3   : > { %5223 = vmatpush3.bf16.msra.mxu1 %v5559_v39 }
0x15a4   : > { %5234 = vmatprep.subr.bf16.mxu1 %v5988_v32 }
0x15eb   : > { %v2942_v19 = vpop.f32.mrf.mxu1 }
0x15ed   : > { %v5198_v30 = vpop.f32.mrf.mxu1 }
0x15ee   : > { %v5563_v30 = vld [vmem:[#allocation7 + $0x60] sm:$0xff]  }
0x15ef   : > { %v2945_v25 = vpop.f32.mrf.mxu1 }
0x15f0   : > { %v2949_v43 = vpack.c.bf16 %v2945_v25, %v2942_v19 }
0x15f1   : > { %v5199_v45 = vpop.f32.mrf.mxu1 }
0x15f2   : > { %5225 = vmatmul.mubr.msk.bf16.vlgmr.msra.gmra.mxu1 %vm1082_vm3, %v2949_v43 }
0x15f3   : > { %5236 = vmatprep.mubr.msk.bf16.mxu1 %vm5989_vm2, %v5988_v32 }
0x165e   : > { %v3071_v46 = vpop.f32.mrf.mxu1 }
0x1660   : > { %v5210_v47 = vpop.f32.mrf.mxu1 }
0x1662   : > { %v3074_v27 = vpop.f32.mrf.mxu1 }
0x1663   : > { %v3078_v49 = vpack.c.bf16 %v3074_v27, %v3071_v46 }
0x1664   : > { %v5211_v50 = vpop.f32.mrf.mxu1 }
0x1665   : > { %5217 = vmatmul.mubr.msk.bf16.vlgmr.msra.gmra.mxu0 %vm1082_vm3, %v3078_v49 }
0x1666   : > { %5229 = vmatpush3.bf16.xpose.msra.mxu0 %v3199_v29  ;;  %5230 = vmatprep.mubr.msk.bf16.mxu0 %vm5989_vm2, %v5988_v32 }
0x1667   : > { %5240 = vmatprep.subr.bf16.mxu0 %v5988_v32 }
0x166d   : > { %5231 = vmatmul.mubr.msk.bf16.vlgmr.msra.gmra.mxu0 %vm1082_vm3, %v3192_v20 }
0x166e   : > { %5244 = vmatprep.mubr.msk.bf16.mxu0 %vm5989_vm2, %v5988_v32 }
0x16b2   : > { %v6584_v51 = vpop.f32.mrf.mxu1 }
0x16b4   : > { %v5226_v52 = vpop.f32.mrf.mxu1 }
0x16b6   : > { %v6586_v53 = vpop.f32.mrf.mxu1 }
0x16b8   : > { %v5227_v54 = vpop.f32.mrf.mxu1 }
0x1725   : > { %v6588_v55 = vpop.f32.mrf.mxu0 }
0x1726   : > { %v3185_v41 = vadd.f32 %v6584_v51, %v6588_v55  ;;  %v5564_v55 = vld [vmem:[#allocation7 + $0x78] sm:$0xff]  }
0x1727   : > { %v5218_v56 = vpop.f32.mrf.mxu0 }
0x1729   : > { %v6590_v57 = vpop.f32.mrf.mxu0 }
0x172b   : > { %v5219_v58 = vpop.f32.mrf.mxu0 }
0x172d   : > { %v3235_v59 = vpop.f32.mrf.mxu0 }
0x172e   : > { %v3242_v60 = vmul.f32 0.17677669, %v3235_v59 }
0x172f   : > { %v5232_v61 = vpop.f32.mrf.mxu0 }
0x1730   : > { %v3244_v63 = vsel %vm6308_vm4, %v3242_v60, -inf }
0x1731   : > { %v3238_v1 = vpop.f32.mrf.mxu0  ;;  %v3246_v3 = vsel %vm1134_vm5, %v3244_v63, -inf }
0x1732   : > { %v3243_v4 = vmul.f32 0.17677669, %v3238_v1  ;;  %3247 = vmax.xlane.f32.xlu1 %v3246_v3 }
0x1733   : > { %v5233_v5 = vpop.f32.mrf.mxu0 }
0x1734   : > { %v3245_v6 = vsel %vm6315_vm6, %v3243_v4, -inf }
0x1735   : > { %v3249_v7 = vsel %vm1134_vm5, %v3245_v6, -inf }
0x1736   : > { %3250 = vmax.xlane.f32.xlu0 %v3249_v7 }
0x17bb   : > { %v3248_v8 = vpop.xlane.xlu1 %3247 }
0x17bc   : > { %v3252_v33 = vsub.f32 %v3244_v63, %v3248_v8 }
0x17be   : > { %v3254_v11 = vmul.f32 1.442695, %v3252_v33 }
0x17bf   : > { %v3251_v16 = vpop.xlane.xlu0 %3250 }
0x17c0   : > { %5714 = vpow2.f32 %v3254_v11  ;;  %v3253_v18 = vsub.f32 %v3245_v6, %v3251_v16  ;;  %v3188_v11 = vadd.f32 %v6586_v53, %v6590_v57  ;;  %v5565_v53 = vld [vmem:[#allocation7 + $0x70] sm:$0xff]  }
0x17c2   : > { %v3256_v21 = vmul.f32 1.442695, %v3253_v18 }
0x17c4   : > { %5716 = vpow2.f32 %v3256_v21 }
0x17cd   : > { %v5715_v22 = vpop.eup %5714 }
0x17ce   : > { %v3258_v44 = vsel %vm1134_vm5, %v5715_v22, 0.0 }
0x17cf   : > { %3259 = vadd.xlane.f32.xlu1 %v3258_v44 }
0x17d1   : > { %v5717_v62 = vpop.eup %5716 }
0x17d2   : > { %v3261_v2 = vsel %vm1134_vm5, %v5717_v62, 0.0 }
0x17d3   : > { %3262 = vadd.xlane.f32.xlu0 %v3261_v2 }
0x17e0   : > { %3269 = vrot.lane.b32.xlu1 %v6516_v17, %s5991_s19  ;;  %s654_s19 = sand.u32 1, %s5962_s28  }
0x17e1   : > { %s6712_s20 = scalar_lea.sflag [#allocation4], %s654_s19 }
0x17e4   : > { %3375 = vrot.lane.b32.xlu1 %v6526_v23, %s5992_s1  ;;  %v5562_v23 = vld [vmem:[#allocation7 + $0x68] sm:$0xff]  }
0x17e5   : > { %5241 = vmatpush3.bf16.msra.mxu0 %v5562_v23 }
0x17e6   : > { %5242 = vmatprep.subr.bf16.mxu0 %v5988_v32 }
0x17e9   : > { %3377 = vrot.lane.b32.xlu0 %v6518_v42, %s5992_s1  ;;  %5243 = vmatpush3.bf16.msra.mxu0 %v5563_v30 }
0x17ea   : > { %5254 = vmatprep.subr.bf16.mxu0 %v5988_v32 }
0x1858   : > { %v3260_v24 = vpop.xlane.xlu1 %3259 }
0x1859   : > { %5718 = vrcp.f32 %v3260_v24 }
0x185c   : > { %v3270_v26 = vpop.permute.xlu1 %3269  ;;  %v3263_v28 = vpop.xlane.xlu0 %3262 }
0x185d   : > { %5720 = vrcp.f32 %v3263_v28  ;;  %5235 = vmatpush3.bf16.msra.mxu1 %v3270_v26 }
0x185e   : > { %5248 = vmatprep.subr.bf16.mxu1 %v5988_v32 }
0x1860   : > { %v3378_v39 = vpop.permute.xlu0 %3377  ;;  %v3376_v42 = vpop.permute.xlu1 %3375 }
0x1861   : > { %v3383_v19 = vsel %vm1082_vm3, %v3378_v39, 0 }
0x1866   : > { %v5719_v31 = vpop.eup %5718 }
0x1867   : > { %v3266_v37 = vmul.f32 %v5719_v31, %v5715_v22 }
0x186a   : > { %v5721_v35 = vpop.eup %5720 }
0x186b   : > { %v3267_v38 = vmul.f32 %v5721_v35, %v5717_v62 }
0x186d   : > { %v3268_v40 = vpack.c.bf16 %v3267_v38, %v3266_v37 }
0x186f   : > { %5237 = vmatmul.mubr.msk.bf16.vlgmr.msra.gmra.mxu1 %vm1134_vm5, %v3268_v40 }
0x1870   : > { %5249 = vmatpush3.bf16.xpose.msra.mxu1 %v3383_v19  ;;  %5250 = vmatprep.mubr.msk.bf16.mxu1 %vm5989_vm2, %v5988_v32  ;;  %v4754_v19 = vld [vmem:[%s6759_s7 + $0x1] ss:$0 sm:$0xff] }
0x1871   : > { %5260 = vmatprep.subr.bf16.mxu1 %v5988_v32 }
0x1877   : > { %5251 = vmatmul.mubr.msk.bf16.vlgmr.msra.gmra.mxu1 %vm1082_vm3, %v3376_v42 }
0x1878   : > { %5264 = vmatprep.mubr.msk.bf16.mxu1 %vm5989_vm2, %v5988_v32  ;;  %5261 = vmatpush3.bf16.msra.mxu1 %v5564_v55  ;;  %v5614_v55 = vld [vmem:[#allocation10 + $0x178] sm:$0xff]  }
0x1879   : > { %5262 = vmatprep.subr.bf16.mxu1 %v5988_v32 }
0x187c   : > { %5263 = vmatpush3.bf16.msra.mxu1 %v5565_v53  ;;  %v5615_v53 = vld [vmem:[#allocation10 + $0x1f8] sm:$0xff]  }
0x192f   : > { %v3309_v25 = vpop.f32.mrf.mxu1 }
0x1931   : > { %v5238_v43 = vpop.f32.mrf.mxu1 }
0x1933   : > { %v3312_v45 = vpop.f32.mrf.mxu1 }
0x1934   : > { %v3316_v46 = vpack.c.bf16 %v3312_v45, %v3309_v25 }
0x1935   : > { %v5239_v47 = vpop.f32.mrf.mxu1 }
0x1936   : > { %5245 = vmatmul.mubr.msk.bf16.vlgmr.msra.gmra.mxu0 %vm1082_vm3, %v3316_v46  ;;  %v5568_v47 = vld [vmem:[#allocation8 + $0x1e4] ss:$16 sps:$4 sm:$0xff]  }
0x1937   : > { %v3419_v48 = vpop.f32.mrf.mxu1  ;;  %5256 = vmatprep.mubr.msk.bf16.mxu0 %vm5989_vm2, %v5988_v32 }
0x1938   : > { %v3426_v27 = vmul.f32 0.17677669, %v3419_v48  ;;  %v5569_v48 = vld [vmem:[#allocation8 + $0x1e8] ss:$16 sps:$4 sm:$0xff]  }
0x1939   : > { %v5252_v49 = vpop.f32.mrf.mxu1 }
0x193a   : > { %v3428_v50 = vsel %vm6308_vm4, %v3426_v27, -inf  ;;  %v5571_v27 = vld [vmem:[#allocation8 + $0x1ec] ss:$16 sps:$4 sm:$0xff]  }
0x193b   : > { %v3422_v29 = vpop.f32.mrf.mxu1  ;;  %v3430_v20 = vsel %vm1134_vm5, %v3428_v50, -inf  ;;  %3873 = vmatprep.subr.bf16.mxu1 %v5571_v27  ;;  %v5617_v27 = vld [vmem:[#allocation10 + $0x1b8] sm:$0xff]  }
0x193c   : > { %v3427_v52 = vmul.f32 0.17677669, %v3422_v29  ;;  %3431 = vmax.xlane.f32.xlu1 %v3430_v20 }
0x193d   : > { %v5253_v54 = vpop.f32.mrf.mxu1 }
0x193e   : > { %v3429_v56 = vsel %vm6315_vm6, %v3427_v52, -inf }
0x193f   : > { %v3433_v58 = vsel %vm1134_vm5, %v3429_v56, -inf }
0x1940   : > { %3434 = vmax.xlane.f32.xlu0 %v3433_v58  ;;  %v5577_v58 = vld [vmem:[#allocation8 + $0x1cc] ss:$16 sps:$4 sm:$0xff]  }
0x19c5   : > { %v3432_v59 = vpop.xlane.xlu1 %3431 }
0x19c6   : > { %v3436_v60 = vsub.f32 %v3428_v50, %v3432_v59  ;;  %v5572_v59 = vld [vmem:[#allocation8 + $0x1c0] ss:$16 sps:$4 sm:$0xff]  }
0x19c8   : > { %v3438_v61 = vmul.f32 1.442695, %v3436_v60  ;;  %v5575_v60 = vld [vmem:[#allocation8 + $0x1c8] ss:$16 sps:$4 sm:$0xff]  }
0x19c9   : > { %v3435_v63 = vpop.xlane.xlu0 %3434 }
0x19ca   : > { %5722 = vpow2.f32 %v3438_v61  ;;  %v3437_v1 = vsub.f32 %v3429_v56, %v3435_v63  ;;  %v5574_v56 = vld [vmem:[#allocation8 + $0x1c4] ss:$16 sps:$4 sm:$0xff]   ;;  %v5583_v63 = vld [vmem:[#allocation8 + $0x1ac] ss:$16 sps:$4 sm:$0xff]  }
0x19cb   : > { %v5580_v61 = vld [vmem:[#allocation8 + $0x1a4] ss:$16 sps:$4 sm:$0xff]  }
0x19cc   : > { %v3440_v36 = vmul.f32 1.442695, %v3437_v1  ;;  %v5578_v1 = vld [vmem:[#allocation8 + $0x1a0] ss:$16 sps:$4 sm:$0xff]  }
0x19ce   : > { %5724 = vpow2.f32 %v3440_v36  ;;  %v5581_v36 = vld [vmem:[#allocation8 + $0x1a8] ss:$16 sps:$4 sm:$0xff]  }
0x19d7   : > { %v5723_v3 = vpop.eup %5722 }
0x19d8   : > { %v3442_v4 = vsel %vm1134_vm5, %v5723_v3, 0.0 }
0x19d9   : > { %3443 = vadd.xlane.f32.xlu0 %v3442_v4  ;;  %v5586_v4 = vld [vmem:[#allocation8 + $0x184] ss:$16 sps:$4 sm:$0xff]  }
0x19db   : > { %v5725_v5 = vpop.eup %5724 }
0x19dc   : > { %v3445_v6 = vsel %vm1134_vm5, %v5725_v5, 0.0 }
0x19dd   : > { %3446 = vadd.xlane.f32.xlu1 %v3445_v6  ;;  %v5589_v6 = vld [vmem:[#allocation8 + $0x18c] ss:$16 sps:$4 sm:$0xff]  }
0x19ef   : > { %3453 = vrot.lane.b32.xlu0 %v6516_v17, %s5992_s1  ;;  %s4584_s1 = sshll.u32 %s654_s19, 4 }
0x19f0   : > { %s656_s27 = scalar_lea.vmem [#allocation13], %s4584_s1 }
0x19f1   : > { %s4446_s25 = sshll.u32 %s656_s27, 4  ;;  %s6705_s25 = int_to_ptr.vmem [resolvable:$true] %s4446_s25 }
0x19f2   : > { %s5894_s1 = scalar_lea.vmem %s6705_s25, 256  ;;  %p5901_p7 = scmp.lt.s32.totalorder %s6705_s25, %s5899_s29 }
0x19f3   : > { %p5895_p9 = scmp.ne.s32.totalorder %s6705_s25, %s5894_s1  ;;  %p5902_p13 = scmp.lt.s32.totalorder %s5900_s3, %s5894_s1 }
0x19f5   : > { %p5896_p6 = pnand %p5895_p9, %p6819_p4  ;;  %p5903_p8 = por %p5902_p13, %p5901_p7 }
0x19f6   : > { %v3366_v7 = vpop.f32.mrf.mxu0 }
0x19f7   : > { %v3373_v8 = vadd.f32 %v3366_v7, %v3185_v41  ;;  %v5592_v41 = vld [vmem:[#allocation8 + $0x164] ss:$16 sps:$4 sm:$0xff]   ;;  %v5595_v7 = vld [vmem:[#allocation8 + $0x16c] ss:$16 sps:$4 sm:$0xff]   ;;  %p5897_p5 = pneg %p5896_p6 }
0x19f8   : > { %v5246_v33 = vpop.f32.mrf.mxu0 }
0x19f9   : > { %v5593_v33 = vld [vmem:[#allocation8 + $0x168] ss:$16 sps:$4 sm:$0xff]   ;;  %p5904_p11 = pnand %p5903_p8, %p5897_p5 }
0x19fa   : > { %v3369_v16 = vpop.f32.mrf.mxu0 }
0x19fb   : > { %v3374_v18 = vadd.f32 %v3369_v16, %v3188_v11  ;;  %v5598_v11 = vld [vmem:[#allocation8 + $0x144] ss:$16 sps:$4 sm:$0xff]   ;;  %v5601_v16 = vld [vmem:[#allocation8 + $0x14c] ss:$16 sps:$4 sm:$0xff]  }
0x19fc   : > { %v5247_v21 = vpop.f32.mrf.mxu0 }
0x19fd   : > { %v5599_v21 = vld [vmem:[#allocation8 + $0x148] ss:$16 sps:$4 sm:$0xff]  }
0x1a62   : > { %v3444_v22 = vpop.xlane.xlu0 %3443 }
0x1a63   : > { %5726 = vrcp.f32 %v3444_v22  ;;  %v5604_v22 = vld [vmem:[#allocation8 + $0x124] ss:$16 sps:$4 sm:$0xff]  }
0x1a66   : > { %v3447_v44 = vpop.xlane.xlu1 %3446  ;;  %v3454_v62 = vpop.permute.xlu0 %3453 }
0x1a67   : > { %5728 = vrcp.f32 %v3447_v44  ;;  %5255 = vmatpush3.bf16.msra.mxu0 %v3454_v62  ;;  %v5607_v44 = vld [vmem:[#allocation8 + $0x12c] ss:$16 sps:$4 sm:$0xff]   ;;  %v5602_v62 = vld [vmem:[#allocation8 + $0x120] ss:$16 sps:$4 sm:$0xff]  }
0x1a68   : > { %3830 = vmatprep.subr.bf16.mxu0 %v5568_v47 }
0x1a70   : > { %v5727_v2 = vpop.eup %5726 }
0x1a71   : > { %v3450_v24 = vmul.f32 %v5727_v2, %v5723_v3  ;;  %v5584_v3 = vld [vmem:[#allocation8 + $0x180] ss:$16 sps:$4 sm:$0xff]   ;;  %v5605_v2 = vld [vmem:[#allocation8 + $0x128] ss:$16 sps:$4 sm:$0xff]  }
0x1a74   : > { %v5729_v17 = vpop.eup %5728 }
0x1a75   : > { %v3451_v26 = vmul.f32 %v5729_v17, %v5725_v5  ;;  %v5587_v5 = vld [vmem:[#allocation8 + $0x188] ss:$16 sps:$4 sm:$0xff]   ;;  %v5610_v17 = vld [vmem:[#allocation8 + $0x104] ss:$16 sps:$4 sm:$0xff]  }
0x1a77   : > { %v3452_v51 = vpack.c.bf16 %v3451_v26, %v3450_v24  ;;  %v5613_v24 = vld [vmem:[#allocation8 + $0x10c] ss:$16 sps:$4 sm:$0xff]   ;;  %v5608_v26 = vld [vmem:[#allocation8 + $0x100] ss:$16 sps:$4 sm:$0xff]  }
0x1a79   : > { %5257 = vmatmul.mubr.msk.bf16.vlgmr.msra.gmra.mxu0 %vm1134_vm5, %v3452_v51  ;;  %v5611_v51 = vld [vmem:[#allocation8 + $0x108] ss:$16 sps:$4 sm:$0xff]  }
0x1a7a   : > { %3862 = vmatprep.mubr.bf16.mxu0 %v5986_v0 }
0x1b39   : > { %v3493_v57 = vpop.f32.mrf.mxu0 }
0x1b3b   : > { %v5258_v28 = vpop.f32.mrf.mxu0 }
0x1b3d   : > { %v3496_v31 = vpop.f32.mrf.mxu0 }
0x1b3e   : > { %v3500_v35 = vpack.c.bf16 %v3496_v31, %v3493_v57 }
0x1b3f   : > { %v5259_v37 = vpop.f32.mrf.mxu0 }
0x1b40   : > { %5265 = vmatmul.mubr.msk.bf16.vlgmr.msra.gmra.mxu1 %vm1082_vm3, %v3500_v35 }
0x1b41   : > { %3905 = vmatprep.mubr.bf16.mxu1 %v5986_v0  ;;  %v5566_v0 = vld [vmem:[#allocation8 + $0x1e0] ss:$16 sps:$4 sm:$0xff]   ;;  %3874 = vmatpush1.bf16.msra.mxu1 %v5569_v48  ;;  %v5616_v48 = vld [vmem:[#allocation10 + $0x138] sm:$0xff]  }
0x1b42   : > { %3831 = vmatpush1.bf16.msra.mxu0 %v5566_v0  ;;  %3875 = vmatprep.subr.bf16.mxu1 %v5577_v58  ;;  %v5626_v58 = vld [vmem:[#allocation10 + $0x160] sm:$0xff]  }
0x1b43   : > { %3832 = vmatprep.subr.bf16.mxu0 %v5574_v56  ;;  %v5625_v56 = vld [vmem:[#allocation10 + $0x1a8] sm:$0xff]  }
0x1b45   : > { %3876 = vmatpush1.bf16.msra.mxu1 %v5575_v60  ;;  %v5628_v60 = vld [vmem:[#allocation10 + $0x120] sm:$0xff]  }
0x1b46   : > { %3833 = vmatpush1.bf16.msra.mxu0 %v5572_v59  ;;  %3877 = vmatprep.subr.bf16.mxu1 %v5583_v63  ;;  %v5627_v59 = vld [vmem:[#allocation10 + $0x1e0] sm:$0xff]   ;;  %v5630_v63 = vld [vmem:[#allocation10 + $0x158] sm:$0xff]  }
0x1b47   : > { %3834 = vmatprep.subr.bf16.mxu0 %v5580_v61  ;;  %v5629_v61 = vld [vmem:[#allocation10 + $0x1a0] sm:$0xff]  }
0x1b49   : > { %3878 = vmatpush1.bf16.msra.mxu1 %v5581_v36  ;;  %v5632_v36 = vld [vmem:[#allocation10 + $0x118] sm:$0xff]  }
0x1b4a   : > { %3835 = vmatpush1.bf16.msra.mxu0 %v5578_v1  ;;  %3879 = vmatprep.subr.bf16.mxu1 %v5589_v6  ;;  %v5631_v1 = vld [vmem:[#allocation10 + $0x1d8] sm:$0xff]   ;;  %v5636_v6 = vld [vmem:[#allocation10 + $0x110] sm:$0xff]  }
0x1b4b   : > { %3836 = vmatprep.subr.bf16.mxu0 %v5586_v4  ;;  %v5634_v4 = vld [vmem:[#allocation10 + $0x150] sm:$0xff]  }
0x1b4d   : > { %3880 = vmatpush1.bf16.msra.mxu1 %v5587_v5  ;;  %v5635_v5 = vld [vmem:[#allocation10 + $0x1d0] sm:$0xff]  }
0x1b4e   : > { %3837 = vmatpush1.bf16.msra.mxu0 %v5584_v3  ;;  %3881 = vmatprep.subr.bf16.mxu1 %v5595_v7  ;;  %v5633_v3 = vld [vmem:[#allocation10 + $0x198] sm:$0xff]   ;;  %v5638_v7 = vld [vmem:[#allocation10 + $0x148] sm:$0xff]  }
0x1b4f   : > { %3838 = vmatprep.subr.bf16.mxu0 %v5592_v41  ;;  %v5637_v41 = vld [vmem:[#allocation10 + $0x190] sm:$0xff]  }
0x1b51   : > { %3882 = vmatpush1.bf16.msra.mxu1 %v5593_v33  ;;  %v5640_v33 = vld [vmem:[#allocation10 + $0x108] sm:$0xff]  }
0x1b52   : > { %3883 = vmatprep.subr.bf16.mxu1 %v5601_v16  ;;  %v5642_v16 = vld [vmem:[#allocation10 + $0x140] sm:$0xff]  }
0x1b55   : > { %3884 = vmatpush1.bf16.msra.mxu1 %v5599_v21  ;;  %v5644_v21 = vld [vmem:[#allocation10 + $0x100] sm:$0xff]  }
0x1b56   : > { %3885 = vmatprep.subr.bf16.mxu1 %v5607_v44  ;;  %v4759_v44 = vld [vmem:[%s6763_s11 + $0x4] sm:$0xf] }
0x1b59   : > { %3886 = vmatpush1.bf16.msra.mxu1 %v5605_v2 }
0x1b5a   : > { %3887 = vmatprep.subr.bf16.mxu1 %v5613_v24  ;;  %v3665_v24 = vrot.slane %v4759_v44, %v1912_v13 }
0x1b5d   : > { %3888 = vmatpush1.bf16.msra.mxu1 %v5611_v51  ;;  %v3661_v51 = vrot.slane %v4759_v44, %v1908_v15 }
0x1b5e   : > { %5002 = vmatprep.subr.bf16.mxu1 %v5615_v53 }
0x1c00   : > { %v3550_v38 = vpop.f32.mrf.mxu1 }
0x1c01   : > { %v3557_v39 = vadd.f32 %v3550_v38, %v3373_v8  ;;  %v5590_v8 = vld [vmem:[#allocation8 + $0x160] ss:$16 sps:$4 sm:$0xff]  }
0x1c02   : > { %v5266_v40 = vpop.f32.mrf.mxu1  ;;  %3839 = vmatpush1.bf16.msra.mxu0 %v5590_v8  ;;  %v5639_v8 = vld [vmem:[#allocation10 + $0x1c8] sm:$0xff]  }
0x1c03   : > { %v3559_v42 = vadd.f32 %v3557_v39, %v6478_v9  ;;  %3840 = vmatprep.subr.bf16.mxu0 %v5598_v11  ;;  %v5641_v11 = vld [vmem:[#allocation10 + $0x188] sm:$0xff]  }
0x1c04   : > { %v3553_v23 = vpop.f32.mrf.mxu1 }
0x1c05   : > { %v3558_v30 = vadd.f32 %v3553_v23, %v3374_v18  ;;  %v6643_v25 = vadd.f32 %v4754_v19, %v3559_v42  ;;  %v5596_v18 = vld [vmem:[#allocation8 + $0x140] ss:$16 sps:$4 sm:$0xff]  }
0x1c06   : > { %v5267_v43 = vpop.f32.mrf.mxu1  ;;  %3841 = vmatpush1.bf16.msra.mxu0 %v5596_v18  ;;  %v5643_v18 = vld [vmem:[#allocation10 + $0x1c0] sm:$0xff]  }
0x1c07   : > { %v3560_v45 = vadd.f32 %v3558_v30, %v6482_v10  ;;  %3575 = vadd.xlane.f32.xlu1 %v6643_v25  ;;  %3842 = vmatprep.subr.bf16.mxu0 %v5604_v22  ;;  %v4758_v43 = vld [vmem:[%s6761_s9 + $0x1] ss:$0 sm:$0xff] }
0x1c08   : > { %v5645_v22 = vld [vmem:[#allocation10 + $0x180] sm:$0xff]  }
0x1c09   : > { %v6647_v46 = vadd.f32 %v4754_v19, %v3560_v45  ;;  %v4757_v19 = vld [vmem:[%s6760_s8 + $0x1] ss:$0 sm:$0xff] }
0x1c0a   : > { %3843 = vmatpush1.bf16.msra.mxu0 %v5602_v62 }
0x1c0b   : > { %3577 = vadd.xlane.f32.xlu1 %v6647_v46  ;;  %3844 = vmatprep.subr.bf16.mxu0 %v5610_v17  ;;  %v3657_v17 = vrot.slane %v4759_v44, %v1904_v12 }
0x1c0e   : > { %3845 = vmatpush1.bf16.msra.mxu0 %v5608_v26  ;;  %v3653_v26 = vrot.slane %v4759_v44, %v1900_v14  ;;  %v5649_v44 = vld [vmem:[#allocation11 + $0x20] sm:$0xff]  }
0x1c0f   : > { %4980 = vmatprep.subr.bf16.mxu0 %v5614_v55 }
0x1c90   : > { %v3576_v9 = vpop.xlane.xlu1 %3575 }
0x1c91   : > { %v3579_v49 = vmul.f32 0.0078125, %v3576_v9 }
0x1c93   : > { %v6651_v50 = vsub.f32 %v6643_v25, %v3579_v49  ;;  %v5618_v49 = vld [vmem:[#allocation10 + $0x170] sm:$0xff]  }
0x1c94   : > { %v3578_v10 = vpop.xlane.xlu1 %3577 }
0x1c95   : > { %v3580_v29 = vmul.f32 0.0078125, %v3578_v10  ;;  %v3583_v20 = vmul.f32 %v6651_v50, %v6651_v50  ;;  %v5620_v10 = vld [vmem:[#allocation10 + $0x130] sm:$0xff]  }
0x1c97   : > { %v6656_v52 = vsub.f32 %v6647_v46, %v3580_v29  ;;  %3585 = vadd.xlane.f32.xlu1 %v3583_v20  ;;  %v5621_v29 = vld [vmem:[#allocation10 + $0x1b0] sm:$0xff]   ;;  %v5622_v20 = vld [vmem:[#allocation10 + $0x168] sm:$0xff]  }
0x1c99   : > { %v3584_v54 = vmul.f32 %v6656_v52, %v6656_v52 }
0x1c9b   : > { %3587 = vadd.xlane.f32.xlu1 %v3584_v54  ;;  %v5624_v54 = vld [vmem:[#allocation10 + $0x128] sm:$0xff]  }
0x1d20   : > { %v3586_v57 = vpop.xlane.xlu1 %3585 }
0x1d21   : > { %v3589_v28 = vmul.f32 0.0078125, %v3586_v57 }
0x1d23   : > { %v3591_v31 = vadd.f32 1e-05, %v3589_v28 }
0x1d24   : > { %v3588_v35 = vpop.xlane.xlu1 %3587 }
0x1d25   : > { %5730 = vrsqrt.f32 %v3591_v31  ;;  %v3590_v37 = vmul.f32 0.0078125, %v3588_v35 }
0x1d27   : > { %v3592_v38 = vadd.f32 1e-05, %v3590_v37 }
0x1d29   : > { %5732 = vrsqrt.f32 %v3592_v38 }
0x1d32   : > { %v5731_v39 = vpop.eup %5730 }
0x1d33   : > { %v3595_v40 = vmul.f32 %v5731_v39, %v6651_v50  ;;  %v5619_v50 = vld [vmem:[#allocation10 + $0x1f0] sm:$0xff]  }
0x1d35   : > { %v3603_v30 = vmul.f32 %v4757_v19, %v3595_v40 }
0x1d36   : > { %v5733_v42 = vpop.eup %5732 }
0x1d37   : > { %v3596_v23 = vmul.f32 %v5733_v42, %v6656_v52  ;;  %v3611_v0 = vadd.f32 %v4758_v43, %v3603_v30  ;;  %v5623_v52 = vld [vmem:[#allocation10 + $0x1e8] sm:$0xff]  }
0x1d39   : > { %v3604_v45 = vmul.f32 %v4757_v19, %v3596_v23 }
0x1d3b   : > { %v3612_v47 = vadd.f32 %v4758_v43, %v3604_v45 }
0x1d3d   : > { %v3613_v9 = vpack.c.bf16 %v3612_v47, %v3611_v0 }
0x1d3f   : > { %3863 = vmatmul.mubr.bf16.vlgmr.msra.gmra.mxu0 %v3613_v9  ;;  %3906 = vmatmul.mubr.bf16.vlgmr.msra.gmra.mxu1 %v3613_v9 }
0x1d40   : > { %4981 = vmatpush3.bf16.msra.mxu0 %v5616_v48  ;;  %5003 = vmatpush3.bf16.msra.mxu1 %v5617_v27 }
0x1d41   : > { %4982 = vmatprep.subr.bf16.mxu0 %v5618_v49  ;;  %5004 = vmatprep.subr.bf16.mxu1 %v5619_v50 }
0x1d44   : > { %4983 = vmatpush3.bf16.msra.mxu0 %v5620_v10  ;;  %5005 = vmatpush3.bf16.msra.mxu1 %v5621_v29  ;;  %v4793_v10 = vld [vmem:[%s6765_s13 + $0x1] ss:$0 sm:$0xff] }
0x1d45   : > { %4984 = vmatprep.subr.bf16.mxu0 %v5622_v20  ;;  %5006 = vmatprep.subr.bf16.mxu1 %v5623_v52 }
0x1d48   : > { %4985 = vmatpush3.bf16.msra.mxu0 %v5624_v54  ;;  %5007 = vmatpush3.bf16.msra.mxu1 %v5625_v56 }
0x1d49   : > { %4986 = vmatprep.subr.bf16.mxu0 %v5626_v58  ;;  %5008 = vmatprep.subr.bf16.mxu1 %v5627_v59 }
0x1d4c   : > { %4987 = vmatpush3.bf16.msra.mxu0 %v5628_v60  ;;  %5009 = vmatpush3.bf16.msra.mxu1 %v5629_v61 }
0x1d4d   : > { %4988 = vmatprep.subr.bf16.mxu0 %v5630_v63  ;;  %5010 = vmatprep.subr.bf16.mxu1 %v5631_v1 }
0x1d50   : > { %4989 = vmatpush3.bf16.msra.mxu0 %v5632_v36  ;;  %5011 = vmatpush3.bf16.msra.mxu1 %v5633_v3 }
0x1d51   : > { %4990 = vmatprep.subr.bf16.mxu0 %v5634_v4  ;;  %5012 = vmatprep.subr.bf16.mxu1 %v5635_v5 }
0x1d54   : > { %4991 = vmatpush3.bf16.msra.mxu0 %v5636_v6  ;;  %5013 = vmatpush3.bf16.msra.mxu1 %v5637_v41  ;;  %v5646_v41 = vld [vmem:[#allocation11 + $0x38] sm:$0xff]  }
0x1d55   : > { %4992 = vmatprep.subr.bf16.mxu0 %v5638_v7  ;;  %5014 = vmatprep.subr.bf16.mxu1 %v5639_v8 }
0x1d58   : > { %4993 = vmatpush3.bf16.msra.mxu0 %v5640_v33  ;;  %5015 = vmatpush3.bf16.msra.mxu1 %v5641_v11 }
0x1d59   : > { %4994 = vmatprep.subr.bf16.mxu0 %v5642_v16  ;;  %5016 = vmatprep.subr.bf16.mxu1 %v5643_v18 }
0x1d5c   : > { %4995 = vmatpush3.bf16.msra.mxu0 %v5644_v21  ;;  %5017 = vmatpush3.bf16.msra.mxu1 %v5645_v22 }
0x1d5d   : > { %5268 = vmatprep.subr.bf16.mxu0 %v5988_v32 }
0x1dff   : > { %v3864_v62 = vpop.f32.mrf.mxu0  ;;  %v3907_v2 = vpop.f32.mrf.mxu1 }
0x1e00   : > { %v3865_v39 = vadd.f32 %v3864_v62, %v3653_v26  ;;  %v3908_v40 = vadd.f32 %v3907_v2, %v3661_v51  ;;  %v5650_v62 = vld [vmem:[#allocation11 + $0x18] sm:$0xff]   ;;  %v5651_v2 = vld [vmem:[#allocation11 + $0x10] sm:$0xff]  }
0x1e01   : > { %v3866_v55 = vpop.f32.mrf.mxu0  ;;  %v3909_v53 = vpop.f32.mrf.mxu1 }
0x1e02   : > { %v3867_v31 = vadd.f32 %v3866_v55, %v3657_v17  ;;  %v3910_v35 = vadd.f32 %v3909_v53, %v3665_v24  ;;  %v3916_v45 = vmax.f32 %v3865_v39, 0.0  ;;  %v3918_v0 = vmax.f32 %v3908_v40, 0.0  ;;  %v4827_v40 = vld [vmem:[%s6767_s15] ss:$0 sm:$0xff] }
0x1e03   : > { %v3868_v57 = vpop.f32.mrf.mxu0  ;;  %v3911_v28 = vpop.f32.mrf.mxu1 }
0x1e04   : > { %v3869_v37 = vadd.f32 %v3868_v57, %v3653_v26  ;;  %v3912_v38 = vadd.f32 %v3911_v28, %v3661_v51  ;;  %v3917_v14 = vmax.f32 %v3867_v31, 0.0  ;;  %v3919_v43 = vmax.f32 %v3910_v35, 0.0 }
0x1e05   : > { %v3870_v12 = vpop.f32.mrf.mxu0  ;;  %v3913_v19 = vpop.f32.mrf.mxu1 }
0x1e06   : > { %v3871_v42 = vadd.f32 %v3870_v12, %v3657_v17  ;;  %v3914_v13 = vadd.f32 %v3913_v19, %v3665_v24  ;;  %v3920_v23 = vmax.f32 %v3869_v37, 0.0  ;;  %v3922_v30 = vmax.f32 %v3912_v38, 0.0  ;;  %v5652_v17 = vld [vmem:[#allocation11 + $0x8] sm:$0xff]   ;;  %v5653_v24 = vld [vmem:[#allocation11] sm:$0xff]  }
0x1e07   : > { %v4826_v37 = vld [vmem:[%s6766_s14] ss:$0 sm:$0xff] }
0x1e08   : > { %v3921_v34 = vmax.f32 %v3871_v42, 0.0  ;;  %v3923_v15 = vmax.f32 %v3914_v13, 0.0  ;;  %v3924_v27 = vpack.c.bf16 %v3920_v23, %v3916_v45  ;;  %v3926_v9 = vpack.c.bf16 %v3922_v30, %v3918_v0  ;;  %v4828_v23 = vld [vmem:[%s6769_s17] ss:$0 sm:$0xff] }
0x1e0a   : > { %v3925_v47 = vpack.c.bf16 %v3921_v34, %v3917_v14  ;;  %v3927_v48 = vpack.c.bf16 %v3923_v15, %v3919_v43 }
0x1e0c   : > { %4225 = vmatprep.mubr.bf16.mxu0 %v3925_v47  ;;  %4266 = vmatprep.mubr.bf16.mxu1 %v3927_v48 }
0x1e0d   : > { %4226 = vmatmul.mubr.bf16.vlgmr.msra.gmra.mxu0 %v3924_v27  ;;  %4267 = vmatmul.mubr.bf16.vlgmr.msra.gmra.mxu1 %v3926_v9 }
0x1e0e   : > { %5284 = vmatprep.mubr.msk.bf16.mxu0 %vm5989_vm2, %v5988_v32  ;;  %5269 = vmatpush3.bf16.msra.mxu0 %v5646_v41 }
0x1e0f   : > { %5270 = vmatprep.subr.bf16.mxu0 %v5988_v32 }
0x1ecd   : > { %v4996_v49 = vpop.f32.mrf.mxu0  ;;  %v5018_v50 = vpop.f32.mrf.mxu1 }
0x1ecf   : > { %v4997_v29 = vpop.f32.mrf.mxu0  ;;  %v5019_v20 = vpop.f32.mrf.mxu1 }
0x1ed0   : > { %v4998_v52 = vadd.f32 %v4997_v29, %v4996_v49  ;;  %v5020_v59 = vadd.f32 %v5019_v20, %v5018_v50 }
0x1ed1   : > { %v4999_v54 = vpop.f32.mrf.mxu0  ;;  %v5021_v56 = vpop.f32.mrf.mxu1 }
0x1ed2   : > { %v4228_v58 = vadd.f32 %v4998_v52, %v4793_v10 }
0x1ed3   : > { %v5000_v60 = vpop.f32.mrf.mxu0  ;;  %v5022_v61 = vpop.f32.mrf.mxu1 }
0x1ed4   : > { %v4269_v63 = vadd.f32 %v5020_v59, %v4228_v58  ;;  %v5001_v1 = vadd.f32 %v5000_v60, %v4999_v54  ;;  %v5023_v3 = vadd.f32 %v5022_v61, %v5021_v56 }
0x1ed6   : > { %v4231_v36 = vadd.f32 %v5001_v1, %v4793_v10  ;;  %v4275_v4 = vadd.f32 %v4269_v63, %v6643_v25  ;;  %v5647_v25 = vld [vmem:[#allocation11 + $0x30] sm:$0xff]  }
0x1ed7   : > { %5271 = vmatpush3.bf16.msra.mxu0 %v5647_v25 }
0x1ed8   : > { %v4272_v5 = vadd.f32 %v5023_v3, %v4231_v36  ;;  %4279 = vadd.xlane.f32.xlu1 %v4275_v4  ;;  %5272 = vmatprep.subr.bf16.mxu0 %v5988_v32 }
0x1eda   : > { %v4276_v6 = vadd.f32 %v4272_v5, %v6647_v46  ;;  %v5648_v46 = vld [vmem:[#allocation11 + $0x28] sm:$0xff]  }
0x1edb   : > { %5273 = vmatpush3.bf16.msra.mxu0 %v5648_v46 }
0x1edc   : > { %4281 = vadd.xlane.f32.xlu1 %v4276_v6  ;;  %5274 = vmatprep.subr.bf16.mxu0 %v5988_v32 }
0x1edf   : > { %5275 = vmatpush3.bf16.msra.mxu0 %v5649_v44 }
0x1ee0   : > { %5276 = vmatprep.subr.bf16.mxu0 %v5988_v32 }
0x1ee3   : > { %5277 = vmatpush3.bf16.msra.mxu0 %v5650_v62 }
0x1ee4   : > { %5278 = vmatprep.subr.bf16.mxu0 %v5988_v32 }
0x1ee7   : > { %5279 = vmatpush3.bf16.msra.mxu0 %v5651_v2 }
0x1ee8   : > { %5280 = vmatprep.subr.bf16.mxu0 %v5988_v32 }
0x1eeb   : > { %5281 = vmatpush3.bf16.msra.mxu0 %v5652_v17 }
0x1eec   : > { %5282 = vmatprep.subr.bf16.mxu0 %v5988_v32 }
0x1eef   : > { %5283 = vmatpush3.bf16.msra.mxu0 %v5653_v24 }
0x1f61   : > { %v4280_v7 = vpop.xlane.xlu1 %4279 }
0x1f62   : > { %v4283_v8 = vmul.f32 0.0078125, %v4280_v7 }
0x1f64   : > { %v4285_v33 = vsub.f32 %v4275_v4, %v4283_v8 }
0x1f65   : > { %v4282_v11 = vpop.xlane.xlu1 %4281 }
0x1f66   : > { %v4284_v16 = vmul.f32 0.0078125, %v4282_v11  ;;  %v4287_v18 = vmul.f32 %v4285_v33, %v4285_v33 }
0x1f68   : > { %v4286_v21 = vsub.f32 %v4276_v6, %v4284_v16  ;;  %4289 = vadd.xlane.f32.xlu0 %v4287_v18 }
0x1f6a   : > { %v4288_v22 = vmul.f32 %v4286_v21, %v4286_v21 }
0x1f6c   : > { %4291 = vadd.xlane.f32.xlu1 %v4288_v22 }
0x1ff1   : > { %v4290_v26 = vpop.xlane.xlu0 %4289 }
0x1ff2   : > { %v4293_v51 = vmul.f32 0.0078125, %v4290_v26 }
0x1ff4   : > { %v4295_v55 = vadd.f32 1e-05, %v4293_v51 }
0x1ff5   : > { %v4292_v53 = vpop.xlane.xlu1 %4291 }
0x1ff6   : > { %5734 = vrsqrt.f32 %v4295_v55  ;;  %v4294_v57 = vmul.f32 0.0078125, %v4292_v53 }
0x1ff8   : > { %v4296_v28 = vadd.f32 1e-05, %v4294_v57 }
0x1ffa   : > { %5736 = vrsqrt.f32 %v4296_v28 }
0x2003   : > { %v5735_v31 = vpop.eup %5734 }
0x2004   : > { %v4299_v35 = vmul.f32 %v5735_v31, %v4285_v33 }
0x2006   : > { %v4307_v32 = vmul.f32 %v4826_v37, %v4299_v35 }
0x2007   : > { %v5737_v38 = vpop.eup %5736 }
0x2008   : > { %v4300_v39 = vmul.f32 %v5737_v38, %v4286_v21  ;;  %v4315_v19 = vadd.f32 %v4827_v40, %v4307_v32 }
0x200a   : > { %v4308_v12 = vmul.f32 %v4826_v37, %v4300_v39 }
0x200c   : > { %v4316_v42 = vadd.f32 %v4827_v40, %v4308_v12 }
0x200e   : > { %v4317_v13 = vpack.c.bf16 %v4316_v42, %v4315_v19 }
0x2010   : > { %5285 = vmatmul.mubr.bf16.vlgmr.msra.gmra.mxu0 %v4317_v13 }
0x20d0   : > { %v4423_v30 = vpop.f32.mrf.mxu0 }
0x20d1   : > { %v4424_v14 = vadd.f32 %v4828_v23, %v4423_v30 }
0x20d2   : > { %v5286_v43 = vpop.f32.mrf.mxu0 }
0x20d3   : > { %4430 = vst [vmem:[%s656_s27] sm:$0xff] %v4424_v14 }
0x20d4   : > { %v4426_v34 = vpop.f32.mrf.mxu0 }
0x20d5   : > { %v4427_v15 = vadd.f32 %v4828_v23, %v4426_v34 }
0x20d6   : > { %v5287_v45 = vpop.f32.mrf.mxu0 }
0x20d7   : > { %4431 = vst [vmem:[%s656_s27 + $0x8] sm:$0xff] %v4427_v15 }
0x20d8   : > { %5907 = shalt.err (!%p5904_p11)
}
0x20d9   : > { %s5908_s19 = scalar_lea.hbm %s6710_s24, 256  ;;  %s5912_s26 = scalar_lea.hbm %s6818_s2, 512 }
0x20da   : > { %p5909_p0 = scmp.ne.s32.totalorder %s6710_s24, %s5908_s19  ;;  %p5913_p10 = scmp.lt.s32.totalorder %s6710_s24, %s6818_s2 }
0x20db   : > { %p5914_p3 = scmp.lt.s32.totalorder %s5912_s26, %s5908_s19 }
0x20dc   : > { %p5910_p1 = pnand %p5909_p0, %p6819_p4 }
0x20dd   : > { %p5915_p2 = por %p5914_p3, %p5913_p10 }
0x20de   : > { %p5911_p12 = pneg %p5910_p1 }
0x20e0   : > { %p5916_p9 = pnand %p5915_p2, %p5911_p12 }
0x20e2   : > { %5919 = shalt.err (!%p5916_p9)
}
0x20e3   : > { %s5994_s3 = smov 128   ;;  %s5995_s1 = smov 8  }
0x20e4   : > { %5312 = dma.vmem_to_hbm [thread:$0]  (%p6819_p4), %s6705_s25, 256, %s6710_s24, %s6712_s20, %s5994_s3, %s5994_s3, %s5995_s1  }
0x20e5 PF: > { %s6820_s0 = sld [smem:[#allocation21_spill]] }
0x20e6   : > { %s6821_s29 = sld [smem:[#allocation19_spill]] }
0x20e7   : > { %s6822_s27 = sld [smem:[#allocation25_spill]] }
0x20eb   : > { %p5349_p6 = scmp.ge.s32.totalorder %s6820_s0, 2 }
0x20ec   : > { %s4461_s22 = sand.u32 1, %s6821_s29  }
0x20ed   : > { %p6823_p5 = scmp.ne.s32.totalorder %s6822_s27, 0  ;;  %s4462_s19 = scalar_lea.sflag [#allocation4], %s4461_s22 }
0x20ef   : > { %p5334_p7 = pnand %p5349_p6, %p6823_p5 }
0x20f1   : > { %p5335_p13 = pneg %p5334_p7 }
0x20f3   : > { %5953 = dma.done.wait (%p5335_p13), %s4462_s19, 256  }
0x20f4   : > { %5955 = vsyncadd (%p5335_p13), %s4462_s19, 4294967040  ;;  %s6824_s30 = sld [smem:[#allocation22_spill]]  ;;  %s6827_s27 = smov %s5962_s28 }
0x20f5   : > { %s6825_s26 = sld [smem:[#allocation20_spill]] }
0x20f6   : > { %s6826_s29 = sld [smem:[#allocation23_spill]] }
0x20fa   : > { %p32_p8 = scmp.ge.s32.totalorder %s6824_s30, 4  }
0x20fb   : > { %s6828_s28 = smov %s6825_s26 }
0x20fc   :  { %34 = sbr.rel (!%p32_p8) target bundleno = 13 (0xd), region = 163 }
0x2101   :  { %4467 = vsyncpa [#allocation3], 1 }
0x2102   :  { %4469 = vsyncpa [#allocation3 + $0x1], 1 }
0x2103   :  { %4470 = vsyncpa [#allocation6], 1 }
0x2104   :  { %4471 = vsyncpa [#allocation9], 1 }
0x2105   :  { %4472 = vsyncpa [#allocation12], 1 }
0x2106   :  { %4473 = vsyncpa [#allocation4], 1 }
0x2107   :  { %4475 = vsyncpa [#allocation4 + $0x1], 1 }

</bundles_post_ra>
